<compile_context>
chip_gen: v7x
topology: tpu7x:2x2x1
jax: 0.10.0
libtpu: 0.0.40
codegen_flags: <defaults>
</compile_context>

<pallas_src>
import jax
import jax.numpy as jnp
from jax import lax
from jax.experimental import pallas as pl
from jax.experimental.pallas import tpu as pltpu

# ---------------------- small synthetic config ----------------------
HIDDEN = 32          # config.hidden_size
HEADS = 4            # config.num_attention_heads
HEAD_DIM = HIDDEN // HEADS
INTERMEDIATE = 64    # config.intermediate_size
LAYERS = 2           # config.num_hidden_layers
SEQ = 8              # number of patches / tokens
BATCH = 2
EPS = 1e-6           # config.layer_norm_eps
SCALE = HEAD_DIM ** -0.5

D_PAD = 128          # lane-dense padded hidden size
I_PAD = 128          # lane-dense padded intermediate size


# ======================= in-kernel helpers =======================

def _gelu_tanh(y):
    # gelu_pytorch_tanh
    return 0.5 * y * (1.0 + jnp.tanh(0.7978845608028654 * (y + 0.044715 * y * y * y)))


# =========================== Pallas kernel ===========================

def _vit_kernel(x_ref,
                ln1_g, ln1_b, wqkv, bqkv, wo, bo, ln2_g, ln2_b,
                wfc1, bfc1, wfc2, bfc2,
                post_g, post_b, q_probe, wkv, bkv, out_w, out_b,
                hln_g, hln_b, hwfc1, hbfc1, hwfc2, hbfc2,
                lhs_ref, pool_ref):
    # Lane mask selecting the HIDDEN real columns inside the 128-lane padded slab.
    col = lax.broadcasted_iota(jnp.int32, (1, D_PAD), 1)
    mask = (col < HIDDEN).astype(jnp.float32)
    inv_d = jnp.float32(1.0 / HIDDEN)

    def ln(x, g, b):
        # LayerNorm over the real HIDDEN columns only; padded lanes stay exactly 0.
        mean = jnp.sum(x, axis=-1, keepdims=True) * inv_d
        xc = (x - mean) * mask
        var = jnp.sum(xc * xc, axis=-1, keepdims=True) * inv_d
        return xc * lax.rsqrt(var + EPS) * g + b

    def mm(a, w, bias):
        # bf16 MXU matmul, f32 accumulation, f32 bias add.
        return jnp.dot(a.astype(jnp.bfloat16), w,
                       preferred_element_type=jnp.float32) + bias

    def attend(qm, km, vm, w_out, b_out):
        # Tiny per-head score/softmax/PV (all f32), then ONE merged out-projection
        # (concat(heads) @ Wo, K=HIDDEN) instead of 4 K=8 matmuls.
        heads = []
        for i in range(HEADS):
            sl = slice(i * HEAD_DIM, (i + 1) * HEAD_DIM)
            s = lax.dot_general(qm[:, sl], km[:, sl], (((1,), (1,)), ((), ())),
                                preferred_element_type=jnp.float32)    # (R, S)
            m = jnp.max(s, axis=-1, keepdims=True)
            p = jnp.exp(s - m)
            p = p * pl.reciprocal(jnp.sum(p, axis=-1, keepdims=True), approx=True)
            heads.append(jnp.dot(p, vm[:, sl],
                                 preferred_element_type=jnp.float32))  # (R, hd)
        hcat = jnp.concatenate(heads, axis=-1)                         # (R, HIDDEN)
        return mm(hcat, w_out, b_out)                                  # (R, D_PAD)

    x = x_ref[...].astype(jnp.float32)                                 # (S, D_PAD), zero-padded

    # ---------------- encoder: all layers inside one kernel step ----------------
    for l in range(LAYERS):
        h = ln(x, ln1_g[l], ln1_b[l])
        qkv = mm(h, wqkv[l], bqkv[l])                # (S, 3*D_PAD); scale folded into Q
        attn = attend(qkv[:, :D_PAD], qkv[:, D_PAD:2 * D_PAD], qkv[:, 2 * D_PAD:],
                      wo[l], bo[l])
        x = x + attn                                  # residual
        h = ln(x, ln2_g[l], ln2_b[l])
        h = _gelu_tanh(mm(h, wfc1[l], bfc1[l]))
        x = x + mm(h, wfc2[l], bfc2[l])               # residual

    # ------------- post_layernorm + SiglipMultiheadAttentionPoolingHead -------------
    lhs = ln(x, post_g[...], post_b[...])
    lhs_ref[...] = lhs.astype(lhs_ref.dtype)          # last_hidden_state (padded)

    kv = mm(lhs, wkv[...], bkv[...])                  # (S, 2*D_PAD) fused K/V in-proj
    attn = attend(q_probe[...], kv[:, :D_PAD], kv[:, D_PAD:], out_w[...], out_b[...])
    h = ln(attn, hln_g[...], hln_b[...])
    h = _gelu_tanh(mm(h, hwfc1[...], hbfc1[...]))
    pool_ref[...] = (attn + mm(h, hwfc2[...], hbfc2[...])).astype(pool_ref.dtype)


# ============================ wrapper ============================

def siglip_vision_transformer(hidden_states, packed):
    B, S, D = hidden_states.shape
    # Lane-dense activations: pad the hidden axis to 128.
    x = jnp.pad(hidden_states, ((0, 0), (0, 0), (0, D_PAD - D)))

    enc, head = packed["enc"], packed["head"]
    weights = [
        enc["ln1_g"], enc["ln1_b"], enc["wqkv"], enc["bqkv"], enc["wo"], enc["bo"],
        enc["ln2_g"], enc["ln2_b"], enc["wfc1"], enc["bfc1"], enc["wfc2"], enc["bfc2"],
        head["post_g"], head["post_b"], head["q"], head["wkv"], head["bkv"],
        head["out_w"], head["out_b"], head["ln_g"], head["ln_b"],
        head["wfc1"], head["bfc1"], head["wfc2"], head["bfc2"],
    ]

    def wspec(a):
        nd = a.ndim
        # Full-array block, constant index -> fetched once, resident across grid steps.
        return pl.BlockSpec(a.shape, lambda b, _n=nd: (0,) * _n)

    lhs_p, pool_p = pl.pallas_call(
        _vit_kernel,
        out_shape=(jax.ShapeDtypeStruct((B, S, D_PAD), hidden_states.dtype),
                   jax.ShapeDtypeStruct((B, 1, D_PAD), hidden_states.dtype)),
        grid=(B,),
        in_specs=[pl.BlockSpec((None, S, D_PAD), lambda b: (b, 0, 0))]
                 + [wspec(a) for a in weights],
        out_specs=(pl.BlockSpec((None, S, D_PAD), lambda b: (b, 0, 0)),
                   pl.BlockSpec((None, 1, D_PAD), lambda b: (b, 0, 0))),
        compiler_params=pltpu.CompilerParams(dimension_semantics=("parallel",)),
    )(x, *weights)

    return lhs_p[..., :D], pool_p[:, 0, :D]


# ============================ params ============================

def init_params(key):
    def nrm(k, shape, scale=0.02):
        return scale * jax.random.normal(k, shape, dtype=jnp.float32)

    ones = lambda: jnp.ones((1, HIDDEN), jnp.float32)
    zeros = lambda: jnp.zeros((1, HIDDEN), jnp.float32)

    layers = []
    for l in range(LAYERS):
        ks = jax.random.split(jax.random.fold_in(key, 100 + l), 12)
        layers.append(dict(
            ln1_g=ones(), ln1_b=zeros(),
            wq=nrm(ks[0], (HIDDEN, HIDDEN)), bq=nrm(ks[1], (HIDDEN,)),
            wk=nrm(ks[2], (HIDDEN, HIDDEN)), bk=nrm(ks[3], (HIDDEN,)),
            wv=nrm(ks[4], (HIDDEN, HIDDEN)), bv=nrm(ks[5], (HIDDEN,)),
            wo=nrm(ks[6], (HIDDEN, HIDDEN)), bo=nrm(ks[7], (HIDDEN,)),
            ln2_g=ones(), ln2_b=zeros(),
            w_fc1=nrm(ks[8], (HIDDEN, INTERMEDIATE)), b_fc1=nrm(ks[9], (INTERMEDIATE,)),
            w_fc2=nrm(ks[10], (INTERMEDIATE, HIDDEN)), b_fc2=nrm(ks[11], (HIDDEN,)),
        ))

    hk = jax.random.split(jax.random.fold_in(key, 999), 14)
    head = dict(
        probe=nrm(hk[0], (1, 1, HIDDEN)),
        in_wq=nrm(hk[1], (HIDDEN, HIDDEN)), in_bq=nrm(hk[2], (HIDDEN,)),
        in_wk=nrm(hk[3], (HIDDEN, HIDDEN)), in_bk=nrm(hk[4], (HIDDEN,)),
        in_wv=nrm(hk[5], (HIDDEN, HIDDEN)), in_bv=nrm(hk[6], (HIDDEN,)),
        out_w=nrm(hk[7], (HIDDEN, HIDDEN)), out_b=nrm(hk[8], (HIDDEN,)),
        ln_g=ones(), ln_b=zeros(),
        w_fc1=nrm(hk[9], (HIDDEN, INTERMEDIATE)), b_fc1=nrm(hk[10], (INTERMEDIATE,)),
        w_fc2=nrm(hk[11], (INTERMEDIATE, HIDDEN)), b_fc2=nrm(hk[12], (HIDDEN,)),
    )

    return dict(layers=layers, post_ln_g=ones(), post_ln_b=zeros(), head=head)


def _pad_mat(w, rows, cols, dtype=jnp.float32):
    out = jnp.zeros((rows, cols), jnp.float32)
    out = out.at[: w.shape[0], : w.shape[1]].set(w)
    return out.astype(dtype)


def _pad_row(v, cols, dtype=jnp.float32):
    v = v.reshape(1, -1)
    out = jnp.zeros((1, cols), jnp.float32)
    out = out.at[:, : v.shape[1]].set(v)
    return out.astype(dtype)


def pack_params(params):
    """Pad to lane-dense 128 widths, stack per-layer weights along L, fuse QKV,
    fold the attention scale, cast projection weights to bf16."""
    layers = params["layers"]
    BF = jnp.bfloat16

    def per_layer(fn):
        return jnp.stack([fn(lp) for lp in layers], axis=0)

    enc = dict(
        ln1_g=per_layer(lambda lp: _pad_row(lp["ln1_g"], D_PAD)),
        ln1_b=per_layer(lambda lp: _pad_row(lp["ln1_b"], D_PAD)),
        wqkv=per_layer(lambda lp: jnp.concatenate(
            [_pad_mat(lp["wq"] * SCALE, D_PAD, D_PAD),
             _pad_mat(lp["wk"], D_PAD, D_PAD),
             _pad_mat(lp["wv"], D_PAD, D_PAD)], axis=1).astype(BF)),
        bqkv=per_layer(lambda lp: jnp.concatenate(
            [_pad_row(lp["bq"] * SCALE, D_PAD),
             _pad_row(lp["bk"], D_PAD),
             _pad_row(lp["bv"], D_PAD)], axis=1)),
        wo=per_layer(lambda lp: _pad_mat(lp["wo"], HIDDEN, D_PAD, BF)),
        bo=per_layer(lambda lp: _pad_row(lp["bo"], D_PAD)),
        ln2_g=per_layer(lambda lp: _pad_row(lp["ln2_g"], D_PAD)),
        ln2_b=per_layer(lambda lp: _pad_row(lp["ln2_b"], D_PAD)),
        wfc1=per_layer(lambda lp: _pad_mat(lp["w_fc1"], D_PAD, I_PAD, BF)),
        bfc1=per_layer(lambda lp: _pad_row(lp["b_fc1"], I_PAD)),
        wfc2=per_layer(lambda lp: _pad_mat(lp["w_fc2"], I_PAD, D_PAD, BF)),
        bfc2=per_layer(lambda lp: _pad_row(lp["b_fc2"], D_PAD)),
    )

    h = params["head"]
    # The probe is a parameter -> its Q in-projection is input-independent;
    # precompute it once in f32 (scale folded).
    q = (h["probe"].reshape(1, HIDDEN) @ h["in_wq"] + h["in_bq"][None, :]) * SCALE
    head = dict(
        post_g=_pad_row(params["post_ln_g"], D_PAD),
        post_b=_pad_row(params["post_ln_b"], D_PAD),
        q=_pad_row(q, D_PAD),
        wkv=jnp.concatenate([_pad_mat(h["in_wk"], D_PAD, D_PAD),
                             _pad_mat(h["in_wv"], D_PAD, D_PAD)], axis=1).astype(BF),
        bkv=jnp.concatenate([_pad_row(h["in_bk"], D_PAD),
                             _pad_row(h["in_bv"], D_PAD)], axis=1),
        out_w=_pad_mat(h["out_w"], HIDDEN, D_PAD, BF),
        out_b=_pad_row(h["out_b"], D_PAD),
        ln_g=_pad_row(h["ln_g"], D_PAD),
        ln_b=_pad_row(h["ln_b"], D_PAD),
        wfc1=_pad_mat(h["w_fc1"], D_PAD, I_PAD, BF),
        bfc1=_pad_row(h["b_fc1"], I_PAD),
        wfc2=_pad_mat(h["w_fc2"], I_PAD, D_PAD, BF),
        bfc2=_pad_row(h["b_fc2"], D_PAD),
    )
    return dict(enc=enc, head=head)


# =================== pure-JAX reference (for checking) ===================

def _ref_ln(x, g, b):
    mean = jnp.mean(x, axis=-1, keepdims=True)
    var = jnp.mean((x - mean) ** 2, axis=-1, keepdims=True)
    return (x - mean) / jnp.sqrt(var + EPS) * g + b


def _ref_gelu(y):
    return 0.5 * y * (1.0 + jnp.tanh(0.7978845608028654 * (y + 0.044715 * y ** 3)))


def _ref_attn(q, k, v):
    s = jnp.einsum("bhqd,bhkd->bhqk", q, k) * SCALE
    p = jax.nn.softmax(s, axis=-1)
    return jnp.einsum("bhqk,bhkd->bhqd", p, v)


def reference_forward(x, params):
    B, S, D = x.shape

    def split(t, s):
        return t.reshape(B, s, HEADS, HEAD_DIM).transpose(0, 2, 1, 3)

    for lp in params["layers"]:
        res = x
        h = _ref_ln(x, lp["ln1_g"], lp["ln1_b"])
        q = h @ lp["wq"] + lp["bq"]
        k = h @ lp["wk"] + lp["bk"]
        v = h @ lp["wv"] + lp["bv"]
        o = _ref_attn(split(q, S), split(k, S), split(v, S))
        o = o.transpose(0, 2, 1, 3).reshape(B, S, D)
        x = res + o @ lp["wo"] + lp["bo"]
        res = x
        h = _ref_ln(x, lp["ln2_g"], lp["ln2_b"])
        h = _ref_gelu(h @ lp["w_fc1"] + lp["b_fc1"])
        x = res + h @ lp["w_fc2"] + lp["b_fc2"]

    lhs = _ref_ln(x, params["post_ln_g"], params["post_ln_b"])

    hp = params["head"]
    probe = jnp.broadcast_to(hp["probe"], (B, 1, D))
    q = probe @ hp["in_wq"] + hp["in_bq"]
    k = lhs @ hp["in_wk"] + hp["in_bk"]
    v = lhs @ hp["in_wv"] + hp["in_bv"]
    o = _ref_attn(split(q, 1), split(k, S), split(v, S))
    o = o.transpose(0, 2, 1, 3).reshape(B, 1, D)
    attn = o @ hp["out_w"] + hp["out_b"]
    res = attn
    h = _ref_ln(attn, hp["ln_g"], hp["ln_b"])
    h = _ref_gelu(h @ hp["w_fc1"] + hp["b_fc1"])
    pooled = (res + h @ hp["w_fc2"] + hp["b_fc2"])[:, 0]
    return lhs, pooled


# ============================ main ============================

if __name__ == "__main__":
    key = jax.random.PRNGKey(0)
    pkey, xkey = jax.random.split(key)
    params = init_params(pkey)
    packed = pack_params(params)

    # inputs_embeds, i.e. already-embedded patch tokens: (B, S, D)
    hidden_states = jax.random.normal(xkey, (BATCH, SEQ, HIDDEN), dtype=jnp.float32)

    fwd = jax.jit(siglip_vision_transformer)
    last_hidden_state, pooler_output = fwd(hidden_states, packed)
    jax.block_until_ready((last_hidden_state, pooler_output))

    assert last_hidden_state.shape == (BATCH, SEQ, HIDDEN)
    assert pooler_output.shape == (BATCH, HIDDEN)
    assert bool(jnp.all(jnp.isfinite(last_hidden_state)))
    assert bool(jnp.all(jnp.isfinite(pooler_output)))

    # numerical check against a pure-JAX reference of the original module
    ref_lhs, ref_pool = reference_forward(hidden_states, params)
    assert bool(jnp.allclose(last_hidden_state, ref_lhs, atol=2e-2, rtol=2e-2))
    assert bool(jnp.allclose(pooler_output, ref_pool, atol=2e-2, rtol=2e-2))

    print("KERNEL_OK")
</pallas_src>

<mosaic_0001>
module attributes {stable_mosaic.version = 11 : i64} {
  func.func @_vit_kernel(%arg0: i32, %arg1: memref<1x8x128xf32, #tpu.memory_space<vmem>>, %arg2: memref<2x1x128xf32, #tpu.memory_space<vmem>>, %arg3: memref<2x1x128xf32, #tpu.memory_space<vmem>>, %arg4: memref<2x128x384xbf16, #tpu.memory_space<vmem>>, %arg5: memref<2x1x384xf32, #tpu.memory_space<vmem>>, %arg6: memref<2x32x128xbf16, #tpu.memory_space<vmem>>, %arg7: memref<2x1x128xf32, #tpu.memory_space<vmem>>, %arg8: memref<2x1x128xf32, #tpu.memory_space<vmem>>, %arg9: memref<2x1x128xf32, #tpu.memory_space<vmem>>, %arg10: memref<2x128x128xbf16, #tpu.memory_space<vmem>>, %arg11: memref<2x1x128xf32, #tpu.memory_space<vmem>>, %arg12: memref<2x128x128xbf16, #tpu.memory_space<vmem>>, %arg13: memref<2x1x128xf32, #tpu.memory_space<vmem>>, %arg14: memref<1x128xf32, #tpu.memory_space<vmem>>, %arg15: memref<1x128xf32, #tpu.memory_space<vmem>>, %arg16: memref<1x128xf32, #tpu.memory_space<vmem>>, %arg17: memref<128x256xbf16, #tpu.memory_space<vmem>>, %arg18: memref<1x256xf32, #tpu.memory_space<vmem>>, %arg19: memref<32x128xbf16, #tpu.memory_space<vmem>>, %arg20: memref<1x128xf32, #tpu.memory_space<vmem>>, %arg21: memref<1x128xf32, #tpu.memory_space<vmem>>, %arg22: memref<1x128xf32, #tpu.memory_space<vmem>>, %arg23: memref<128x128xbf16, #tpu.memory_space<vmem>>, %arg24: memref<1x128xf32, #tpu.memory_space<vmem>>, %arg25: memref<128x128xbf16, #tpu.memory_space<vmem>>, %arg26: memref<1x128xf32, #tpu.memory_space<vmem>>, %arg27: memref<1x8x128xf32, #tpu.memory_space<vmem>>, %arg28: memref<1x1x128xf32, #tpu.memory_space<vmem>>) attributes {dimension_semantics = [#tpu.dimension_semantics<parallel>], iteration_bounds = array<i64: 2>, scalar_prefetch = 0 : i64, scratch_operands = 0 : i64, tpu.core_type = #tpu.core_type<tc>, window_params = [{transform_indices = @transform_0, window_bounds = array<i64: 1, 8, 128>}, {pipeline_mode = #tpu.pipeline_mode<synchronous>, transform_indices = @transform_1, window_bounds = array<i64: 2, 1, 128>}, {pipeline_mode = #tpu.pipeline_mode<synchronous>, transform_indices = @transform_2, window_bounds = array<i64: 2, 1, 128>}, {pipeline_mode = #tpu.pipeline_mode<synchronous>, transform_indices = @transform_3, window_bounds = array<i64: 2, 128, 384>}, {pipeline_mode = #tpu.pipeline_mode<synchronous>, transform_indices = @transform_4, window_bounds = array<i64: 2, 1, 384>}, {pipeline_mode = #tpu.pipeline_mode<synchronous>, transform_indices = @transform_5, window_bounds = array<i64: 2, 32, 128>}, {pipeline_mode = #tpu.pipeline_mode<synchronous>, transform_indices = @transform_6, window_bounds = array<i64: 2, 1, 128>}, {pipeline_mode = #tpu.pipeline_mode<synchronous>, transform_indices = @transform_7, window_bounds = array<i64: 2, 1, 128>}, {pipeline_mode = #tpu.pipeline_mode<synchronous>, transform_indices = @transform_8, window_bounds = array<i64: 2, 1, 128>}, {pipeline_mode = #tpu.pipeline_mode<synchronous>, transform_indices = @transform_9, window_bounds = array<i64: 2, 128, 128>}, {pipeline_mode = #tpu.pipeline_mode<synchronous>, transform_indices = @transform_10, window_bounds = array<i64: 2, 1, 128>}, {pipeline_mode = #tpu.pipeline_mode<synchronous>, transform_indices = @transform_11, window_bounds = array<i64: 2, 128, 128>}, {pipeline_mode = #tpu.pipeline_mode<synchronous>, transform_indices = @transform_12, window_bounds = array<i64: 2, 1, 128>}, {pipeline_mode = #tpu.pipeline_mode<synchronous>, transform_indices = @transform_13, window_bounds = array<i64: 1, 128>}, {pipeline_mode = #tpu.pipeline_mode<synchronous>, transform_indices = @transform_14, window_bounds = array<i64: 1, 128>}, {pipeline_mode = #tpu.pipeline_mode<synchronous>, transform_indices = @transform_15, window_bounds = array<i64: 1, 128>}, {pipeline_mode = #tpu.pipeline_mode<synchronous>, transform_indices = @transform_16, window_bounds = array<i64: 128, 256>}, {pipeline_mode = #tpu.pipeline_mode<synchronous>, transform_indices = @transform_17, window_bounds = array<i64: 1, 256>}, {pipeline_mode = #tpu.pipeline_mode<synchronous>, transform_indices = @transform_18, window_bounds = array<i64: 32, 128>}, {pipeline_mode = #tpu.pipeline_mode<synchronous>, transform_indices = @transform_19, window_bounds = array<i64: 1, 128>}, {pipeline_mode = #tpu.pipeline_mode<synchronous>, transform_indices = @transform_20, window_bounds = array<i64: 1, 128>}, {pipeline_mode = #tpu.pipeline_mode<synchronous>, transform_indices = @transform_21, window_bounds = array<i64: 1, 128>}, {pipeline_mode = #tpu.pipeline_mode<synchronous>, transform_indices = @transform_22, window_bounds = array<i64: 128, 128>}, {pipeline_mode = #tpu.pipeline_mode<synchronous>, transform_indices = @transform_23, window_bounds = array<i64: 1, 128>}, {pipeline_mode = #tpu.pipeline_mode<synchronous>, transform_indices = @transform_24, window_bounds = array<i64: 128, 128>}, {pipeline_mode = #tpu.pipeline_mode<synchronous>, transform_indices = @transform_25, window_bounds = array<i64: 1, 128>}, {transform_indices = @transform_26, window_bounds = array<i64: 1, 8, 128>}, {transform_indices = @transform_27, window_bounds = array<i64: 1, 1, 128>}]} {
    %0 = tpu.iota {dimensions = array<i32: 1>} : vector<1x128xi32>
    %c32_i32 = arith.constant 32 : i32
    %1 = vector.broadcast %c32_i32 : i32 to vector<1x128xi32>
    %2 = arith.cmpi slt, %0, %1 : vector<1x128xi32>
    %3 = arith.extui %2 : vector<1x128xi1> to vector<1x128xi32>
    %4 = arith.sitofp %3 : vector<1x128xi32> to vector<1x128xf32>
    %c0 = arith.constant 0 : index
    %c0_0 = arith.constant 0 : index
    %c0_1 = arith.constant 0 : index
    %5 = vector.load %arg1[%c0, %c0_0, %c0_1] : memref<1x8x128xf32, #tpu.memory_space<vmem>>, vector<1x8x128xf32>
    %6 = vector.shape_cast %5 : vector<1x8x128xf32> to vector<8x128xf32>
    %c0_2 = arith.constant 0 : index
    %c0_3 = arith.constant 0 : index
    %c0_4 = arith.constant 0 : index
    %7 = vector.load %arg2[%c0_2, %c0_3, %c0_4] : memref<2x1x128xf32, #tpu.memory_space<vmem>>, vector<1x1x128xf32>
    %8 = vector.shape_cast %7 : vector<1x1x128xf32> to vector<1x128xf32>
    %c0_5 = arith.constant 0 : index
    %c0_6 = arith.constant 0 : index
    %c0_7 = arith.constant 0 : index
    %9 = vector.load %arg3[%c0_5, %c0_6, %c0_7] : memref<2x1x128xf32, #tpu.memory_space<vmem>>, vector<1x1x128xf32>
    %10 = vector.shape_cast %9 : vector<1x1x128xf32> to vector<1x128xf32>
    %cst = arith.constant dense<0.000000e+00> : vector<8xf32>
    %11 = vector.multi_reduction <add>, %6, %cst [1] : vector<8x128xf32> to vector<8xf32>
    %12 = vector.shape_cast %11 : vector<8xf32> to vector<8x1xf32>
    %cst_8 = arith.constant 3.125000e-02 : f32
    %13 = vector.broadcast %cst_8 : f32 to vector<8x1xf32>
    %14 = arith.mulf %12, %13 : vector<8x1xf32>
    %15 = vector.broadcast %14 : vector<8x1xf32> to vector<8x128xf32>
    %16 = arith.subf %6, %15 : vector<8x128xf32>
    %17 = vector.broadcast %4 : vector<1x128xf32> to vector<8x128xf32>
    %18 = arith.mulf %16, %17 : vector<8x128xf32>
    %19 = arith.mulf %18, %18 : vector<8x128xf32>
    %cst_9 = arith.constant dense<0.000000e+00> : vector<8xf32>
    %20 = vector.multi_reduction <add>, %19, %cst_9 [1] : vector<8x128xf32> to vector<8xf32>
    %21 = vector.shape_cast %20 : vector<8xf32> to vector<8x1xf32>
    %cst_10 = arith.constant 3.125000e-02 : f32
    %22 = vector.broadcast %cst_10 : f32 to vector<8x1xf32>
    %23 = arith.mulf %21, %22 : vector<8x1xf32>
    %cst_11 = arith.constant 9.99999997E-7 : f32
    %24 = vector.broadcast %cst_11 : f32 to vector<8x1xf32>
    %25 = arith.addf %23, %24 : vector<8x1xf32>
    %26 = math.rsqrt %25 : vector<8x1xf32>
    %27 = vector.broadcast %26 : vector<8x1xf32> to vector<8x128xf32>
    %28 = arith.mulf %18, %27 : vector<8x128xf32>
    %29 = vector.broadcast %8 : vector<1x128xf32> to vector<8x128xf32>
    %30 = arith.mulf %28, %29 : vector<8x128xf32>
    %31 = vector.broadcast %10 : vector<1x128xf32> to vector<8x128xf32>
    %32 = arith.addf %30, %31 : vector<8x128xf32>
    %c0_12 = arith.constant 0 : index
    %c0_13 = arith.constant 0 : index
    %c0_14 = arith.constant 0 : index
    %33 = vector.load %arg4[%c0_12, %c0_13, %c0_14] : memref<2x128x384xbf16, #tpu.memory_space<vmem>>, vector<1x128x384xbf16>
    %34 = vector.shape_cast %33 : vector<1x128x384xbf16> to vector<128x384xbf16>
    %c0_15 = arith.constant 0 : index
    %c0_16 = arith.constant 0 : index
    %c0_17 = arith.constant 0 : index
    %35 = vector.load %arg5[%c0_15, %c0_16, %c0_17] : memref<2x1x384xf32, #tpu.memory_space<vmem>>, vector<1x1x384xf32>
    %36 = vector.shape_cast %35 : vector<1x1x384xf32> to vector<1x384xf32>
    %37 = arith.truncf %32 : vector<8x128xf32> to vector<8x128xbf16>
    %cst_18 = arith.constant dense<0.000000e+00> : vector<8x384xf32>
    %38 = tpu.matmul %37, %34, %cst_18 {dimension_numbers = #tpu.dot_dimension_numbers<[1], [0], [0], [1], [0, 0, 1, 1], [], []>} : vector<8x128xbf16>, vector<128x384xbf16>, vector<8x384xf32> -> vector<8x384xf32>
    %39 = vector.broadcast %36 : vector<1x384xf32> to vector<8x384xf32>
    %40 = arith.addf %38, %39 : vector<8x384xf32>
    %41 = vector.extract_strided_slice %40 {offsets = [0, 0], sizes = [8, 128], strides = [1, 1]} : vector<8x384xf32> to vector<8x128xf32>
    %42 = vector.extract_strided_slice %40 {offsets = [0, 128], sizes = [8, 128], strides = [1, 1]} : vector<8x384xf32> to vector<8x128xf32>
    %43 = vector.extract_strided_slice %40 {offsets = [0, 256], sizes = [8, 128], strides = [1, 1]} : vector<8x384xf32> to vector<8x128xf32>
    %c0_19 = arith.constant 0 : index
    %c0_20 = arith.constant 0 : index
    %c0_21 = arith.constant 0 : index
    %44 = vector.load %arg6[%c0_19, %c0_20, %c0_21] : memref<2x32x128xbf16, #tpu.memory_space<vmem>>, vector<1x32x128xbf16>
    %45 = vector.shape_cast %44 : vector<1x32x128xbf16> to vector<32x128xbf16>
    %c0_22 = arith.constant 0 : index
    %c0_23 = arith.constant 0 : index
    %c0_24 = arith.constant 0 : index
    %46 = vector.load %arg7[%c0_22, %c0_23, %c0_24] : memref<2x1x128xf32, #tpu.memory_space<vmem>>, vector<1x1x128xf32>
    %47 = vector.shape_cast %46 : vector<1x1x128xf32> to vector<1x128xf32>
    %48 = vector.extract_strided_slice %41 {offsets = [0, 0], sizes = [8, 8], strides = [1, 1]} : vector<8x128xf32> to vector<8x8xf32>
    %49 = vector.extract_strided_slice %42 {offsets = [0, 0], sizes = [8, 8], strides = [1, 1]} : vector<8x128xf32> to vector<8x8xf32>
    %cst_25 = arith.constant dense<0.000000e+00> : vector<8x8xf32>
    %50 = tpu.matmul %48, %49, %cst_25 {dimension_numbers = #tpu.dot_dimension_numbers<[1], [1], [0], [0], [0, 0, 1, 0], [], []>} : vector<8x8xf32>, vector<8x8xf32>, vector<8x8xf32> -> vector<8x8xf32>
    %cst_26 = arith.constant dense<0xFF800000> : vector<8xf32>
    %51 = vector.multi_reduction <maximumf>, %50, %cst_26 [1] : vector<8x8xf32> to vector<8xf32>
    %52 = vector.shape_cast %51 : vector<8xf32> to vector<8x1xf32>
    %53 = vector.broadcast %52 : vector<8x1xf32> to vector<8x8xf32>
    %54 = arith.subf %50, %53 : vector<8x8xf32>
    %55 = math.exp %54 : vector<8x8xf32>
    %cst_27 = arith.constant dense<0.000000e+00> : vector<8xf32>
    %56 = vector.multi_reduction <add>, %55, %cst_27 [1] : vector<8x8xf32> to vector<8xf32>
    %57 = vector.shape_cast %56 : vector<8xf32> to vector<8x1xf32>
    %58 = tpu.reciprocal %57 {approx = true} : vector<8x1xf32> -> vector<8x1xf32>
    %59 = vector.broadcast %58 : vector<8x1xf32> to vector<8x8xf32>
    %60 = arith.mulf %55, %59 : vector<8x8xf32>
    %61 = vector.extract_strided_slice %43 {offsets = [0, 0], sizes = [8, 8], strides = [1, 1]} : vector<8x128xf32> to vector<8x8xf32>
    %cst_28 = arith.constant dense<0.000000e+00> : vector<8x8xf32>
    %62 = tpu.matmul %60, %61, %cst_28 {dimension_numbers = #tpu.dot_dimension_numbers<[1], [0], [0], [1], [0, 0, 1, 1], [], []>} : vector<8x8xf32>, vector<8x8xf32>, vector<8x8xf32> -> vector<8x8xf32>
    %63 = vector.extract_strided_slice %41 {offsets = [0, 8], sizes = [8, 8], strides = [1, 1]} : vector<8x128xf32> to vector<8x8xf32>
    %64 = vector.extract_strided_slice %42 {offsets = [0, 8], sizes = [8, 8], strides = [1, 1]} : vector<8x128xf32> to vector<8x8xf32>
    %cst_29 = arith.constant dense<0.000000e+00> : vector<8x8xf32>
    %65 = tpu.matmul %63, %64, %cst_29 {dimension_numbers = #tpu.dot_dimension_numbers<[1], [1], [0], [0], [0, 0, 1, 0], [], []>} : vector<8x8xf32>, vector<8x8xf32>, vector<8x8xf32> -> vector<8x8xf32>
    %cst_30 = arith.constant dense<0xFF800000> : vector<8xf32>
    %66 = vector.multi_reduction <maximumf>, %65, %cst_30 [1] : vector<8x8xf32> to vector<8xf32>
    %67 = vector.shape_cast %66 : vector<8xf32> to vector<8x1xf32>
    %68 = vector.broadcast %67 : vector<8x1xf32> to vector<8x8xf32>
    %69 = arith.subf %65, %68 : vector<8x8xf32>
    %70 = math.exp %69 : vector<8x8xf32>
    %cst_31 = arith.constant dense<0.000000e+00> : vector<8xf32>
    %71 = vector.multi_reduction <add>, %70, %cst_31 [1] : vector<8x8xf32> to vector<8xf32>
    %72 = vector.shape_cast %71 : vector<8xf32> to vector<8x1xf32>
    %73 = tpu.reciprocal %72 {approx = true} : vector<8x1xf32> -> vector<8x1xf32>
    %74 = vector.broadcast %73 : vector<8x1xf32> to vector<8x8xf32>
    %75 = arith.mulf %70, %74 : vector<8x8xf32>
    %76 = vector.extract_strided_slice %43 {offsets = [0, 8], sizes = [8, 8], strides = [1, 1]} : vector<8x128xf32> to vector<8x8xf32>
    %cst_32 = arith.constant dense<0.000000e+00> : vector<8x8xf32>
    %77 = tpu.matmul %75, %76, %cst_32 {dimension_numbers = #tpu.dot_dimension_numbers<[1], [0], [0], [1], [0, 0, 1, 1], [], []>} : vector<8x8xf32>, vector<8x8xf32>, vector<8x8xf32> -> vector<8x8xf32>
    %78 = vector.extract_strided_slice %41 {offsets = [0, 16], sizes = [8, 8], strides = [1, 1]} : vector<8x128xf32> to vector<8x8xf32>
    %79 = vector.extract_strided_slice %42 {offsets = [0, 16], sizes = [8, 8], strides = [1, 1]} : vector<8x128xf32> to vector<8x8xf32>
    %cst_33 = arith.constant dense<0.000000e+00> : vector<8x8xf32>
    %80 = tpu.matmul %78, %79, %cst_33 {dimension_numbers = #tpu.dot_dimension_numbers<[1], [1], [0], [0], [0, 0, 1, 0], [], []>} : vector<8x8xf32>, vector<8x8xf32>, vector<8x8xf32> -> vector<8x8xf32>
    %cst_34 = arith.constant dense<0xFF800000> : vector<8xf32>
    %81 = vector.multi_reduction <maximumf>, %80, %cst_34 [1] : vector<8x8xf32> to vector<8xf32>
    %82 = vector.shape_cast %81 : vector<8xf32> to vector<8x1xf32>
    %83 = vector.broadcast %82 : vector<8x1xf32> to vector<8x8xf32>
    %84 = arith.subf %80, %83 : vector<8x8xf32>
    %85 = math.exp %84 : vector<8x8xf32>
    %cst_35 = arith.constant dense<0.000000e+00> : vector<8xf32>
    %86 = vector.multi_reduction <add>, %85, %cst_35 [1] : vector<8x8xf32> to vector<8xf32>
    %87 = vector.shape_cast %86 : vector<8xf32> to vector<8x1xf32>
    %88 = tpu.reciprocal %87 {approx = true} : vector<8x1xf32> -> vector<8x1xf32>
    %89 = vector.broadcast %88 : vector<8x1xf32> to vector<8x8xf32>
    %90 = arith.mulf %85, %89 : vector<8x8xf32>
    %91 = vector.extract_strided_slice %43 {offsets = [0, 16], sizes = [8, 8], strides = [1, 1]} : vector<8x128xf32> to vector<8x8xf32>
    %cst_36 = arith.constant dense<0.000000e+00> : vector<8x8xf32>
    %92 = tpu.matmul %90, %91, %cst_36 {dimension_numbers = #tpu.dot_dimension_numbers<[1], [0], [0], [1], [0, 0, 1, 1], [], []>} : vector<8x8xf32>, vector<8x8xf32>, vector<8x8xf32> -> vector<8x8xf32>
    %93 = vector.extract_strided_slice %41 {offsets = [0, 24], sizes = [8, 8], strides = [1, 1]} : vector<8x128xf32> to vector<8x8xf32>
    %94 = vector.extract_strided_slice %42 {offsets = [0, 24], sizes = [8, 8], strides = [1, 1]} : vector<8x128xf32> to vector<8x8xf32>
    %cst_37 = arith.constant dense<0.000000e+00> : vector<8x8xf32>
    %95 = tpu.matmul %93, %94, %cst_37 {dimension_numbers = #tpu.dot_dimension_numbers<[1], [1], [0], [0], [0, 0, 1, 0], [], []>} : vector<8x8xf32>, vector<8x8xf32>, vector<8x8xf32> -> vector<8x8xf32>
    %cst_38 = arith.constant dense<0xFF800000> : vector<8xf32>
    %96 = vector.multi_reduction <maximumf>, %95, %cst_38 [1] : vector<8x8xf32> to vector<8xf32>
    %97 = vector.shape_cast %96 : vector<8xf32> to vector<8x1xf32>
    %98 = vector.broadcast %97 : vector<8x1xf32> to vector<8x8xf32>
    %99 = arith.subf %95, %98 : vector<8x8xf32>
    %100 = math.exp %99 : vector<8x8xf32>
    %cst_39 = arith.constant dense<0.000000e+00> : vector<8xf32>
    %101 = vector.multi_reduction <add>, %100, %cst_39 [1] : vector<8x8xf32> to vector<8xf32>
    %102 = vector.shape_cast %101 : vector<8xf32> to vector<8x1xf32>
    %103 = tpu.reciprocal %102 {approx = true} : vector<8x1xf32> -> vector<8x1xf32>
    %104 = vector.broadcast %103 : vector<8x1xf32> to vector<8x8xf32>
    %105 = arith.mulf %100, %104 : vector<8x8xf32>
    %106 = vector.extract_strided_slice %43 {offsets = [0, 24], sizes = [8, 8], strides = [1, 1]} : vector<8x128xf32> to vector<8x8xf32>
    %cst_40 = arith.constant dense<0.000000e+00> : vector<8x8xf32>
    %107 = tpu.matmul %105, %106, %cst_40 {dimension_numbers = #tpu.dot_dimension_numbers<[1], [0], [0], [1], [0, 0, 1, 1], [], []>} : vector<8x8xf32>, vector<8x8xf32>, vector<8x8xf32> -> vector<8x8xf32>
    %108 = tpu.concatenate %62, %77, %92, %107 in 1 : vector<8x8xf32>, vector<8x8xf32>, vector<8x8xf32>, vector<8x8xf32> -> vector<8x32xf32>
    %109 = arith.truncf %108 : vector<8x32xf32> to vector<8x32xbf16>
    %cst_41 = arith.constant dense<0.000000e+00> : vector<8x128xf32>
    %110 = tpu.matmul %109, %45, %cst_41 {dimension_numbers = #tpu.dot_dimension_numbers<[1], [0], [0], [1], [0, 0, 1, 1], [], []>} : vector<8x32xbf16>, vector<32x128xbf16>, vector<8x128xf32> -> vector<8x128xf32>
    %111 = vector.broadcast %47 : vector<1x128xf32> to vector<8x128xf32>
    %112 = arith.addf %110, %111 : vector<8x128xf32>
    %113 = arith.addf %6, %112 : vector<8x128xf32>
    %c0_42 = arith.constant 0 : index
    %c0_43 = arith.constant 0 : index
    %c0_44 = arith.constant 0 : index
    %114 = vector.load %arg8[%c0_42, %c0_43, %c0_44] : memref<2x1x128xf32, #tpu.memory_space<vmem>>, vector<1x1x128xf32>
    %115 = vector.shape_cast %114 : vector<1x1x128xf32> to vector<1x128xf32>
    %c0_45 = arith.constant 0 : index
    %c0_46 = arith.constant 0 : index
    %c0_47 = arith.constant 0 : index
    %116 = vector.load %arg9[%c0_45, %c0_46, %c0_47] : memref<2x1x128xf32, #tpu.memory_space<vmem>>, vector<1x1x128xf32>
    %117 = vector.shape_cast %116 : vector<1x1x128xf32> to vector<1x128xf32>
    %cst_48 = arith.constant dense<0.000000e+00> : vector<8xf32>
    %118 = vector.multi_reduction <add>, %113, %cst_48 [1] : vector<8x128xf32> to vector<8xf32>
    %119 = vector.shape_cast %118 : vector<8xf32> to vector<8x1xf32>
    %cst_49 = arith.constant 3.125000e-02 : f32
    %120 = vector.broadcast %cst_49 : f32 to vector<8x1xf32>
    %121 = arith.mulf %119, %120 : vector<8x1xf32>
    %122 = vector.broadcast %121 : vector<8x1xf32> to vector<8x128xf32>
    %123 = arith.subf %113, %122 : vector<8x128xf32>
    %124 = vector.broadcast %4 : vector<1x128xf32> to vector<8x128xf32>
    %125 = arith.mulf %123, %124 : vector<8x128xf32>
    %126 = arith.mulf %125, %125 : vector<8x128xf32>
    %cst_50 = arith.constant dense<0.000000e+00> : vector<8xf32>
    %127 = vector.multi_reduction <add>, %126, %cst_50 [1] : vector<8x128xf32> to vector<8xf32>
    %128 = vector.shape_cast %127 : vector<8xf32> to vector<8x1xf32>
    %cst_51 = arith.constant 3.125000e-02 : f32
    %129 = vector.broadcast %cst_51 : f32 to vector<8x1xf32>
    %130 = arith.mulf %128, %129 : vector<8x1xf32>
    %cst_52 = arith.constant 9.99999997E-7 : f32
    %131 = vector.broadcast %cst_52 : f32 to vector<8x1xf32>
    %132 = arith.addf %130, %131 : vector<8x1xf32>
    %133 = math.rsqrt %132 : vector<8x1xf32>
    %134 = vector.broadcast %133 : vector<8x1xf32> to vector<8x128xf32>
    %135 = arith.mulf %125, %134 : vector<8x128xf32>
    %136 = vector.broadcast %115 : vector<1x128xf32> to vector<8x128xf32>
    %137 = arith.mulf %135, %136 : vector<8x128xf32>
    %138 = vector.broadcast %117 : vector<1x128xf32> to vector<8x128xf32>
    %139 = arith.addf %137, %138 : vector<8x128xf32>
    %c0_53 = arith.constant 0 : index
    %c0_54 = arith.constant 0 : index
    %c0_55 = arith.constant 0 : index
    %140 = vector.load %arg10[%c0_53, %c0_54, %c0_55] : memref<2x128x128xbf16, #tpu.memory_space<vmem>>, vector<1x128x128xbf16>
    %141 = vector.shape_cast %140 : vector<1x128x128xbf16> to vector<128x128xbf16>
    %c0_56 = arith.constant 0 : index
    %c0_57 = arith.constant 0 : index
    %c0_58 = arith.constant 0 : index
    %142 = vector.load %arg11[%c0_56, %c0_57, %c0_58] : memref<2x1x128xf32, #tpu.memory_space<vmem>>, vector<1x1x128xf32>
    %143 = vector.shape_cast %142 : vector<1x1x128xf32> to vector<1x128xf32>
    %144 = arith.truncf %139 : vector<8x128xf32> to vector<8x128xbf16>
    %cst_59 = arith.constant dense<0.000000e+00> : vector<8x128xf32>
    %145 = tpu.matmul %144, %141, %cst_59 {dimension_numbers = #tpu.dot_dimension_numbers<[1], [0], [0], [1], [0, 0, 1, 1], [], []>} : vector<8x128xbf16>, vector<128x128xbf16>, vector<8x128xf32> -> vector<8x128xf32>
    %146 = vector.broadcast %143 : vector<1x128xf32> to vector<8x128xf32>
    %147 = arith.addf %145, %146 : vector<8x128xf32>
    %cst_60 = arith.constant 5.000000e-01 : f32
    %148 = vector.broadcast %cst_60 : f32 to vector<8x128xf32>
    %149 = arith.mulf %148, %147 : vector<8x128xf32>
    %cst_61 = arith.constant 4.471500e-02 : f32
    %150 = vector.broadcast %cst_61 : f32 to vector<8x128xf32>
    %151 = arith.mulf %150, %147 : vector<8x128xf32>
    %152 = arith.mulf %151, %147 : vector<8x128xf32>
    %153 = arith.mulf %152, %147 : vector<8x128xf32>
    %154 = arith.addf %147, %153 : vector<8x128xf32>
    %cst_62 = arith.constant 0.797884583 : f32
    %155 = vector.broadcast %cst_62 : f32 to vector<8x128xf32>
    %156 = arith.mulf %155, %154 : vector<8x128xf32>
    %157 = math.tanh %156 : vector<8x128xf32>
    %cst_63 = arith.constant 1.000000e+00 : f32
    %158 = vector.broadcast %cst_63 : f32 to vector<8x128xf32>
    %159 = arith.addf %158, %157 : vector<8x128xf32>
    %160 = arith.mulf %149, %159 : vector<8x128xf32>
    %c0_64 = arith.constant 0 : index
    %c0_65 = arith.constant 0 : index
    %c0_66 = arith.constant 0 : index
    %161 = vector.load %arg12[%c0_64, %c0_65, %c0_66] : memref<2x128x128xbf16, #tpu.memory_space<vmem>>, vector<1x128x128xbf16>
    %162 = vector.shape_cast %161 : vector<1x128x128xbf16> to vector<128x128xbf16>
    %c0_67 = arith.constant 0 : index
    %c0_68 = arith.constant 0 : index
    %c0_69 = arith.constant 0 : index
    %163 = vector.load %arg13[%c0_67, %c0_68, %c0_69] : memref<2x1x128xf32, #tpu.memory_space<vmem>>, vector<1x1x128xf32>
    %164 = vector.shape_cast %163 : vector<1x1x128xf32> to vector<1x128xf32>
    %165 = arith.truncf %160 : vector<8x128xf32> to vector<8x128xbf16>
    %cst_70 = arith.constant dense<0.000000e+00> : vector<8x128xf32>
    %166 = tpu.matmul %165, %162, %cst_70 {dimension_numbers = #tpu.dot_dimension_numbers<[1], [0], [0], [1], [0, 0, 1, 1], [], []>} : vector<8x128xbf16>, vector<128x128xbf16>, vector<8x128xf32> -> vector<8x128xf32>
    %167 = vector.broadcast %164 : vector<1x128xf32> to vector<8x128xf32>
    %168 = arith.addf %166, %167 : vector<8x128xf32>
    %169 = arith.addf %113, %168 : vector<8x128xf32>
    %c1 = arith.constant 1 : index
    %c0_71 = arith.constant 0 : index
    %c0_72 = arith.constant 0 : index
    %170 = vector.load %arg2[%c1, %c0_71, %c0_72] : memref<2x1x128xf32, #tpu.memory_space<vmem>>, vector<1x1x128xf32>
    %171 = vector.shape_cast %170 : vector<1x1x128xf32> to vector<1x128xf32>
    %c1_73 = arith.constant 1 : index
    %c0_74 = arith.constant 0 : index
    %c0_75 = arith.constant 0 : index
    %172 = vector.load %arg3[%c1_73, %c0_74, %c0_75] : memref<2x1x128xf32, #tpu.memory_space<vmem>>, vector<1x1x128xf32>
    %173 = vector.shape_cast %172 : vector<1x1x128xf32> to vector<1x128xf32>
    %cst_76 = arith.constant dense<0.000000e+00> : vector<8xf32>
    %174 = vector.multi_reduction <add>, %169, %cst_76 [1] : vector<8x128xf32> to vector<8xf32>
    %175 = vector.shape_cast %174 : vector<8xf32> to vector<8x1xf32>
    %cst_77 = arith.constant 3.125000e-02 : f32
    %176 = vector.broadcast %cst_77 : f32 to vector<8x1xf32>
    %177 = arith.mulf %175, %176 : vector<8x1xf32>
    %178 = vector.broadcast %177 : vector<8x1xf32> to vector<8x128xf32>
    %179 = arith.subf %169, %178 : vector<8x128xf32>
    %180 = vector.broadcast %4 : vector<1x128xf32> to vector<8x128xf32>
    %181 = arith.mulf %179, %180 : vector<8x128xf32>
    %182 = arith.mulf %181, %181 : vector<8x128xf32>
    %cst_78 = arith.constant dense<0.000000e+00> : vector<8xf32>
    %183 = vector.multi_reduction <add>, %182, %cst_78 [1] : vector<8x128xf32> to vector<8xf32>
    %184 = vector.shape_cast %183 : vector<8xf32> to vector<8x1xf32>
    %cst_79 = arith.constant 3.125000e-02 : f32
    %185 = vector.broadcast %cst_79 : f32 to vector<8x1xf32>
    %186 = arith.mulf %184, %185 : vector<8x1xf32>
    %cst_80 = arith.constant 9.99999997E-7 : f32
    %187 = vector.broadcast %cst_80 : f32 to vector<8x1xf32>
    %188 = arith.addf %186, %187 : vector<8x1xf32>
    %189 = math.rsqrt %188 : vector<8x1xf32>
    %190 = vector.broadcast %189 : vector<8x1xf32> to vector<8x128xf32>
    %191 = arith.mulf %181, %190 : vector<8x128xf32>
    %192 = vector.broadcast %171 : vector<1x128xf32> to vector<8x128xf32>
    %193 = arith.mulf %191, %192 : vector<8x128xf32>
    %194 = vector.broadcast %173 : vector<1x128xf32> to vector<8x128xf32>
    %195 = arith.addf %193, %194 : vector<8x128xf32>
    %c1_81 = arith.constant 1 : index
    %c0_82 = arith.constant 0 : index
    %c0_83 = arith.constant 0 : index
    %196 = vector.load %arg4[%c1_81, %c0_82, %c0_83] : memref<2x128x384xbf16, #tpu.memory_space<vmem>>, vector<1x128x384xbf16>
    %197 = vector.shape_cast %196 : vector<1x128x384xbf16> to vector<128x384xbf16>
    %c1_84 = arith.constant 1 : index
    %c0_85 = arith.constant 0 : index
    %c0_86 = arith.constant 0 : index
    %198 = vector.load %arg5[%c1_84, %c0_85, %c0_86] : memref<2x1x384xf32, #tpu.memory_space<vmem>>, vector<1x1x384xf32>
    %199 = vector.shape_cast %198 : vector<1x1x384xf32> to vector<1x384xf32>
    %200 = arith.truncf %195 : vector<8x128xf32> to vector<8x128xbf16>
    %cst_87 = arith.constant dense<0.000000e+00> : vector<8x384xf32>
    %201 = tpu.matmul %200, %197, %cst_87 {dimension_numbers = #tpu.dot_dimension_numbers<[1], [0], [0], [1], [0, 0, 1, 1], [], []>} : vector<8x128xbf16>, vector<128x384xbf16>, vector<8x384xf32> -> vector<8x384xf32>
    %202 = vector.broadcast %199 : vector<1x384xf32> to vector<8x384xf32>
    %203 = arith.addf %201, %202 : vector<8x384xf32>
    %204 = vector.extract_strided_slice %203 {offsets = [0, 0], sizes = [8, 128], strides = [1, 1]} : vector<8x384xf32> to vector<8x128xf32>
    %205 = vector.extract_strided_slice %203 {offsets = [0, 128], sizes = [8, 128], strides = [1, 1]} : vector<8x384xf32> to vector<8x128xf32>
    %206 = vector.extract_strided_slice %203 {offsets = [0, 256], sizes = [8, 128], strides = [1, 1]} : vector<8x384xf32> to vector<8x128xf32>
    %c1_88 = arith.constant 1 : index
    %c0_89 = arith.constant 0 : index
    %c0_90 = arith.constant 0 : index
    %207 = vector.load %arg6[%c1_88, %c0_89, %c0_90] : memref<2x32x128xbf16, #tpu.memory_space<vmem>>, vector<1x32x128xbf16>
    %208 = vector.shape_cast %207 : vector<1x32x128xbf16> to vector<32x128xbf16>
    %c1_91 = arith.constant 1 : index
    %c0_92 = arith.constant 0 : index
    %c0_93 = arith.constant 0 : index
    %209 = vector.load %arg7[%c1_91, %c0_92, %c0_93] : memref<2x1x128xf32, #tpu.memory_space<vmem>>, vector<1x1x128xf32>
    %210 = vector.shape_cast %209 : vector<1x1x128xf32> to vector<1x128xf32>
    %211 = vector.extract_strided_slice %204 {offsets = [0, 0], sizes = [8, 8], strides = [1, 1]} : vector<8x128xf32> to vector<8x8xf32>
    %212 = vector.extract_strided_slice %205 {offsets = [0, 0], sizes = [8, 8], strides = [1, 1]} : vector<8x128xf32> to vector<8x8xf32>
    %cst_94 = arith.constant dense<0.000000e+00> : vector<8x8xf32>
    %213 = tpu.matmul %211, %212, %cst_94 {dimension_numbers = #tpu.dot_dimension_numbers<[1], [1], [0], [0], [0, 0, 1, 0], [], []>} : vector<8x8xf32>, vector<8x8xf32>, vector<8x8xf32> -> vector<8x8xf32>
    %cst_95 = arith.constant dense<0xFF800000> : vector<8xf32>
    %214 = vector.multi_reduction <maximumf>, %213, %cst_95 [1] : vector<8x8xf32> to vector<8xf32>
    %215 = vector.shape_cast %214 : vector<8xf32> to vector<8x1xf32>
    %216 = vector.broadcast %215 : vector<8x1xf32> to vector<8x8xf32>
    %217 = arith.subf %213, %216 : vector<8x8xf32>
    %218 = math.exp %217 : vector<8x8xf32>
    %cst_96 = arith.constant dense<0.000000e+00> : vector<8xf32>
    %219 = vector.multi_reduction <add>, %218, %cst_96 [1] : vector<8x8xf32> to vector<8xf32>
    %220 = vector.shape_cast %219 : vector<8xf32> to vector<8x1xf32>
    %221 = tpu.reciprocal %220 {approx = true} : vector<8x1xf32> -> vector<8x1xf32>
    %222 = vector.broadcast %221 : vector<8x1xf32> to vector<8x8xf32>
    %223 = arith.mulf %218, %222 : vector<8x8xf32>
    %224 = vector.extract_strided_slice %206 {offsets = [0, 0], sizes = [8, 8], strides = [1, 1]} : vector<8x128xf32> to vector<8x8xf32>
    %cst_97 = arith.constant dense<0.000000e+00> : vector<8x8xf32>
    %225 = tpu.matmul %223, %224, %cst_97 {dimension_numbers = #tpu.dot_dimension_numbers<[1], [0], [0], [1], [0, 0, 1, 1], [], []>} : vector<8x8xf32>, vector<8x8xf32>, vector<8x8xf32> -> vector<8x8xf32>
    %226 = vector.extract_strided_slice %204 {offsets = [0, 8], sizes = [8, 8], strides = [1, 1]} : vector<8x128xf32> to vector<8x8xf32>
    %227 = vector.extract_strided_slice %205 {offsets = [0, 8], sizes = [8, 8], strides = [1, 1]} : vector<8x128xf32> to vector<8x8xf32>
    %cst_98 = arith.constant dense<0.000000e+00> : vector<8x8xf32>
    %228 = tpu.matmul %226, %227, %cst_98 {dimension_numbers = #tpu.dot_dimension_numbers<[1], [1], [0], [0], [0, 0, 1, 0], [], []>} : vector<8x8xf32>, vector<8x8xf32>, vector<8x8xf32> -> vector<8x8xf32>
    %cst_99 = arith.constant dense<0xFF800000> : vector<8xf32>
    %229 = vector.multi_reduction <maximumf>, %228, %cst_99 [1] : vector<8x8xf32> to vector<8xf32>
    %230 = vector.shape_cast %229 : vector<8xf32> to vector<8x1xf32>
    %231 = vector.broadcast %230 : vector<8x1xf32> to vector<8x8xf32>
    %232 = arith.subf %228, %231 : vector<8x8xf32>
    %233 = math.exp %232 : vector<8x8xf32>
    %cst_100 = arith.constant dense<0.000000e+00> : vector<8xf32>
    %234 = vector.multi_reduction <add>, %233, %cst_100 [1] : vector<8x8xf32> to vector<8xf32>
    %235 = vector.shape_cast %234 : vector<8xf32> to vector<8x1xf32>
    %236 = tpu.reciprocal %235 {approx = true} : vector<8x1xf32> -> vector<8x1xf32>
    %237 = vector.broadcast %236 : vector<8x1xf32> to vector<8x8xf32>
    %238 = arith.mulf %233, %237 : vector<8x8xf32>
    %239 = vector.extract_strided_slice %206 {offsets = [0, 8], sizes = [8, 8], strides = [1, 1]} : vector<8x128xf32> to vector<8x8xf32>
    %cst_101 = arith.constant dense<0.000000e+00> : vector<8x8xf32>
    %240 = tpu.matmul %238, %239, %cst_101 {dimension_numbers = #tpu.dot_dimension_numbers<[1], [0], [0], [1], [0, 0, 1, 1], [], []>} : vector<8x8xf32>, vector<8x8xf32>, vector<8x8xf32> -> vector<8x8xf32>
    %241 = vector.extract_strided_slice %204 {offsets = [0, 16], sizes = [8, 8], strides = [1, 1]} : vector<8x128xf32> to vector<8x8xf32>
    %242 = vector.extract_strided_slice %205 {offsets = [0, 16], sizes = [8, 8], strides = [1, 1]} : vector<8x128xf32> to vector<8x8xf32>
    %cst_102 = arith.constant dense<0.000000e+00> : vector<8x8xf32>
    %243 = tpu.matmul %241, %242, %cst_102 {dimension_numbers = #tpu.dot_dimension_numbers<[1], [1], [0], [0], [0, 0, 1, 0], [], []>} : vector<8x8xf32>, vector<8x8xf32>, vector<8x8xf32> -> vector<8x8xf32>
    %cst_103 = arith.constant dense<0xFF800000> : vector<8xf32>
    %244 = vector.multi_reduction <maximumf>, %243, %cst_103 [1] : vector<8x8xf32> to vector<8xf32>
    %245 = vector.shape_cast %244 : vector<8xf32> to vector<8x1xf32>
    %246 = vector.broadcast %245 : vector<8x1xf32> to vector<8x8xf32>
    %247 = arith.subf %243, %246 : vector<8x8xf32>
    %248 = math.exp %247 : vector<8x8xf32>
    %cst_104 = arith.constant dense<0.000000e+00> : vector<8xf32>
    %249 = vector.multi_reduction <add>, %248, %cst_104 [1] : vector<8x8xf32> to vector<8xf32>
    %250 = vector.shape_cast %249 : vector<8xf32> to vector<8x1xf32>
    %251 = tpu.reciprocal %250 {approx = true} : vector<8x1xf32> -> vector<8x1xf32>
    %252 = vector.broadcast %251 : vector<8x1xf32> to vector<8x8xf32>
    %253 = arith.mulf %248, %252 : vector<8x8xf32>
    %254 = vector.extract_strided_slice %206 {offsets = [0, 16], sizes = [8, 8], strides = [1, 1]} : vector<8x128xf32> to vector<8x8xf32>
    %cst_105 = arith.constant dense<0.000000e+00> : vector<8x8xf32>
    %255 = tpu.matmul %253, %254, %cst_105 {dimension_numbers = #tpu.dot_dimension_numbers<[1], [0], [0], [1], [0, 0, 1, 1], [], []>} : vector<8x8xf32>, vector<8x8xf32>, vector<8x8xf32> -> vector<8x8xf32>
    %256 = vector.extract_strided_slice %204 {offsets = [0, 24], sizes = [8, 8], strides = [1, 1]} : vector<8x128xf32> to vector<8x8xf32>
    %257 = vector.extract_strided_slice %205 {offsets = [0, 24], sizes = [8, 8], strides = [1, 1]} : vector<8x128xf32> to vector<8x8xf32>
    %cst_106 = arith.constant dense<0.000000e+00> : vector<8x8xf32>
    %258 = tpu.matmul %256, %257, %cst_106 {dimension_numbers = #tpu.dot_dimension_numbers<[1], [1], [0], [0], [0, 0, 1, 0], [], []>} : vector<8x8xf32>, vector<8x8xf32>, vector<8x8xf32> -> vector<8x8xf32>
    %cst_107 = arith.constant dense<0xFF800000> : vector<8xf32>
    %259 = vector.multi_reduction <maximumf>, %258, %cst_107 [1] : vector<8x8xf32> to vector<8xf32>
    %260 = vector.shape_cast %259 : vector<8xf32> to vector<8x1xf32>
    %261 = vector.broadcast %260 : vector<8x1xf32> to vector<8x8xf32>
    %262 = arith.subf %258, %261 : vector<8x8xf32>
    %263 = math.exp %262 : vector<8x8xf32>
    %cst_108 = arith.constant dense<0.000000e+00> : vector<8xf32>
    %264 = vector.multi_reduction <add>, %263, %cst_108 [1] : vector<8x8xf32> to vector<8xf32>
    %265 = vector.shape_cast %264 : vector<8xf32> to vector<8x1xf32>
    %266 = tpu.reciprocal %265 {approx = true} : vector<8x1xf32> -> vector<8x1xf32>
    %267 = vector.broadcast %266 : vector<8x1xf32> to vector<8x8xf32>
    %268 = arith.mulf %263, %267 : vector<8x8xf32>
    %269 = vector.extract_strided_slice %206 {offsets = [0, 24], sizes = [8, 8], strides = [1, 1]} : vector<8x128xf32> to vector<8x8xf32>
    %cst_109 = arith.constant dense<0.000000e+00> : vector<8x8xf32>
    %270 = tpu.matmul %268, %269, %cst_109 {dimension_numbers = #tpu.dot_dimension_numbers<[1], [0], [0], [1], [0, 0, 1, 1], [], []>} : vector<8x8xf32>, vector<8x8xf32>, vector<8x8xf32> -> vector<8x8xf32>
    %271 = tpu.concatenate %225, %240, %255, %270 in 1 : vector<8x8xf32>, vector<8x8xf32>, vector<8x8xf32>, vector<8x8xf32> -> vector<8x32xf32>
    %272 = arith.truncf %271 : vector<8x32xf32> to vector<8x32xbf16>
    %cst_110 = arith.constant dense<0.000000e+00> : vector<8x128xf32>
    %273 = tpu.matmul %272, %208, %cst_110 {dimension_numbers = #tpu.dot_dimension_numbers<[1], [0], [0], [1], [0, 0, 1, 1], [], []>} : vector<8x32xbf16>, vector<32x128xbf16>, vector<8x128xf32> -> vector<8x128xf32>
    %274 = vector.broadcast %210 : vector<1x128xf32> to vector<8x128xf32>
    %275 = arith.addf %273, %274 : vector<8x128xf32>
    %276 = arith.addf %169, %275 : vector<8x128xf32>
    %c1_111 = arith.constant 1 : index
    %c0_112 = arith.constant 0 : index
    %c0_113 = arith.constant 0 : index
    %277 = vector.load %arg8[%c1_111, %c0_112, %c0_113] : memref<2x1x128xf32, #tpu.memory_space<vmem>>, vector<1x1x128xf32>
    %278 = vector.shape_cast %277 : vector<1x1x128xf32> to vector<1x128xf32>
    %c1_114 = arith.constant 1 : index
    %c0_115 = arith.constant 0 : index
    %c0_116 = arith.constant 0 : index
    %279 = vector.load %arg9[%c1_114, %c0_115, %c0_116] : memref<2x1x128xf32, #tpu.memory_space<vmem>>, vector<1x1x128xf32>
    %280 = vector.shape_cast %279 : vector<1x1x128xf32> to vector<1x128xf32>
    %cst_117 = arith.constant dense<0.000000e+00> : vector<8xf32>
    %281 = vector.multi_reduction <add>, %276, %cst_117 [1] : vector<8x128xf32> to vector<8xf32>
    %282 = vector.shape_cast %281 : vector<8xf32> to vector<8x1xf32>
    %cst_118 = arith.constant 3.125000e-02 : f32
    %283 = vector.broadcast %cst_118 : f32 to vector<8x1xf32>
    %284 = arith.mulf %282, %283 : vector<8x1xf32>
    %285 = vector.broadcast %284 : vector<8x1xf32> to vector<8x128xf32>
    %286 = arith.subf %276, %285 : vector<8x128xf32>
    %287 = vector.broadcast %4 : vector<1x128xf32> to vector<8x128xf32>
    %288 = arith.mulf %286, %287 : vector<8x128xf32>
    %289 = arith.mulf %288, %288 : vector<8x128xf32>
    %cst_119 = arith.constant dense<0.000000e+00> : vector<8xf32>
    %290 = vector.multi_reduction <add>, %289, %cst_119 [1] : vector<8x128xf32> to vector<8xf32>
    %291 = vector.shape_cast %290 : vector<8xf32> to vector<8x1xf32>
    %cst_120 = arith.constant 3.125000e-02 : f32
    %292 = vector.broadcast %cst_120 : f32 to vector<8x1xf32>
    %293 = arith.mulf %291, %292 : vector<8x1xf32>
    %cst_121 = arith.constant 9.99999997E-7 : f32
    %294 = vector.broadcast %cst_121 : f32 to vector<8x1xf32>
    %295 = arith.addf %293, %294 : vector<8x1xf32>
    %296 = math.rsqrt %295 : vector<8x1xf32>
    %297 = vector.broadcast %296 : vector<8x1xf32> to vector<8x128xf32>
    %298 = arith.mulf %288, %297 : vector<8x128xf32>
    %299 = vector.broadcast %278 : vector<1x128xf32> to vector<8x128xf32>
    %300 = arith.mulf %298, %299 : vector<8x128xf32>
    %301 = vector.broadcast %280 : vector<1x128xf32> to vector<8x128xf32>
    %302 = arith.addf %300, %301 : vector<8x128xf32>
    %c1_122 = arith.constant 1 : index
    %c0_123 = arith.constant 0 : index
    %c0_124 = arith.constant 0 : index
    %303 = vector.load %arg10[%c1_122, %c0_123, %c0_124] : memref<2x128x128xbf16, #tpu.memory_space<vmem>>, vector<1x128x128xbf16>
    %304 = vector.shape_cast %303 : vector<1x128x128xbf16> to vector<128x128xbf16>
    %c1_125 = arith.constant 1 : index
    %c0_126 = arith.constant 0 : index
    %c0_127 = arith.constant 0 : index
    %305 = vector.load %arg11[%c1_125, %c0_126, %c0_127] : memref<2x1x128xf32, #tpu.memory_space<vmem>>, vector<1x1x128xf32>
    %306 = vector.shape_cast %305 : vector<1x1x128xf32> to vector<1x128xf32>
    %307 = arith.truncf %302 : vector<8x128xf32> to vector<8x128xbf16>
    %cst_128 = arith.constant dense<0.000000e+00> : vector<8x128xf32>
    %308 = tpu.matmul %307, %304, %cst_128 {dimension_numbers = #tpu.dot_dimension_numbers<[1], [0], [0], [1], [0, 0, 1, 1], [], []>} : vector<8x128xbf16>, vector<128x128xbf16>, vector<8x128xf32> -> vector<8x128xf32>
    %309 = vector.broadcast %306 : vector<1x128xf32> to vector<8x128xf32>
    %310 = arith.addf %308, %309 : vector<8x128xf32>
    %cst_129 = arith.constant 5.000000e-01 : f32
    %311 = vector.broadcast %cst_129 : f32 to vector<8x128xf32>
    %312 = arith.mulf %311, %310 : vector<8x128xf32>
    %cst_130 = arith.constant 4.471500e-02 : f32
    %313 = vector.broadcast %cst_130 : f32 to vector<8x128xf32>
    %314 = arith.mulf %313, %310 : vector<8x128xf32>
    %315 = arith.mulf %314, %310 : vector<8x128xf32>
    %316 = arith.mulf %315, %310 : vector<8x128xf32>
    %317 = arith.addf %310, %316 : vector<8x128xf32>
    %cst_131 = arith.constant 0.797884583 : f32
    %318 = vector.broadcast %cst_131 : f32 to vector<8x128xf32>
    %319 = arith.mulf %318, %317 : vector<8x128xf32>
    %320 = math.tanh %319 : vector<8x128xf32>
    %cst_132 = arith.constant 1.000000e+00 : f32
    %321 = vector.broadcast %cst_132 : f32 to vector<8x128xf32>
    %322 = arith.addf %321, %320 : vector<8x128xf32>
    %323 = arith.mulf %312, %322 : vector<8x128xf32>
    %c1_133 = arith.constant 1 : index
    %c0_134 = arith.constant 0 : index
    %c0_135 = arith.constant 0 : index
    %324 = vector.load %arg12[%c1_133, %c0_134, %c0_135] : memref<2x128x128xbf16, #tpu.memory_space<vmem>>, vector<1x128x128xbf16>
    %325 = vector.shape_cast %324 : vector<1x128x128xbf16> to vector<128x128xbf16>
    %c1_136 = arith.constant 1 : index
    %c0_137 = arith.constant 0 : index
    %c0_138 = arith.constant 0 : index
    %326 = vector.load %arg13[%c1_136, %c0_137, %c0_138] : memref<2x1x128xf32, #tpu.memory_space<vmem>>, vector<1x1x128xf32>
    %327 = vector.shape_cast %326 : vector<1x1x128xf32> to vector<1x128xf32>
    %328 = arith.truncf %323 : vector<8x128xf32> to vector<8x128xbf16>
    %cst_139 = arith.constant dense<0.000000e+00> : vector<8x128xf32>
    %329 = tpu.matmul %328, %325, %cst_139 {dimension_numbers = #tpu.dot_dimension_numbers<[1], [0], [0], [1], [0, 0, 1, 1], [], []>} : vector<8x128xbf16>, vector<128x128xbf16>, vector<8x128xf32> -> vector<8x128xf32>
    %330 = vector.broadcast %327 : vector<1x128xf32> to vector<8x128xf32>
    %331 = arith.addf %329, %330 : vector<8x128xf32>
    %332 = arith.addf %276, %331 : vector<8x128xf32>
    %c0_140 = arith.constant 0 : index
    %c0_141 = arith.constant 0 : index
    %333 = vector.load %arg14[%c0_140, %c0_141] : memref<1x128xf32, #tpu.memory_space<vmem>>, vector<1x128xf32>
    %c0_142 = arith.constant 0 : index
    %c0_143 = arith.constant 0 : index
    %334 = vector.load %arg15[%c0_142, %c0_143] : memref<1x128xf32, #tpu.memory_space<vmem>>, vector<1x128xf32>
    %cst_144 = arith.constant dense<0.000000e+00> : vector<8xf32>
    %335 = vector.multi_reduction <add>, %332, %cst_144 [1] : vector<8x128xf32> to vector<8xf32>
    %336 = vector.shape_cast %335 : vector<8xf32> to vector<8x1xf32>
    %cst_145 = arith.constant 3.125000e-02 : f32
    %337 = vector.broadcast %cst_145 : f32 to vector<8x1xf32>
    %338 = arith.mulf %336, %337 : vector<8x1xf32>
    %339 = vector.broadcast %338 : vector<8x1xf32> to vector<8x128xf32>
    %340 = arith.subf %332, %339 : vector<8x128xf32>
    %341 = vector.broadcast %4 : vector<1x128xf32> to vector<8x128xf32>
    %342 = arith.mulf %340, %341 : vector<8x128xf32>
    %343 = arith.mulf %342, %342 : vector<8x128xf32>
    %cst_146 = arith.constant dense<0.000000e+00> : vector<8xf32>
    %344 = vector.multi_reduction <add>, %343, %cst_146 [1] : vector<8x128xf32> to vector<8xf32>
    %345 = vector.shape_cast %344 : vector<8xf32> to vector<8x1xf32>
    %cst_147 = arith.constant 3.125000e-02 : f32
    %346 = vector.broadcast %cst_147 : f32 to vector<8x1xf32>
    %347 = arith.mulf %345, %346 : vector<8x1xf32>
    %cst_148 = arith.constant 9.99999997E-7 : f32
    %348 = vector.broadcast %cst_148 : f32 to vector<8x1xf32>
    %349 = arith.addf %347, %348 : vector<8x1xf32>
    %350 = math.rsqrt %349 : vector<8x1xf32>
    %351 = vector.broadcast %350 : vector<8x1xf32> to vector<8x128xf32>
    %352 = arith.mulf %342, %351 : vector<8x128xf32>
    %353 = vector.broadcast %333 : vector<1x128xf32> to vector<8x128xf32>
    %354 = arith.mulf %352, %353 : vector<8x128xf32>
    %355 = vector.broadcast %334 : vector<1x128xf32> to vector<8x128xf32>
    %356 = arith.addf %354, %355 : vector<8x128xf32>
    %c0_149 = arith.constant 0 : index
    %c0_150 = arith.constant 0 : index
    %c0_151 = arith.constant 0 : index
    %357 = vector.load %arg27[%c0_149, %c0_150, %c0_151] : memref<1x8x128xf32, #tpu.memory_space<vmem>>, vector<1x8x128xf32>
    %358 = vector.shape_cast %357 : vector<1x8x128xf32> to vector<8x128xf32>
    %359 = vector.shape_cast %356 : vector<8x128xf32> to vector<1x8x128xf32>
    tpu.vector_store %arg27[%c0_149, %c0_150, %c0_151], %359 {strides = array<i32>} : memref<1x8x128xf32, #tpu.memory_space<vmem>>, vector<1x8x128xf32>,
    %c0_152 = arith.constant 0 : index
    %c0_153 = arith.constant 0 : index
    %360 = vector.load %arg17[%c0_152, %c0_153] : memref<128x256xbf16, #tpu.memory_space<vmem>>, vector<128x256xbf16>
    %c0_154 = arith.constant 0 : index
    %c0_155 = arith.constant 0 : index
    %361 = vector.load %arg18[%c0_154, %c0_155] : memref<1x256xf32, #tpu.memory_space<vmem>>, vector<1x256xf32>
    %362 = arith.truncf %356 : vector<8x128xf32> to vector<8x128xbf16>
    %cst_156 = arith.constant dense<0.000000e+00> : vector<8x256xf32>
    %363 = tpu.matmul %362, %360, %cst_156 {dimension_numbers = #tpu.dot_dimension_numbers<[1], [0], [0], [1], [0, 0, 1, 1], [], []>} : vector<8x128xbf16>, vector<128x256xbf16>, vector<8x256xf32> -> vector<8x256xf32>
    %364 = vector.broadcast %361 : vector<1x256xf32> to vector<8x256xf32>
    %365 = arith.addf %363, %364 : vector<8x256xf32>
    %c0_157 = arith.constant 0 : index
    %c0_158 = arith.constant 0 : index
    %366 = vector.load %arg16[%c0_157, %c0_158] : memref<1x128xf32, #tpu.memory_space<vmem>>, vector<1x128xf32>
    %367 = vector.extract_strided_slice %365 {offsets = [0, 0], sizes = [8, 128], strides = [1, 1]} : vector<8x256xf32> to vector<8x128xf32>
    %368 = vector.extract_strided_slice %365 {offsets = [0, 128], sizes = [8, 128], strides = [1, 1]} : vector<8x256xf32> to vector<8x128xf32>
    %c0_159 = arith.constant 0 : index
    %c0_160 = arith.constant 0 : index
    %369 = vector.load %arg19[%c0_159, %c0_160] : memref<32x128xbf16, #tpu.memory_space<vmem>>, vector<32x128xbf16>
    %c0_161 = arith.constant 0 : index
    %c0_162 = arith.constant 0 : index
    %370 = vector.load %arg20[%c0_161, %c0_162] : memref<1x128xf32, #tpu.memory_space<vmem>>, vector<1x128xf32>
    %371 = vector.extract_strided_slice %366 {offsets = [0, 0], sizes = [1, 8], strides = [1, 1]} : vector<1x128xf32> to vector<1x8xf32>
    %372 = vector.extract_strided_slice %367 {offsets = [0, 0], sizes = [8, 8], strides = [1, 1]} : vector<8x128xf32> to vector<8x8xf32>
    %cst_163 = arith.constant dense<0.000000e+00> : vector<1x8xf32>
    %373 = tpu.matmul %371, %372, %cst_163 {dimension_numbers = #tpu.dot_dimension_numbers<[1], [1], [0], [0], [0, 0, 1, 0], [], []>} : vector<1x8xf32>, vector<8x8xf32>, vector<1x8xf32> -> vector<1x8xf32>
    %cst_164 = arith.constant dense<0xFF800000> : vector<1xf32>
    %374 = vector.multi_reduction <maximumf>, %373, %cst_164 [1] : vector<1x8xf32> to vector<1xf32>
    %375 = vector.shape_cast %374 : vector<1xf32> to vector<1x1xf32>
    %376 = vector.broadcast %375 : vector<1x1xf32> to vector<1x8xf32>
    %377 = arith.subf %373, %376 : vector<1x8xf32>
    %378 = math.exp %377 : vector<1x8xf32>
    %cst_165 = arith.constant dense<0.000000e+00> : vector<1xf32>
    %379 = vector.multi_reduction <add>, %378, %cst_165 [1] : vector<1x8xf32> to vector<1xf32>
    %380 = vector.shape_cast %379 : vector<1xf32> to vector<1x1xf32>
    %381 = tpu.reciprocal %380 {approx = true} : vector<1x1xf32> -> vector<1x1xf32>
    %382 = vector.broadcast %381 : vector<1x1xf32> to vector<1x8xf32>
    %383 = arith.mulf %378, %382 : vector<1x8xf32>
    %384 = vector.extract_strided_slice %368 {offsets = [0, 0], sizes = [8, 8], strides = [1, 1]} : vector<8x128xf32> to vector<8x8xf32>
    %cst_166 = arith.constant dense<0.000000e+00> : vector<1x8xf32>
    %385 = tpu.matmul %383, %384, %cst_166 {dimension_numbers = #tpu.dot_dimension_numbers<[1], [0], [0], [1], [0, 0, 1, 1], [], []>} : vector<1x8xf32>, vector<8x8xf32>, vector<1x8xf32> -> vector<1x8xf32>
    %386 = vector.extract_strided_slice %366 {offsets = [0, 8], sizes = [1, 8], strides = [1, 1]} : vector<1x128xf32> to vector<1x8xf32>
    %387 = vector.extract_strided_slice %367 {offsets = [0, 8], sizes = [8, 8], strides = [1, 1]} : vector<8x128xf32> to vector<8x8xf32>
    %cst_167 = arith.constant dense<0.000000e+00> : vector<1x8xf32>
    %388 = tpu.matmul %386, %387, %cst_167 {dimension_numbers = #tpu.dot_dimension_numbers<[1], [1], [0], [0], [0, 0, 1, 0], [], []>} : vector<1x8xf32>, vector<8x8xf32>, vector<1x8xf32> -> vector<1x8xf32>
    %cst_168 = arith.constant dense<0xFF800000> : vector<1xf32>
    %389 = vector.multi_reduction <maximumf>, %388, %cst_168 [1] : vector<1x8xf32> to vector<1xf32>
    %390 = vector.shape_cast %389 : vector<1xf32> to vector<1x1xf32>
    %391 = vector.broadcast %390 : vector<1x1xf32> to vector<1x8xf32>
    %392 = arith.subf %388, %391 : vector<1x8xf32>
    %393 = math.exp %392 : vector<1x8xf32>
    %cst_169 = arith.constant dense<0.000000e+00> : vector<1xf32>
    %394 = vector.multi_reduction <add>, %393, %cst_169 [1] : vector<1x8xf32> to vector<1xf32>
    %395 = vector.shape_cast %394 : vector<1xf32> to vector<1x1xf32>
    %396 = tpu.reciprocal %395 {approx = true} : vector<1x1xf32> -> vector<1x1xf32>
    %397 = vector.broadcast %396 : vector<1x1xf32> to vector<1x8xf32>
    %398 = arith.mulf %393, %397 : vector<1x8xf32>
    %399 = vector.extract_strided_slice %368 {offsets = [0, 8], sizes = [8, 8], strides = [1, 1]} : vector<8x128xf32> to vector<8x8xf32>
    %cst_170 = arith.constant dense<0.000000e+00> : vector<1x8xf32>
    %400 = tpu.matmul %398, %399, %cst_170 {dimension_numbers = #tpu.dot_dimension_numbers<[1], [0], [0], [1], [0, 0, 1, 1], [], []>} : vector<1x8xf32>, vector<8x8xf32>, vector<1x8xf32> -> vector<1x8xf32>
    %401 = vector.extract_strided_slice %366 {offsets = [0, 16], sizes = [1, 8], strides = [1, 1]} : vector<1x128xf32> to vector<1x8xf32>
    %402 = vector.extract_strided_slice %367 {offsets = [0, 16], sizes = [8, 8], strides = [1, 1]} : vector<8x128xf32> to vector<8x8xf32>
    %cst_171 = arith.constant dense<0.000000e+00> : vector<1x8xf32>
    %403 = tpu.matmul %401, %402, %cst_171 {dimension_numbers = #tpu.dot_dimension_numbers<[1], [1], [0], [0], [0, 0, 1, 0], [], []>} : vector<1x8xf32>, vector<8x8xf32>, vector<1x8xf32> -> vector<1x8xf32>
    %cst_172 = arith.constant dense<0xFF800000> : vector<1xf32>
    %404 = vector.multi_reduction <maximumf>, %403, %cst_172 [1] : vector<1x8xf32> to vector<1xf32>
    %405 = vector.shape_cast %404 : vector<1xf32> to vector<1x1xf32>
    %406 = vector.broadcast %405 : vector<1x1xf32> to vector<1x8xf32>
    %407 = arith.subf %403, %406 : vector<1x8xf32>
    %408 = math.exp %407 : vector<1x8xf32>
    %cst_173 = arith.constant dense<0.000000e+00> : vector<1xf32>
    %409 = vector.multi_reduction <add>, %408, %cst_173 [1] : vector<1x8xf32> to vector<1xf32>
    %410 = vector.shape_cast %409 : vector<1xf32> to vector<1x1xf32>
    %411 = tpu.reciprocal %410 {approx = true} : vector<1x1xf32> -> vector<1x1xf32>
    %412 = vector.broadcast %411 : vector<1x1xf32> to vector<1x8xf32>
    %413 = arith.mulf %408, %412 : vector<1x8xf32>
    %414 = vector.extract_strided_slice %368 {offsets = [0, 16], sizes = [8, 8], strides = [1, 1]} : vector<8x128xf32> to vector<8x8xf32>
    %cst_174 = arith.constant dense<0.000000e+00> : vector<1x8xf32>
    %415 = tpu.matmul %413, %414, %cst_174 {dimension_numbers = #tpu.dot_dimension_numbers<[1], [0], [0], [1], [0, 0, 1, 1], [], []>} : vector<1x8xf32>, vector<8x8xf32>, vector<1x8xf32> -> vector<1x8xf32>
    %416 = vector.extract_strided_slice %366 {offsets = [0, 24], sizes = [1, 8], strides = [1, 1]} : vector<1x128xf32> to vector<1x8xf32>
    %417 = vector.extract_strided_slice %367 {offsets = [0, 24], sizes = [8, 8], strides = [1, 1]} : vector<8x128xf32> to vector<8x8xf32>
    %cst_175 = arith.constant dense<0.000000e+00> : vector<1x8xf32>
    %418 = tpu.matmul %416, %417, %cst_175 {dimension_numbers = #tpu.dot_dimension_numbers<[1], [1], [0], [0], [0, 0, 1, 0], [], []>} : vector<1x8xf32>, vector<8x8xf32>, vector<1x8xf32> -> vector<1x8xf32>
    %cst_176 = arith.constant dense<0xFF800000> : vector<1xf32>
    %419 = vector.multi_reduction <maximumf>, %418, %cst_176 [1] : vector<1x8xf32> to vector<1xf32>
    %420 = vector.shape_cast %419 : vector<1xf32> to vector<1x1xf32>
    %421 = vector.broadcast %420 : vector<1x1xf32> to vector<1x8xf32>
    %422 = arith.subf %418, %421 : vector<1x8xf32>
    %423 = math.exp %422 : vector<1x8xf32>
    %cst_177 = arith.constant dense<0.000000e+00> : vector<1xf32>
    %424 = vector.multi_reduction <add>, %423, %cst_177 [1] : vector<1x8xf32> to vector<1xf32>
    %425 = vector.shape_cast %424 : vector<1xf32> to vector<1x1xf32>
    %426 = tpu.reciprocal %425 {approx = true} : vector<1x1xf32> -> vector<1x1xf32>
    %427 = vector.broadcast %426 : vector<1x1xf32> to vector<1x8xf32>
    %428 = arith.mulf %423, %427 : vector<1x8xf32>
    %429 = vector.extract_strided_slice %368 {offsets = [0, 24], sizes = [8, 8], strides = [1, 1]} : vector<8x128xf32> to vector<8x8xf32>
    %cst_178 = arith.constant dense<0.000000e+00> : vector<1x8xf32>
    %430 = tpu.matmul %428, %429, %cst_178 {dimension_numbers = #tpu.dot_dimension_numbers<[1], [0], [0], [1], [0, 0, 1, 1], [], []>} : vector<1x8xf32>, vector<8x8xf32>, vector<1x8xf32> -> vector<1x8xf32>
    %431 = tpu.concatenate %385, %400, %415, %430 in 1 : vector<1x8xf32>, vector<1x8xf32>, vector<1x8xf32>, vector<1x8xf32> -> vector<1x32xf32>
    %432 = arith.truncf %431 : vector<1x32xf32> to vector<1x32xbf16>
    %cst_179 = arith.constant dense<0.000000e+00> : vector<1x128xf32>
    %433 = tpu.matmul %432, %369, %cst_179 {dimension_numbers = #tpu.dot_dimension_numbers<[1], [0], [0], [1], [0, 0, 1, 1], [], []>} : vector<1x32xbf16>, vector<32x128xbf16>, vector<1x128xf32> -> vector<1x128xf32>
    %434 = arith.addf %433, %370 : vector<1x128xf32>
    %c0_180 = arith.constant 0 : index
    %c0_181 = arith.constant 0 : index
    %435 = vector.load %arg21[%c0_180, %c0_181] : memref<1x128xf32, #tpu.memory_space<vmem>>, vector<1x128xf32>
    %c0_182 = arith.constant 0 : index
    %c0_183 = arith.constant 0 : index
    %436 = vector.load %arg22[%c0_182, %c0_183] : memref<1x128xf32, #tpu.memory_space<vmem>>, vector<1x128xf32>
    %cst_184 = arith.constant dense<0.000000e+00> : vector<1xf32>
    %437 = vector.multi_reduction <add>, %434, %cst_184 [1] : vector<1x128xf32> to vector<1xf32>
    %438 = vector.shape_cast %437 : vector<1xf32> to vector<1x1xf32>
    %cst_185 = arith.constant 3.125000e-02 : f32
    %439 = vector.broadcast %cst_185 : f32 to vector<1x1xf32>
    %440 = arith.mulf %438, %439 : vector<1x1xf32>
    %441 = vector.broadcast %440 : vector<1x1xf32> to vector<1x128xf32>
    %442 = arith.subf %434, %441 : vector<1x128xf32>
    %443 = arith.mulf %442, %4 : vector<1x128xf32>
    %444 = arith.mulf %443, %443 : vector<1x128xf32>
    %cst_186 = arith.constant dense<0.000000e+00> : vector<1xf32>
    %445 = vector.multi_reduction <add>, %444, %cst_186 [1] : vector<1x128xf32> to vector<1xf32>
    %446 = vector.shape_cast %445 : vector<1xf32> to vector<1x1xf32>
    %cst_187 = arith.constant 3.125000e-02 : f32
    %447 = vector.broadcast %cst_187 : f32 to vector<1x1xf32>
    %448 = arith.mulf %446, %447 : vector<1x1xf32>
    %cst_188 = arith.constant 9.99999997E-7 : f32
    %449 = vector.broadcast %cst_188 : f32 to vector<1x1xf32>
    %450 = arith.addf %448, %449 : vector<1x1xf32>
    %451 = math.rsqrt %450 : vector<1x1xf32>
    %452 = vector.broadcast %451 : vector<1x1xf32> to vector<1x128xf32>
    %453 = arith.mulf %443, %452 : vector<1x128xf32>
    %454 = arith.mulf %453, %435 : vector<1x128xf32>
    %455 = arith.addf %454, %436 : vector<1x128xf32>
    %c0_189 = arith.constant 0 : index
    %c0_190 = arith.constant 0 : index
    %456 = vector.load %arg23[%c0_189, %c0_190] : memref<128x128xbf16, #tpu.memory_space<vmem>>, vector<128x128xbf16>
    %c0_191 = arith.constant 0 : index
    %c0_192 = arith.constant 0 : index
    %457 = vector.load %arg24[%c0_191, %c0_192] : memref<1x128xf32, #tpu.memory_space<vmem>>, vector<1x128xf32>
    %458 = arith.truncf %455 : vector<1x128xf32> to vector<1x128xbf16>
    %cst_193 = arith.constant dense<0.000000e+00> : vector<1x128xf32>
    %459 = tpu.matmul %458, %456, %cst_193 {dimension_numbers = #tpu.dot_dimension_numbers<[1], [0], [0], [1], [0, 0, 1, 1], [], []>} : vector<1x128xbf16>, vector<128x128xbf16>, vector<1x128xf32> -> vector<1x128xf32>
    %460 = arith.addf %459, %457 : vector<1x128xf32>
    %cst_194 = arith.constant 5.000000e-01 : f32
    %461 = vector.broadcast %cst_194 : f32 to vector<1x128xf32>
    %462 = arith.mulf %461, %460 : vector<1x128xf32>
    %cst_195 = arith.constant 4.471500e-02 : f32
    %463 = vector.broadcast %cst_195 : f32 to vector<1x128xf32>
    %464 = arith.mulf %463, %460 : vector<1x128xf32>
    %465 = arith.mulf %464, %460 : vector<1x128xf32>
    %466 = arith.mulf %465, %460 : vector<1x128xf32>
    %467 = arith.addf %460, %466 : vector<1x128xf32>
    %cst_196 = arith.constant 0.797884583 : f32
    %468 = vector.broadcast %cst_196 : f32 to vector<1x128xf32>
    %469 = arith.mulf %468, %467 : vector<1x128xf32>
    %470 = math.tanh %469 : vector<1x128xf32>
    %cst_197 = arith.constant 1.000000e+00 : f32
    %471 = vector.broadcast %cst_197 : f32 to vector<1x128xf32>
    %472 = arith.addf %471, %470 : vector<1x128xf32>
    %473 = arith.mulf %462, %472 : vector<1x128xf32>
    %c0_198 = arith.constant 0 : index
    %c0_199 = arith.constant 0 : index
    %474 = vector.load %arg25[%c0_198, %c0_199] : memref<128x128xbf16, #tpu.memory_space<vmem>>, vector<128x128xbf16>
    %c0_200 = arith.constant 0 : index
    %c0_201 = arith.constant 0 : index
    %475 = vector.load %arg26[%c0_200, %c0_201] : memref<1x128xf32, #tpu.memory_space<vmem>>, vector<1x128xf32>
    %476 = arith.truncf %473 : vector<1x128xf32> to vector<1x128xbf16>
    %cst_202 = arith.constant dense<0.000000e+00> : vector<1x128xf32>
    %477 = tpu.matmul %476, %474, %cst_202 {dimension_numbers = #tpu.dot_dimension_numbers<[1], [0], [0], [1], [0, 0, 1, 1], [], []>} : vector<1x128xbf16>, vector<128x128xbf16>, vector<1x128xf32> -> vector<1x128xf32>
    %478 = arith.addf %477, %475 : vector<1x128xf32>
    %479 = arith.addf %434, %478 : vector<1x128xf32>
    %c0_203 = arith.constant 0 : index
    %c0_204 = arith.constant 0 : index
    %c0_205 = arith.constant 0 : index
    %480 = vector.load %arg28[%c0_203, %c0_204, %c0_205] : memref<1x1x128xf32, #tpu.memory_space<vmem>>, vector<1x1x128xf32>
    %481 = vector.shape_cast %480 : vector<1x1x128xf32> to vector<1x128xf32>
    %482 = vector.shape_cast %479 : vector<1x128xf32> to vector<1x1x128xf32>
    tpu.vector_store %arg28[%c0_203, %c0_204, %c0_205], %482 {strides = array<i32>} : memref<1x1x128xf32, #tpu.memory_space<vmem>>, vector<1x1x128xf32>,
    return
  }
  func.func @transform_0(%arg0: i32) -> (i32, i32, i32) {
    %c0_i32 = arith.constant 0 : i32
    %c0_i32_0 = arith.constant 0 : i32
    %c0_i32_1 = arith.constant 0 : i32
    return %arg0, %c0_i32, %c0_i32_0 : i32, i32, i32
  }
  func.func @transform_1(%arg0: i32) -> (i32, i32, i32) {
    %c0_i32 = arith.constant 0 : i32
    %c0_i32_0 = arith.constant 0 : i32
    %c0_i32_1 = arith.constant 0 : i32
    %c0_i32_2 = arith.constant 0 : i32
    return %c0_i32, %c0_i32_0, %c0_i32_1 : i32, i32, i32
  }
  func.func @transform_2(%arg0: i32) -> (i32, i32, i32) {
    %c0_i32 = arith.constant 0 : i32
    %c0_i32_0 = arith.constant 0 : i32
    %c0_i32_1 = arith.constant 0 : i32
    %c0_i32_2 = arith.constant 0 : i32
    return %c0_i32, %c0_i32_0, %c0_i32_1 : i32, i32, i32
  }
  func.func @transform_3(%arg0: i32) -> (i32, i32, i32) {
    %c0_i32 = arith.constant 0 : i32
    %c0_i32_0 = arith.constant 0 : i32
    %c0_i32_1 = arith.constant 0 : i32
    %c0_i32_2 = arith.constant 0 : i32
    return %c0_i32, %c0_i32_0, %c0_i32_1 : i32, i32, i32
  }
  func.func @transform_4(%arg0: i32) -> (i32, i32, i32) {
    %c0_i32 = arith.constant 0 : i32
    %c0_i32_0 = arith.constant 0 : i32
    %c0_i32_1 = arith.constant 0 : i32
    %c0_i32_2 = arith.constant 0 : i32
    return %c0_i32, %c0_i32_0, %c0_i32_1 : i32, i32, i32
  }
  func.func @transform_5(%arg0: i32) -> (i32, i32, i32) {
    %c0_i32 = arith.constant 0 : i32
    %c0_i32_0 = arith.constant 0 : i32
    %c0_i32_1 = arith.constant 0 : i32
    %c0_i32_2 = arith.constant 0 : i32
    return %c0_i32, %c0_i32_0, %c0_i32_1 : i32, i32, i32
  }
  func.func @transform_6(%arg0: i32) -> (i32, i32, i32) {
    %c0_i32 = arith.constant 0 : i32
    %c0_i32_0 = arith.constant 0 : i32
    %c0_i32_1 = arith.constant 0 : i32
    %c0_i32_2 = arith.constant 0 : i32
    return %c0_i32, %c0_i32_0, %c0_i32_1 : i32, i32, i32
  }
  func.func @transform_7(%arg0: i32) -> (i32, i32, i32) {
    %c0_i32 = arith.constant 0 : i32
    %c0_i32_0 = arith.constant 0 : i32
    %c0_i32_1 = arith.constant 0 : i32
    %c0_i32_2 = arith.constant 0 : i32
    return %c0_i32, %c0_i32_0, %c0_i32_1 : i32, i32, i32
  }
  func.func @transform_8(%arg0: i32) -> (i32, i32, i32) {
    %c0_i32 = arith.constant 0 : i32
    %c0_i32_0 = arith.constant 0 : i32
    %c0_i32_1 = arith.constant 0 : i32
    %c0_i32_2 = arith.constant 0 : i32
    return %c0_i32, %c0_i32_0, %c0_i32_1 : i32, i32, i32
  }
  func.func @transform_9(%arg0: i32) -> (i32, i32, i32) {
    %c0_i32 = arith.constant 0 : i32
    %c0_i32_0 = arith.constant 0 : i32
    %c0_i32_1 = arith.constant 0 : i32
    %c0_i32_2 = arith.constant 0 : i32
    return %c0_i32, %c0_i32_0, %c0_i32_1 : i32, i32, i32
  }
  func.func @transform_10(%arg0: i32) -> (i32, i32, i32) {
    %c0_i32 = arith.constant 0 : i32
    %c0_i32_0 = arith.constant 0 : i32
    %c0_i32_1 = arith.constant 0 : i32
    %c0_i32_2 = arith.constant 0 : i32
    return %c0_i32, %c0_i32_0, %c0_i32_1 : i32, i32, i32
  }
  func.func @transform_11(%arg0: i32) -> (i32, i32, i32) {
    %c0_i32 = arith.constant 0 : i32
    %c0_i32_0 = arith.constant 0 : i32
    %c0_i32_1 = arith.constant 0 : i32
    %c0_i32_2 = arith.constant 0 : i32
    return %c0_i32, %c0_i32_0, %c0_i32_1 : i32, i32, i32
  }
  func.func @transform_12(%arg0: i32) -> (i32, i32, i32) {
    %c0_i32 = arith.constant 0 : i32
    %c0_i32_0 = arith.constant 0 : i32
    %c0_i32_1 = arith.constant 0 : i32
    %c0_i32_2 = arith.constant 0 : i32
    return %c0_i32, %c0_i32_0, %c0_i32_1 : i32, i32, i32
  }
  func.func @transform_13(%arg0: i32) -> (i32, i32) {
    %c0_i32 = arith.constant 0 : i32
    %c0_i32_0 = arith.constant 0 : i32
    %c0_i32_1 = arith.constant 0 : i32
    return %c0_i32, %c0_i32_0 : i32, i32
  }
  func.func @transform_14(%arg0: i32) -> (i32, i32) {
    %c0_i32 = arith.constant 0 : i32
    %c0_i32_0 = arith.constant 0 : i32
    %c0_i32_1 = arith.constant 0 : i32
    return %c0_i32, %c0_i32_0 : i32, i32
  }
  func.func @transform_15(%arg0: i32) -> (i32, i32) {
    %c0_i32 = arith.constant 0 : i32
    %c0_i32_0 = arith.constant 0 : i32
    %c0_i32_1 = arith.constant 0 : i32
    return %c0_i32, %c0_i32_0 : i32, i32
  }
  func.func @transform_16(%arg0: i32) -> (i32, i32) {
    %c0_i32 = arith.constant 0 : i32
    %c0_i32_0 = arith.constant 0 : i32
    %c0_i32_1 = arith.constant 0 : i32
    return %c0_i32, %c0_i32_0 : i32, i32
  }
  func.func @transform_17(%arg0: i32) -> (i32, i32) {
    %c0_i32 = arith.constant 0 : i32
    %c0_i32_0 = arith.constant 0 : i32
    %c0_i32_1 = arith.constant 0 : i32
    return %c0_i32, %c0_i32_0 : i32, i32
  }
  func.func @transform_18(%arg0: i32) -> (i32, i32) {
    %c0_i32 = arith.constant 0 : i32
    %c0_i32_0 = arith.constant 0 : i32
    %c0_i32_1 = arith.constant 0 : i32
    return %c0_i32, %c0_i32_0 : i32, i32
  }
  func.func @transform_19(%arg0: i32) -> (i32, i32) {
    %c0_i32 = arith.constant 0 : i32
    %c0_i32_0 = arith.constant 0 : i32
    %c0_i32_1 = arith.constant 0 : i32
    return %c0_i32, %c0_i32_0 : i32, i32
  }
  func.func @transform_20(%arg0: i32) -> (i32, i32) {
    %c0_i32 = arith.constant 0 : i32
    %c0_i32_0 = arith.constant 0 : i32
    %c0_i32_1 = arith.constant 0 : i32
    return %c0_i32, %c0_i32_0 : i32, i32
  }
  func.func @transform_21(%arg0: i32) -> (i32, i32) {
    %c0_i32 = arith.constant 0 : i32
    %c0_i32_0 = arith.constant 0 : i32
    %c0_i32_1 = arith.constant 0 : i32
    return %c0_i32, %c0_i32_0 : i32, i32
  }
  func.func @transform_22(%arg0: i32) -> (i32, i32) {
    %c0_i32 = arith.constant 0 : i32
    %c0_i32_0 = arith.constant 0 : i32
    %c0_i32_1 = arith.constant 0 : i32
    return %c0_i32, %c0_i32_0 : i32, i32
  }
  func.func @transform_23(%arg0: i32) -> (i32, i32) {
    %c0_i32 = arith.constant 0 : i32
    %c0_i32_0 = arith.constant 0 : i32
    %c0_i32_1 = arith.constant 0 : i32
    return %c0_i32, %c0_i32_0 : i32, i32
  }
  func.func @transform_24(%arg0: i32) -> (i32, i32) {
    %c0_i32 = arith.constant 0 : i32
    %c0_i32_0 = arith.constant 0 : i32
    %c0_i32_1 = arith.constant 0 : i32
    return %c0_i32, %c0_i32_0 : i32, i32
  }
  func.func @transform_25(%arg0: i32) -> (i32, i32) {
    %c0_i32 = arith.constant 0 : i32
    %c0_i32_0 = arith.constant 0 : i32
    %c0_i32_1 = arith.constant 0 : i32
    return %c0_i32, %c0_i32_0 : i32, i32
  }
  func.func @transform_26(%arg0: i32) -> (i32, i32, i32) {
    %c0_i32 = arith.constant 0 : i32
    %c0_i32_0 = arith.constant 0 : i32
    %c0_i32_1 = arith.constant 0 : i32
    return %arg0, %c0_i32, %c0_i32_0 : i32, i32, i32
  }
  func.func @transform_27(%arg0: i32) -> (i32, i32, i32) {
    %c0_i32 = arith.constant 0 : i32
    %c0_i32_0 = arith.constant 0 : i32
    %c0_i32_1 = arith.constant 0 : i32
    return %arg0, %c0_i32, %c0_i32_0 : i32, i32, i32
  }
}

</mosaic_0001>

<bundles_post_ra>
// kernel: siglip_vision_transformer.1
= control target key start
LH: loop header
LB: loop body
LE: loop exit
PB: predicated region body
PF: predicated region fallthrough
CT: control target
= control target key end

     0   :  { %s8194_s0 = inlined_call_operand.vmem [shape: f32[2,8,128], index: 0, kind: input, shape index: {}]   ;;  %s8195_s1 = inlined_call_operand.vmem [shape: f32[2,1,128], index: 1, kind: input, shape index: {}]   ;;  %s8196_s2 = inlined_call_operand.hbm [shape: f32[2,1,128], index: 2, kind: input, shape index: {}]   ;;  %s8197_s3 = inlined_call_operand.hbm [shape: bf16[2,128,384], index: 3, kind: input, shape index: {}]   ;;  %s8198_s4 = inlined_call_operand.vmem [shape: f32[2,1,384], index: 4, kind: input, shape index: {}]   ;;  %s8199_s5 = inlined_call_operand.vmem [shape: bf16[2,32,128], index: 5, kind: input, shape index: {}]   ;;  %s8200_s6 = inlined_call_operand.hbm [shape: f32[2,1,128], index: 6, kind: input, shape index: {}]   ;;  %s8201_s7 = inlined_call_operand.hbm [shape: f32[2,1,128], index: 7, kind: input, shape index: {}]   ;;  %s8202_s8 = inlined_call_operand.hbm [shape: f32[2,1,128], index: 8, kind: input, shape index: {}]   ;;  %s8203_s9 = inlined_call_operand.hbm [shape: bf16[2,128,128], index: 9, kind: input, shape index: {}]   ;;  %s8204_s10 = inlined_call_operand.hbm [shape: f32[2,1,128], index: 10, kind: input, shape index: {}]   ;;  %s8205_s11 = inlined_call_operand.hbm [shape: bf16[2,128,128], index: 11, kind: input, shape index: {}]   ;;  %s8206_s12 = inlined_call_operand.hbm [shape: f32[2,1,128], index: 12, kind: input, shape index: {}]   ;;  %s8207_s13 = inlined_call_operand.hbm [shape: f32[1,128], index: 13, kind: input, shape index: {}]   ;;  %s8208_s14 = inlined_call_operand.hbm [shape: f32[1,128], index: 14, kind: input, shape index: {}]   ;;  %s8209_s15 = inlined_call_operand.hbm [shape: f32[1,128], index: 15, kind: input, shape index: {}]   ;;  %s8210_s16 = inlined_call_operand.hbm [shape: bf16[128,256], index: 16, kind: input, shape index: {}]   ;;  %s8211_s17 = inlined_call_operand.hbm [shape: f32[1,256], index: 17, kind: input, shape index: {}]   ;;  %s8212_s18 = inlined_call_operand.vmem [shape: bf16[32,128], index: 18, kind: input, shape index: {}]   ;;  %s8213_s19 = inlined_call_operand.hbm [shape: f32[1,128], index: 19, kind: input, shape index: {}]   ;;  %s8214_s20 = inlined_call_operand.hbm [shape: f32[1,128], index: 20, kind: input, shape index: {}]   ;;  %s8215_s21 = inlined_call_operand.hbm [shape: f32[1,128], index: 21, kind: input, shape index: {}]   ;;  %s8216_s22 = inlined_call_operand.vmem [shape: bf16[128,128], index: 22, kind: input, shape index: {}]   ;;  %s8217_s23 = inlined_call_operand.hbm [shape: f32[1,128], index: 23, kind: input, shape index: {}]   ;;  %s8218_s24 = inlined_call_operand.hbm [shape: bf16[128,128], index: 24, kind: input, shape index: {}]   ;;  %s8219_s25 = inlined_call_operand.hbm [shape: f32[1,128], index: 25, kind: input, shape index: {}]   ;;  %s8220_s26 = inlined_call_operand.hbm [shape: f32[2,8,128], index: 26, kind: output, shape index: {0}]   ;;  %s8221_s27 = inlined_call_operand.hbm [shape: f32[2,1,128], index: 27, kind: output, shape index: {1}]  }
   0x1   :  { %8264 = sst [smem:[#allocation60_spill]] %s8194_s0 }
   0x2   :  { %8265 = sst [smem:[#allocation61_spill]] %s8195_s1 }
   0x3   :  { %8266 = sst [smem:[#allocation62_spill]] %s8196_s2 }
   0x4   :  { %8267 = sst [smem:[#allocation63_spill]] %s8197_s3 }
   0x5   :  { %8268 = sst [smem:[#allocation64_spill]] %s8198_s4 }
   0x6   :  { %8269 = sst [smem:[#allocation65_spill]] %s8199_s5 }
   0x7   :  { %8270 = sst [smem:[#allocation66_spill]] %s8200_s6 }
   0x8   :  { %8271 = sst [smem:[#allocation67_spill]] %s8201_s7 }
   0x9   :  { %8272 = sst [smem:[#allocation68_spill]] %s8202_s8 }
   0xa   :  { %8273 = sst [smem:[#allocation69_spill]] %s8203_s9 }
   0xb   :  { %8274 = sst [smem:[#allocation70_spill]] %s8204_s10 }
   0xc   :  { %8275 = sst [smem:[#allocation71_spill]] %s8205_s11 }
   0xd   :  { %8276 = sst [smem:[#allocation72_spill]] %s8206_s12 }
   0xe   :  { %8277 = sst [smem:[#allocation73_spill]] %s8207_s13 }
   0xf   :  { %8278 = sst [smem:[#allocation74_spill]] %s8209_s15 }
  0x10   :  { %8279 = sst [smem:[#allocation75_spill]] %s8211_s17 }
  0x11   :  { %8280 = sst [smem:[#allocation76_spill]] %s8212_s18 }
  0x12   :  { %8281 = sst [smem:[#allocation77_spill]] %s8216_s22 }
  0x13   :  { %8282 = sst [smem:[#allocation78_spill]] %s8219_s25 }
  0x14   :  { %8283 = sst [smem:[#allocation79_spill]] %s8220_s26 }
  0x15   :  { %8284 = sst [smem:[#allocation80_spill]] %s8221_s27 }
  0x16   :  { %33 = vsyncpa [#allocation3], 0 }
  0x17   :  { %34 = vsyncpa [#allocation6], 0 }
  0x18   :  { %35 = vsyncpa [#allocation9], 0 }
  0x19   :  { %36 = vsyncpa [#allocation12], 0 }
  0x1a   :  { %37 = vsyncpa [#allocation15], 0 }
  0x1b   :  { %38 = vsyncpa [#allocation18], 0 }
  0x1c   :  { %39 = vsyncpa [#allocation21], 0 }
  0x1d   :  { %40 = vsyncpa [#allocation24], 0 }
  0x1e   :  { %41 = vsyncpa [#allocation27], 0 }
  0x1f   :  { %42 = vsyncpa [#allocation30], 0 }
  0x20   :  { %43 = vsyncpa [#allocation33], 0 }
  0x21   :  { %44 = vsyncpa [#allocation4], 0 }
  0x22   :  { %46 = vsyncpa [#allocation4 + $0x1], 0 }
  0x23   :  { %47 = vsyncpa [#allocation36], 0 }
  0x24   :  { %49 = vsyncpa [#allocation36 + $0x1], 0  ;;  %s7179_s7 = smov 0   ;;  %s7181_s4 = smov 0  }
  0x25   :  { %s7183_s8 = smov 0   ;;  %s7185_s30 = smov 0  }
  0x26 LB: > { %8285 = sst [smem:[#allocation50_spill]] %s6986_s7  ;;  %s7200_s9 = sadd.s32 4294967295, %s6998_s30   ;;  %s6998_s30 = sphi %s7185_s30, %s8361_s30   ;;  %s6994_s8 = sphi %s7183_s8, %s8364_s8   ;;  %s6990_s4 = sphi %s7181_s4, %s8363_s4   ;;  %s6986_s7 = sphi %s7179_s7, %s8362_s7  }
  0x27   : > { %8286 = sst [smem:[#allocation51_spill]] %s6990_s4  ;;  %s5166_s5 = sadd.s32 4294967294, %s6998_s30  }
  0x28   : > { %8287 = sst [smem:[#allocation52_spill]] %s6994_s8  ;;  %s7204_s28 = sadd.s32 1, %s6998_s30  }
  0x29   : > { %8288 = sst [smem:[#allocation53_spill]] %s6998_s30  ;;  %s613_s0 = sadd.s32 1, %s6994_s8 }
  0x2a   : > { %8289 = sst [smem:[#allocation54_spill]] %s7200_s9  ;;  %s610_s10 = ssub.s32 %s6998_s30, %s7204_s28 }
  0x2b   : > { %8290 = sst [smem:[#allocation55_spill]] %s7204_s28  ;;  %p623_p0 = scmp.ne.s32.totalorder %s6994_s8, %s6990_s4 }
  0x2c   : > { %p611_p1 = scmp.eq.s32.totalorder %s610_s10, 0  ;;  %p624_p2 = scmp.eq.s32.totalorder %s7200_s9, 1 }
  0x2d   : > { %p629_p3 = scmp.ne.s32.totalorder %s6990_s4, %s6986_s7  ;;  %p630_p4 = scmp.eq.s32.totalorder %s5166_s5, 1 }
  0x2e   : > { %s7215_s29 = scalar_select %p611_p1, %s6994_s8, %s613_s0  }
  0x2f   : > { %p7217_p5 = por %p624_p2, %p623_p0  ;;  %p7221_p6 = por %p630_p4, %p629_p3 }
  0x30   : > { %8291 = sst [smem:[#allocation56_spill]] %s7215_s29  ;;  %p5167_p7 = scmp.ge.s32.totalorder %s6998_s30, 1 }
  0x31   : > { %s8292_s1 = scalar_select %p7217_p5, 1, 0 }
  0x32   : > { %s8294_s6 = scalar_select %p7221_p6, 1, 0 }
  0x33   : > { %8293 = sst [smem:[#allocation57_spill]] %s8292_s1  ;;  %p663_p8 = scmp.lt.s32.totalorder %s6998_s30, 3 }
  0x34   : > { %8295 = sst [smem:[#allocation58_spill]] %s8294_s6  ;;  %p8241_p9 = scmp.eq.s32.totalorder %s7200_s9, 0 }
  0x35   : > { %p7228_p10 = pnand %p5167_p7, %p663_p8  ;;  %s7000_s2 = smov [#allocation5]  }
  0x36   : > { %s691_s3 = sshll.u32 %s7000_s2, 4  ;;  %s7001_s0 = smov [#allocation8]   ;;  %s692_s3 = int_to_ptr.vmem [resolvable:$true] %s691_s3 }
  0x37   : > { %s8296_s11 = scalar_select %p7228_p10, 1, 0 }
  0x38   : > { %p5914_p11 = pneg %p7228_p10  ;;  %s723_s10 = sshll.u32 %s7001_s0, 4  ;;  %s724_s10 = int_to_ptr.vmem [resolvable:$true] %s723_s10 }
  0x39   : > { %8297 = sst [smem:[#allocation59_spill]] %s8296_s11  ;;  %s8299_s28 = sld [smem:[#allocation63_spill]] }
  0x3a   : > { %p7236_p12 = pnand %p8241_p9, %p5914_p11 }
  0x3c   : > { %p7248_p0 = pneg %p7236_p12 }
  0x3f   : > { %s6300_s6 = scalar_lea.hbm %s8299_s28, 6144 }
  0x40   : > { %p6301_p13 = scmp.ne.s32.totalorder %s8299_s28, %s6300_s6  ;;  %p6307_p3 = scmp.lt.u32.totalorder %s6300_s6, %s8299_s28 }
  0x42   : > { %p6303_p1 = pnand %p7248_p0, %p6301_p13 }
  0x44   : > { %p6304_p2 = pneg %p6303_p1 }
  0x46   : > { %p6309_p4 = pnand %p6307_p3, %p6304_p2 }
  0x48   : > { %6312 = shalt.err (!%p6309_p4)
}
  0x49   : > { %s6313_s8 = scalar_lea.vmem %s692_s3, 6144  ;;  %p6321_p9 = scmp.lt.s32.totalorder %s692_s3, %s692_s3 }
  0x4a   : > { %p6314_p7 = scmp.ne.s32.totalorder %s692_s3, %s6313_s8  ;;  %p6322_p6 = scmp.lt.s32.totalorder %s6313_s8, %s6313_s8 }
  0x4c   : > { %p6316_p8 = pnand %p6314_p7, %p7248_p0  ;;  %p6323_p5 = por %p6322_p6, %p6321_p9 }
  0x4e   : > { %p6317_p11 = pneg %p6316_p8 }
  0x50   : > { %p6324_p10 = pnand %p6323_p5, %p6317_p11 }
  0x52   : > { %6327 = shalt.err (!%p6324_p10)
}
  0x53   : > { %s7002_s7 = smov 192   ;;  %s7003_s30 = smov 12  }
  0x54   : > { %5920 = dma.hbm_to_vmem [thread:$0]  (!%p7236_p12), %s8299_s28, 6144, %s692_s3, [#allocation6], %s7002_s7, %s7002_s7, %s7003_s30  }
  0x55   : > { %s7004_s29 = smov [#allocation11]   ;;  %s8301_s22 = sld [smem:[#allocation67_spill]] }
  0x56   : > { %s749_s6 = sshll.u32 %s7004_s29, 4  ;;  %s750_s6 = int_to_ptr.vmem [resolvable:$true] %s749_s6 }
  0x5b   : > { %s6328_s18 = scalar_lea.hbm %s8301_s22, 32 }
  0x5c   : > { %p6329_p5 = scmp.ne.s32.totalorder %s8301_s22, %s6328_s18  ;;  %p6335_p10 = scmp.lt.u32.totalorder %s6328_s18, %s8301_s22 }
  0x5e   : > { %p6331_p6 = pnand %p6329_p5, %p7248_p0 }
  0x60   : > { %p6332_p9 = pneg %p6331_p6 }
  0x62   : > { %p6337_p13 = pnand %p6335_p10, %p6332_p9 }
  0x64   : > { %6340 = shalt.err (!%p6337_p13)
}
  0x65   : > { %s6341_s3 = scalar_lea.vmem %s724_s10, 32  ;;  %p6349_p4 = scmp.lt.s32.totalorder %s724_s10, %s724_s10 }
  0x66   : > { %p6342_p1 = scmp.ne.s32.totalorder %s724_s10, %s6341_s3  ;;  %p6350_p7 = scmp.lt.s32.totalorder %s6341_s3, %s6341_s3 }
  0x68   : > { %p6344_p2 = pnand %p6342_p1, %p7248_p0  ;;  %p6351_p8 = por %p6350_p7, %p6349_p4 }
  0x6a   : > { %p6345_p3 = pneg %p6344_p2 }
  0x6c   : > { %p6352_p11 = pnand %p6351_p8, %p6345_p3 }
  0x6e   : > { %6355 = shalt.err (!%p6352_p11)
}
  0x6f   : > { %s8252_s4 = smov 16   ;;  %s8254_s1 = smov 1  }
  0x70   : > { %5926 = dma.hbm_to_vmem [thread:$0]  (!%p7236_p12), %s8301_s22, 32, %s724_s10, [#allocation9], %s8252_s4, %s8252_s4, %s8254_s1  }
  0x71   : > { %s8302_s30 = sld [smem:[#allocation69_spill]] }
  0x77   : > { %s8303_s26 = smov %s8302_s30  ;;  %s6356_s27 = scalar_lea.hbm %s8302_s30, 2048 }
  0x78   : > { %p6357_p5 = scmp.ne.s32.totalorder %s8303_s26, %s6356_s27  ;;  %p6363_p10 = scmp.lt.u32.totalorder %s6356_s27, %s8303_s26 }
  0x7a   : > { %p6359_p6 = pnand %p6357_p5, %p7248_p0 }
  0x7c   : > { %p6360_p9 = pneg %p6359_p6 }
  0x7e   : > { %p6365_p13 = pnand %p6363_p10, %p6360_p9 }
  0x80   : > { %6368 = shalt.err (!%p6365_p13)
}
  0x81   : > { %s6369_s18 = scalar_lea.vmem %s750_s6, 2048  ;;  %p6377_p4 = scmp.lt.s32.totalorder %s750_s6, %s750_s6 }
  0x82   : > { %p6370_p1 = scmp.ne.s32.totalorder %s750_s6, %s6369_s18  ;;  %p6378_p7 = scmp.lt.s32.totalorder %s6369_s18, %s6369_s18 }
  0x84   : > { %p6372_p2 = pnand %p6370_p1, %p7248_p0  ;;  %p6379_p8 = por %p6378_p7, %p6377_p4 }
  0x86   : > { %p6373_p3 = pneg %p6372_p2 }
  0x88   : > { %p6380_p11 = pnand %p6379_p8, %p6373_p3 }
  0x8a   : > { %6383 = shalt.err (!%p6380_p11)
}
  0x8b   : > { %s8259_s10 = smov 64   ;;  %s8260_s9 = smov 4  }
  0x8c   : > { %5932 = dma.hbm_to_vmem [thread:$0]  (!%p7236_p12), %s8303_s26, 2048, %s750_s6, [#allocation12], %s8259_s10, %s8259_s10, %s8260_s9  }
  0x8d   : > { %s7009_s30 = smov [#allocation14]   ;;  %s7010_s29 = smov [#allocation17]  }
  0x8e   : > { %s775_s27 = sshll.u32 %s7009_s30, 4  ;;  %s802_s0 = sshll.u32 %s7010_s29, 4  ;;  %s776_s27 = int_to_ptr.vmem [resolvable:$true] %s775_s27  ;;  %s803_s0 = int_to_ptr.vmem [resolvable:$true] %s802_s0 }
  0x8f   : > { %s8304_s18 = sld [smem:[#allocation71_spill]] }
  0x95   : > { %s6384_s4 = scalar_lea.hbm %s8304_s18, 2048 }
  0x96   : > { %p6385_p5 = scmp.ne.s32.totalorder %s8304_s18, %s6384_s4  ;;  %p6391_p10 = scmp.lt.u32.totalorder %s6384_s4, %s8304_s18 }
  0x98   : > { %p6387_p6 = pnand %p6385_p5, %p7248_p0 }
  0x9a   : > { %p6388_p9 = pneg %p6387_p6 }
  0x9c   : > { %p6393_p13 = pnand %p6391_p10, %p6388_p9 }
  0x9e   : > { %6396 = shalt.err (!%p6393_p13)
}
  0x9f   : > { %s6397_s6 = scalar_lea.vmem %s776_s27, 2048  ;;  %p6405_p4 = scmp.lt.s32.totalorder %s776_s27, %s776_s27 }
  0xa0   : > { %p6398_p1 = scmp.ne.s32.totalorder %s776_s27, %s6397_s6  ;;  %p6406_p7 = scmp.lt.s32.totalorder %s6397_s6, %s6397_s6 }
  0xa2   : > { %p6400_p2 = pnand %p6398_p1, %p7248_p0  ;;  %p6407_p8 = por %p6406_p7, %p6405_p4 }
  0xa4   : > { %p6401_p3 = pneg %p6400_p2 }
  0xa6   : > { %p6408_p11 = pnand %p6407_p8, %p6401_p3 }
  0xa8   : > { %6411 = shalt.err (!%p6408_p11)
}
  0xa9   : > { %5938 = dma.hbm_to_vmem [thread:$0]  (!%p7236_p12), %s8304_s18, 2048, %s776_s27, [#allocation15], %s8259_s10, %s8259_s10, %s8260_s9  }
  0xaa   : > { %s8305_s13 = sld [smem:[#allocation73_spill]] }
  0xb0   : > { %s6412_s1 = scalar_lea.hbm %s8305_s13, 16 }
  0xb1   : > { %p6413_p5 = scmp.ne.s32.totalorder %s8305_s13, %s6412_s1  ;;  %p6419_p10 = scmp.lt.u32.totalorder %s6412_s1, %s8305_s13 }
  0xb3   : > { %p6415_p6 = pnand %p6413_p5, %p7248_p0 }
  0xb5   : > { %p6416_p9 = pneg %p6415_p6 }
  0xb7   : > { %p6421_p13 = pnand %p6419_p10, %p6416_p9 }
  0xb9   : > { %6424 = shalt.err (!%p6421_p13)
}
  0xba   : > { %s6425_s8 = scalar_lea.vmem %s803_s0, 16  ;;  %s6432_s27 = scalar_lea.vmem %s803_s0, 32 }
  0xbb   : > { %p6426_p1 = scmp.ne.s32.totalorder %s803_s0, %s6425_s8  ;;  %p6433_p4 = scmp.lt.s32.totalorder %s803_s0, %s803_s0 }
  0xbc   : > { %p6434_p7 = scmp.lt.s32.totalorder %s6432_s27, %s6425_s8 }
  0xbd   : > { %p6428_p2 = pnand %p6426_p1, %p7248_p0 }
  0xbe   : > { %p6435_p8 = por %p6434_p7, %p6433_p4 }
  0xbf   : > { %p6429_p3 = pneg %p6428_p2 }
  0xc1   : > { %p6436_p11 = pnand %p6435_p8, %p6429_p3 }
  0xc3   : > { %6439 = shalt.err (!%p6436_p11)
}
  0xc4   : > { %5944 = dma.hbm_to_vmem [thread:$0]  (!%p7236_p12), %s8305_s13, 16, %s803_s0, [#allocation18]  }
  0xc5   : > { %s7011_s22 = smov [#allocation20]   ;;  %s7012_s28 = smov [#allocation23]  }
  0xc6   : > { %s824_s25 = sshll.u32 %s7011_s22, 4  ;;  %s848_s4 = sshll.u32 %s7012_s28, 4  ;;  %s825_s25 = int_to_ptr.vmem [resolvable:$true] %s824_s25  ;;  %s849_s4 = int_to_ptr.vmem [resolvable:$true] %s848_s4 }
  0xc7   : > { %s8306_s15 = sld [smem:[#allocation74_spill]] }
  0xcd   : > { %s6440_s7 = scalar_lea.hbm %s8306_s15, 16 }
  0xce   : > { %p6441_p5 = scmp.ne.s32.totalorder %s8306_s15, %s6440_s7  ;;  %p6447_p10 = scmp.lt.u32.totalorder %s6440_s7, %s8306_s15 }
  0xd0   : > { %p6443_p6 = pnand %p6441_p5, %p7248_p0 }
  0xd2   : > { %p6444_p9 = pneg %p6443_p6 }
  0xd4   : > { %p6449_p13 = pnand %p6447_p10, %p6444_p9 }
  0xd6   : > { %6452 = shalt.err (!%p6449_p13)
}
  0xd7   : > { %s6453_s0 = scalar_lea.vmem %s825_s25, 16  ;;  %s6460_s3 = scalar_lea.vmem %s825_s25, 32 }
  0xd8   : > { %p6454_p1 = scmp.ne.s32.totalorder %s825_s25, %s6453_s0  ;;  %p6461_p4 = scmp.lt.s32.totalorder %s825_s25, %s825_s25 }
  0xd9   : > { %p6462_p7 = scmp.lt.s32.totalorder %s6460_s3, %s6453_s0 }
  0xda   : > { %p6456_p2 = pnand %p6454_p1, %p7248_p0 }
  0xdb   : > { %p6463_p8 = por %p6462_p7, %p6461_p4 }
  0xdc   : > { %p6457_p3 = pneg %p6456_p2 }
  0xde   : > { %p6464_p11 = pnand %p6463_p8, %p6457_p3 }
  0xe0   : > { %6467 = shalt.err (!%p6464_p11)
}
  0xe1   : > { %5950 = dma.hbm_to_vmem [thread:$0]  (!%p7236_p12), %s8306_s15, 16, %s825_s25, [#allocation21]  }
  0xe2   : > { %s8307_s17 = sld [smem:[#allocation75_spill]] }
  0xe8   : > { %s6468_s11 = scalar_lea.hbm %s8307_s17, 32 }
  0xe9   : > { %p6469_p5 = scmp.ne.s32.totalorder %s8307_s17, %s6468_s11  ;;  %p6475_p10 = scmp.lt.u32.totalorder %s6468_s11, %s8307_s17 }
  0xeb   : > { %p6471_p6 = pnand %p6469_p5, %p7248_p0 }
  0xed   : > { %p6472_p9 = pneg %p6471_p6 }
  0xef   : > { %p6477_p13 = pnand %p6475_p10, %p6472_p9 }
  0xf1   : > { %6480 = shalt.err (!%p6477_p13)
}
  0xf2   : > { %s6481_s27 = scalar_lea.vmem %s849_s4, 32  ;;  %p6489_p4 = scmp.lt.s32.totalorder %s849_s4, %s849_s4 }
  0xf3   : > { %p6482_p1 = scmp.ne.s32.totalorder %s849_s4, %s6481_s27  ;;  %p6490_p7 = scmp.lt.s32.totalorder %s6481_s27, %s6481_s27 }
  0xf5   : > { %p6484_p2 = pnand %p6482_p1, %p7248_p0  ;;  %p6491_p8 = por %p6490_p7, %p6489_p4 }
  0xf7   : > { %p6485_p3 = pneg %p6484_p2 }
  0xf9   : > { %p6492_p11 = pnand %p6491_p8, %p6485_p3 }
  0xfb   : > { %6495 = shalt.err (!%p6492_p11)
}
  0xfc   : > { %5956 = dma.hbm_to_vmem [thread:$0]  (!%p7236_p12), %s8307_s17, 32, %s849_s4, [#allocation24]  }
  0xfd   : > { %s7013_s3 = smov [#allocation26]   ;;  %s7014_s22 = smov [#allocation29]  }
  0xfe   : > { %s873_s6 = sshll.u32 %s7013_s3, 4  ;;  %s898_s28 = sshll.u32 %s7014_s22, 4  ;;  %s874_s6 = int_to_ptr.vmem [resolvable:$true] %s873_s6  ;;  %s899_s28 = int_to_ptr.vmem [resolvable:$true] %s898_s28 }
  0xff   : > { %s6496_s7 = scalar_lea.hbm %s8214_s20, 16 }
 0x100   : > { %p6497_p5 = scmp.ne.s32.totalorder %s8214_s20, %s6496_s7  ;;  %p6503_p10 = scmp.lt.u32.totalorder %s6496_s7, %s8214_s20 }
 0x102   : > { %p6499_p6 = pnand %p6497_p5, %p7248_p0 }
 0x104   : > { %p6500_p9 = pneg %p6499_p6 }
 0x106   : > { %p6505_p13 = pnand %p6503_p10, %p6500_p9 }
 0x108   : > { %6508 = shalt.err (!%p6505_p13)
}
 0x109   : > { %s6509_s4 = scalar_lea.vmem %s874_s6, 16  ;;  %s6516_s25 = scalar_lea.vmem %s874_s6, 32 }
 0x10a   : > { %p6510_p1 = scmp.ne.s32.totalorder %s874_s6, %s6509_s4  ;;  %p6517_p4 = scmp.lt.s32.totalorder %s874_s6, %s874_s6 }
 0x10b   : > { %p6518_p7 = scmp.lt.s32.totalorder %s6516_s25, %s6509_s4 }
 0x10c   : > { %p6512_p2 = pnand %p6510_p1, %p7248_p0 }
 0x10d   : > { %p6519_p8 = por %p6518_p7, %p6517_p4 }
 0x10e   : > { %p6513_p3 = pneg %p6512_p2 }
 0x110   : > { %p6520_p11 = pnand %p6519_p8, %p6513_p3 }
 0x112   : > { %6523 = shalt.err (!%p6520_p11)
}
 0x113   : > { %5962 = dma.hbm_to_vmem [thread:$0]  (!%p7236_p12), %s8214_s20, 16, %s874_s6, [#allocation27]  }
 0x114   : > { %s6524_s11 = scalar_lea.hbm %s8217_s23, 16 }
 0x115   : > { %p6525_p5 = scmp.ne.s32.totalorder %s8217_s23, %s6524_s11  ;;  %p6531_p10 = scmp.lt.u32.totalorder %s6524_s11, %s8217_s23 }
 0x117   : > { %p6527_p6 = pnand %p6525_p5, %p7248_p0 }
 0x119   : > { %p6528_p9 = pneg %p6527_p6 }
 0x11b   : > { %p6533_p13 = pnand %p6531_p10, %p6528_p9 }
 0x11d   : > { %6536 = shalt.err (!%p6533_p13)
}
 0x11e   : > { %s6537_s27 = scalar_lea.vmem %s899_s28, 16  ;;  %s6544_s6 = scalar_lea.vmem %s899_s28, 32 }
 0x11f   : > { %p6538_p1 = scmp.ne.s32.totalorder %s899_s28, %s6537_s27  ;;  %p6545_p4 = scmp.lt.s32.totalorder %s899_s28, %s899_s28 }
 0x120   : > { %p6546_p7 = scmp.lt.s32.totalorder %s6544_s6, %s6537_s27 }
 0x121   : > { %p6540_p2 = pnand %p6538_p1, %p7248_p0 }
 0x122   : > { %p6547_p8 = por %p6546_p7, %p6545_p4 }
 0x123   : > { %p6541_p3 = pneg %p6540_p2 }
 0x125   : > { %p6548_p11 = pnand %p6547_p8, %p6541_p3 }
 0x127   : > { %6551 = shalt.err (!%p6548_p11)
}
 0x128   : > { %5968 = dma.hbm_to_vmem [thread:$0]  (!%p7236_p12), %s8217_s23, 16, %s899_s28, [#allocation30]  }
 0x129   : > { %s7015_s0 = smov [#allocation2]   ;;  %s7016_s22 = smov [#allocation7]  }
 0x12a   : > { %s678_s3 = sshll.u32 %s7015_s0, 4  ;;  %s710_s1 = sshll.u32 %s7016_s22, 4  ;;  %s679_s3 = int_to_ptr.vmem [resolvable:$true] %s678_s3  ;;  %s711_s1 = int_to_ptr.vmem [resolvable:$true] %s710_s1 }
 0x12b   : > { %s8308_s30 = sld [smem:[#allocation62_spill]] }
 0x131   : > { %s8309_s29 = smov %s8308_s30  ;;  %s6552_s8 = scalar_lea.hbm %s8308_s30, 32 }
 0x132   : > { %p6553_p5 = scmp.ne.s32.totalorder %s8309_s29, %s6552_s8  ;;  %p6559_p10 = scmp.lt.u32.totalorder %s6552_s8, %s8309_s29 }
 0x134   : > { %p6555_p6 = pnand %p6553_p5, %p7248_p0 }
 0x136   : > { %p6556_p9 = pneg %p6555_p6 }
 0x138   : > { %p6561_p13 = pnand %p6559_p10, %p6556_p9 }
 0x13a   : > { %6564 = shalt.err (!%p6561_p13)
}
 0x13b   : > { %s6565_s28 = scalar_lea.vmem %s679_s3, 32  ;;  %p6573_p4 = scmp.lt.s32.totalorder %s679_s3, %s679_s3 }
 0x13c   : > { %p6566_p1 = scmp.ne.s32.totalorder %s679_s3, %s6565_s28  ;;  %p6574_p7 = scmp.lt.s32.totalorder %s6565_s28, %s6565_s28 }
 0x13e   : > { %p6568_p2 = pnand %p6566_p1, %p7248_p0  ;;  %p6575_p8 = por %p6574_p7, %p6573_p4 }
 0x140   : > { %p6569_p3 = pneg %p6568_p2 }
 0x142   : > { %p6576_p11 = pnand %p6575_p8, %p6569_p3 }
 0x144   : > { %6579 = shalt.err (!%p6576_p11)
}
 0x145   : > { %s8310_s25 = smov 1   ;;  %s8311_s0 = smov 16  }
 0x146   : > { %5917 = dma.hbm_to_vmem [thread:$0]  (!%p7236_p12), %s8309_s29, 32, %s679_s3, [#allocation3], %s8311_s0, %s8311_s0, %s8310_s25  }
 0x147   : > { %s8312_s30 = sld [smem:[#allocation66_spill]] }
 0x14d   : > { %s8313_s27 = smov %s8312_s30  ;;  %s6580_s8 = scalar_lea.hbm %s8312_s30, 32 }
 0x14e   : > { %p6581_p5 = scmp.ne.s32.totalorder %s8313_s27, %s6580_s8  ;;  %p6587_p10 = scmp.lt.u32.totalorder %s6580_s8, %s8313_s27 }
 0x150   : > { %p6583_p6 = pnand %p6581_p5, %p7248_p0 }
 0x152   : > { %p6584_p9 = pneg %p6583_p6 }
 0x154   : > { %p6589_p13 = pnand %p6587_p10, %p6584_p9 }
 0x156   : > { %6592 = shalt.err (!%p6589_p13)
}
 0x157   : > { %s6593_s10 = scalar_lea.vmem %s711_s1, 32  ;;  %p6601_p4 = scmp.lt.s32.totalorder %s711_s1, %s711_s1 }
 0x158   : > { %p6594_p1 = scmp.ne.s32.totalorder %s711_s1, %s6593_s10  ;;  %p6602_p7 = scmp.lt.s32.totalorder %s6593_s10, %s6593_s10 }
 0x15a   : > { %p6596_p2 = pnand %p6594_p1, %p7248_p0  ;;  %p6603_p8 = por %p6602_p7, %p6601_p4 }
 0x15c   : > { %p6597_p3 = pneg %p6596_p2 }
 0x15e   : > { %p6604_p11 = pnand %p6603_p8, %p6597_p3 }
 0x160   : > { %6607 = shalt.err (!%p6604_p11)
}
 0x161   : > { %5923 = dma.hbm_to_vmem [thread:$0]  (!%p7236_p12), %s8313_s27, 32, %s711_s1, [#allocation6], %s8311_s0, %s8311_s0, %s8310_s25  }
 0x162   : > { %s7017_s22 = smov [#allocation10]   ;;  %s7018_s7 = smov [#allocation13]  }
 0x163   : > { %s736_s11 = sshll.u32 %s7017_s22, 4  ;;  %s762_s30 = sshll.u32 %s7018_s7, 4  ;;  %s737_s11 = int_to_ptr.vmem [resolvable:$true] %s736_s11  ;;  %s763_s30 = int_to_ptr.vmem [resolvable:$true] %s762_s30 }
 0x164   : > { %s8314_s4 = sld [smem:[#allocation68_spill]] }
 0x16a   : > { %s8315_s28 = smov %s8314_s4  ;;  %s6608_s10 = scalar_lea.hbm %s8314_s4, 32 }
 0x16b   : > { %p6609_p5 = scmp.ne.s32.totalorder %s8315_s28, %s6608_s10  ;;  %p6615_p10 = scmp.lt.u32.totalorder %s6608_s10, %s8315_s28 }
 0x16d   : > { %p6611_p6 = pnand %p6609_p5, %p7248_p0 }
 0x16f   : > { %p6612_p9 = pneg %p6611_p6 }
 0x171   : > { %p6617_p13 = pnand %p6615_p10, %p6612_p9 }
 0x173   : > { %6620 = shalt.err (!%p6617_p13)
}
 0x174   : > { %s6621_s1 = scalar_lea.vmem %s737_s11, 32  ;;  %p6629_p4 = scmp.lt.s32.totalorder %s737_s11, %s737_s11 }
 0x175   : > { %p6622_p1 = scmp.ne.s32.totalorder %s737_s11, %s6621_s1  ;;  %p6630_p7 = scmp.lt.s32.totalorder %s6621_s1, %s6621_s1 }
 0x177   : > { %p6624_p2 = pnand %p6622_p1, %p7248_p0  ;;  %p6631_p8 = por %p6630_p7, %p6629_p4 }
 0x179   : > { %p6625_p3 = pneg %p6624_p2 }
 0x17b   : > { %p6632_p11 = pnand %p6631_p8, %p6625_p3 }
 0x17d   : > { %6635 = shalt.err (!%p6632_p11)
}
 0x17e   : > { %5929 = dma.hbm_to_vmem [thread:$0]  (!%p7236_p12), %s8315_s28, 32, %s737_s11, [#allocation9], %s8311_s0, %s8311_s0, %s8310_s25  }
 0x17f   : > { %s8316_s22 = sld [smem:[#allocation70_spill]] }
 0x185   : > { %s6636_s7 = scalar_lea.hbm %s8316_s22, 32 }
 0x186   : > { %p6637_p5 = scmp.ne.s32.totalorder %s8316_s22, %s6636_s7  ;;  %p6643_p10 = scmp.lt.u32.totalorder %s6636_s7, %s8316_s22 }
 0x188   : > { %p6639_p6 = pnand %p6637_p5, %p7248_p0 }
 0x18a   : > { %p6640_p9 = pneg %p6639_p6 }
 0x18c   : > { %p6645_p13 = pnand %p6643_p10, %p6640_p9 }
 0x18e   : > { %6648 = shalt.err (!%p6645_p13)
}
 0x18f   : > { %s6649_s9 = scalar_lea.vmem %s763_s30, 32  ;;  %p6657_p4 = scmp.lt.s32.totalorder %s763_s30, %s763_s30 }
 0x190   : > { %p6650_p1 = scmp.ne.s32.totalorder %s763_s30, %s6649_s9  ;;  %p6658_p7 = scmp.lt.s32.totalorder %s6649_s9, %s6649_s9 }
 0x192   : > { %p6652_p2 = pnand %p6650_p1, %p7248_p0  ;;  %p6659_p8 = por %p6658_p7, %p6657_p4 }
 0x194   : > { %p6653_p3 = pneg %p6652_p2 }
 0x196   : > { %p6660_p11 = pnand %p6659_p8, %p6653_p3 }
 0x198   : > { %6663 = shalt.err (!%p6660_p11)
}
 0x199   : > { %5935 = dma.hbm_to_vmem [thread:$0]  (!%p7236_p12), %s8316_s22, 32, %s763_s30, [#allocation12], %s8311_s0, %s8311_s0, %s8310_s25  }
 0x19a   : > { %s7019_s13 = smov [#allocation16]   ;;  %s7020_s17 = smov [#allocation19]  }
 0x19b   : > { %s788_s15 = sshll.u32 %s7019_s13, 4  ;;  %s813_s3 = sshll.u32 %s7020_s17, 4  ;;  %s789_s15 = int_to_ptr.vmem [resolvable:$true] %s788_s15  ;;  %s814_s3 = int_to_ptr.vmem [resolvable:$true] %s813_s3 }
 0x19c   : > { %s8317_s12 = sld [smem:[#allocation72_spill]] }
 0x1a2   : > { %s6664_s6 = scalar_lea.hbm %s8317_s12, 32 }
 0x1a3   : > { %p6665_p5 = scmp.ne.s32.totalorder %s8317_s12, %s6664_s6  ;;  %p6671_p10 = scmp.lt.u32.totalorder %s6664_s6, %s8317_s12 }
 0x1a5   : > { %p6667_p6 = pnand %p6665_p5, %p7248_p0 }
 0x1a7   : > { %p6668_p9 = pneg %p6667_p6 }
 0x1a9   : > { %p6673_p13 = pnand %p6671_p10, %p6668_p9 }
 0x1ab   : > { %6676 = shalt.err (!%p6673_p13)
}
 0x1ac   : > { %s6677_s30 = scalar_lea.vmem %s789_s15, 32  ;;  %p6685_p4 = scmp.lt.s32.totalorder %s789_s15, %s789_s15 }
 0x1ad   : > { %p6678_p1 = scmp.ne.s32.totalorder %s789_s15, %s6677_s30  ;;  %p6686_p7 = scmp.lt.s32.totalorder %s6677_s30, %s6677_s30 }
 0x1af   : > { %p6680_p2 = pnand %p6678_p1, %p7248_p0  ;;  %p6687_p8 = por %p6686_p7, %p6685_p4 }
 0x1b1   : > { %p6681_p3 = pneg %p6680_p2 }
 0x1b3   : > { %p6688_p11 = pnand %p6687_p8, %p6681_p3 }
 0x1b5   : > { %6691 = shalt.err (!%p6688_p11)
}
 0x1b6   : > { %5941 = dma.hbm_to_vmem [thread:$0]  (!%p7236_p12), %s8317_s12, 32, %s789_s15, [#allocation15], %s8311_s0, %s8311_s0, %s8310_s25  }
 0x1b7   : > { %s6692_s8 = scalar_lea.hbm %s8208_s14, 16 }
 0x1b8   : > { %p6693_p5 = scmp.ne.s32.totalorder %s8208_s14, %s6692_s8  ;;  %p6699_p10 = scmp.lt.u32.totalorder %s6692_s8, %s8208_s14 }
 0x1ba   : > { %p6695_p6 = pnand %p6693_p5, %p7248_p0 }
 0x1bc   : > { %p6696_p9 = pneg %p6695_p6 }
 0x1be   : > { %p6701_p13 = pnand %p6699_p10, %p6696_p9 }
 0x1c0   : > { %6704 = shalt.err (!%p6701_p13)
}
 0x1c1   : > { %s6705_s11 = scalar_lea.vmem %s814_s3, 16  ;;  %s6712_s25 = scalar_lea.vmem %s814_s3, 32 }
 0x1c2   : > { %p6706_p1 = scmp.ne.s32.totalorder %s814_s3, %s6705_s11  ;;  %p6713_p4 = scmp.lt.s32.totalorder %s814_s3, %s814_s3 }
 0x1c3   : > { %p6714_p7 = scmp.lt.s32.totalorder %s6712_s25, %s6705_s11 }
 0x1c4   : > { %p6708_p2 = pnand %p6706_p1, %p7248_p0 }
 0x1c5   : > { %p6715_p8 = por %p6714_p7, %p6713_p4 }
 0x1c6   : > { %p6709_p3 = pneg %p6708_p2 }
 0x1c8   : > { %p6716_p11 = pnand %p6715_p8, %p6709_p3 }
 0x1ca   : > { %6719 = shalt.err (!%p6716_p11)
}
 0x1cb   : > { %5947 = dma.hbm_to_vmem [thread:$0]  (!%p7236_p12), %s8208_s14, 16, %s814_s3, [#allocation18]  }
 0x1cc   : > { %s7021_s30 = smov [#allocation22]   ;;  %s6720_s7 = scalar_lea.hbm %s8210_s16, 2048 }
 0x1cd   : > { %s834_s1 = sshll.u32 %s7021_s30, 4  ;;  %p6721_p5 = scmp.ne.s32.totalorder %s8210_s16, %s6720_s7  ;;  %s835_s1 = int_to_ptr.vmem [resolvable:$true] %s834_s1 }
 0x1ce   : > { %p6727_p10 = scmp.lt.u32.totalorder %s6720_s7, %s8210_s16 }
 0x1cf   : > { %p6723_p6 = pnand %p6721_p5, %p7248_p0 }
 0x1d1   : > { %p6724_p9 = pneg %p6723_p6 }
 0x1d3   : > { %p6729_p13 = pnand %p6727_p10, %p6724_p9 }
 0x1d5   : > { %6732 = shalt.err (!%p6729_p13)
}
 0x1d6   : > { %s6733_s3 = scalar_lea.vmem %s835_s1, 2048  ;;  %p6741_p4 = scmp.lt.s32.totalorder %s835_s1, %s835_s1 }
 0x1d7   : > { %p6734_p1 = scmp.ne.s32.totalorder %s835_s1, %s6733_s3  ;;  %p6742_p7 = scmp.lt.s32.totalorder %s6733_s3, %s6733_s3 }
 0x1d9   : > { %p6736_p2 = pnand %p6734_p1, %p7248_p0  ;;  %p6743_p8 = por %p6742_p7, %p6741_p4 }
 0x1db   : > { %p6737_p3 = pneg %p6736_p2 }
 0x1dd   : > { %p6744_p11 = pnand %p6743_p8, %p6737_p3 }
 0x1df   : > { %6747 = shalt.err (!%p6744_p11)
}
 0x1e0   : > { %s7022_s9 = smov 128   ;;  %s7023_s11 = smov 8  }
 0x1e1   : > { %5953 = dma.hbm_to_vmem [thread:$0]  (!%p7236_p12), %s8210_s16, 2048, %s835_s1, [#allocation21], %s7022_s9, %s7022_s9, %s7023_s11  }
 0x1e2   : > { %s7024_s15 = smov [#allocation25]   ;;  %s7025_s13 = smov [#allocation28]  }
 0x1e3   : > { %s862_s30 = sshll.u32 %s7024_s15, 4  ;;  %s884_s17 = sshll.u32 %s7025_s13, 4  ;;  %s863_s30 = int_to_ptr.vmem [resolvable:$true] %s862_s30  ;;  %s7558_s17 = int_to_ptr.vmem [resolvable:$true] %s884_s17 }
 0x1e4   : > { %s6748_s6 = scalar_lea.hbm %s8213_s19, 16 }
 0x1e5   : > { %p6749_p5 = scmp.ne.s32.totalorder %s8213_s19, %s6748_s6  ;;  %p6755_p10 = scmp.lt.u32.totalorder %s6748_s6, %s8213_s19 }
 0x1e7   : > { %p6751_p6 = pnand %p6749_p5, %p7248_p0 }
 0x1e9   : > { %p6752_p9 = pneg %p6751_p6 }
 0x1eb   : > { %p6757_p13 = pnand %p6755_p10, %p6752_p9 }
 0x1ed   : > { %6760 = shalt.err (!%p6757_p13)
}
 0x1ee   : > { %s6761_s9 = scalar_lea.vmem %s863_s30, 16  ;;  %s6768_s11 = scalar_lea.vmem %s863_s30, 32 }
 0x1ef   : > { %p6762_p1 = scmp.ne.s32.totalorder %s863_s30, %s6761_s9  ;;  %p6769_p4 = scmp.lt.s32.totalorder %s863_s30, %s863_s30 }
 0x1f0   : > { %p6770_p7 = scmp.lt.s32.totalorder %s6768_s11, %s6761_s9 }
 0x1f1   : > { %p6764_p2 = pnand %p6762_p1, %p7248_p0 }
 0x1f2   : > { %p6771_p8 = por %p6770_p7, %p6769_p4 }
 0x1f3   : > { %p6765_p3 = pneg %p6764_p2 }
 0x1f5   : > { %p6772_p11 = pnand %p6771_p8, %p6765_p3 }
 0x1f7   : > { %6775 = shalt.err (!%p6772_p11)
}
 0x1f8   : > { %5959 = dma.hbm_to_vmem [thread:$0]  (!%p7236_p12), %s8213_s19, 16, %s863_s30, [#allocation24]  }
 0x1f9   : > { %s6776_s7 = scalar_lea.hbm %s8215_s21, 16 }
 0x1fa   : > { %p6777_p5 = scmp.ne.s32.totalorder %s8215_s21, %s6776_s7  ;;  %p6783_p10 = scmp.lt.u32.totalorder %s6776_s7, %s8215_s21 }
 0x1fc   : > { %p6779_p6 = pnand %p6777_p5, %p7248_p0 }
 0x1fe   : > { %p6780_p9 = pneg %p6779_p6 }
 0x200   : > { %p6785_p13 = pnand %p6783_p10, %p6780_p9 }
 0x202   : > { %6788 = shalt.err (!%p6785_p13)
}
 0x203   : > { %s6789_s30 = scalar_lea.vmem %s7558_s17, 16  ;;  %s6796_s3 = scalar_lea.vmem %s7558_s17, 32 }
 0x204   : > { %p6790_p1 = scmp.ne.s32.totalorder %s7558_s17, %s6789_s30  ;;  %p6797_p4 = scmp.lt.s32.totalorder %s7558_s17, %s7558_s17 }
 0x205   : > { %p6798_p7 = scmp.lt.s32.totalorder %s6796_s3, %s6789_s30 }
 0x206   : > { %p6792_p2 = pnand %p6790_p1, %p7248_p0 }
 0x207   : > { %p6799_p8 = por %p6798_p7, %p6797_p4 }
 0x208   : > { %p6793_p3 = pneg %p6792_p2 }
 0x20a   : > { %p6800_p11 = pnand %p6799_p8, %p6793_p3 }
 0x20c   : > { %6803 = shalt.err (!%p6800_p11)
}
 0x20d   : > { %5965 = dma.hbm_to_vmem [thread:$0]  (!%p7236_p12), %s8215_s21, 16, %s7558_s17, [#allocation27]  }
 0x20e   : > { %s7026_s11 = smov [#allocation31]   ;;  %s7027_s0 = smov [#allocation32]  }
 0x20f   : > { %s908_s25 = sshll.u32 %s7026_s11, 4  ;;  %s922_s15 = sshll.u32 %s7027_s0, 4  ;;  %s909_s25 = int_to_ptr.vmem [resolvable:$true] %s908_s25  ;;  %s7602_s15 = int_to_ptr.vmem [resolvable:$true] %s922_s15 }
 0x210   : > { %s6804_s8 = scalar_lea.hbm %s8218_s24, 1024 }
 0x211   : > { %p6805_p5 = scmp.ne.s32.totalorder %s8218_s24, %s6804_s8  ;;  %p6811_p10 = scmp.lt.u32.totalorder %s6804_s8, %s8218_s24 }
 0x213   : > { %p6807_p6 = pnand %p6805_p5, %p7248_p0 }
 0x215   : > { %p6808_p9 = pneg %p6807_p6 }
 0x217   : > { %p6813_p13 = pnand %p6811_p10, %p6808_p9 }
 0x219   : > { %6816 = shalt.err (!%p6813_p13)
}
 0x21a   : > { %s6817_s30 = scalar_lea.vmem %s909_s25, 1024  ;;  %p6825_p4 = scmp.lt.s32.totalorder %s909_s25, %s909_s25 }
 0x21b   : > { %p6818_p1 = scmp.ne.s32.totalorder %s909_s25, %s6817_s30  ;;  %p6826_p7 = scmp.lt.s32.totalorder %s6817_s30, %s6817_s30 }
 0x21d   : > { %p6820_p2 = pnand %p6818_p1, %p7248_p0  ;;  %p6827_p8 = por %p6826_p7, %p6825_p4 }
 0x21f   : > { %p6821_p3 = pneg %p6820_p2 }
 0x221   : > { %p6828_p11 = pnand %p6827_p8, %p6821_p3 }
 0x223   : > { %6831 = shalt.err (!%p6828_p11)
}
 0x224   : > { %s8318_s3 = smov 4   ;;  %s8319_s1 = smov 64  }
 0x225   : > { %5971 = dma.hbm_to_vmem [thread:$0]  (!%p7236_p12), %s8218_s24, 1024, %s909_s25, [#allocation30], %s8319_s1, %s8319_s1, %s8318_s3  }
 0x226   : > { %s8320_s7 = sld [smem:[#allocation78_spill]] }
 0x22c   : > { %s8321_s6 = smov %s8320_s7  ;;  %s6832_s8 = scalar_lea.hbm %s8320_s7, 16 }
 0x22d   : > { %p6833_p5 = scmp.ne.s32.totalorder %s8321_s6, %s6832_s8  ;;  %p6839_p10 = scmp.lt.u32.totalorder %s6832_s8, %s8321_s6 }
 0x22f   : > { %p6835_p6 = pnand %p6833_p5, %p7248_p0 }
 0x231   : > { %p6836_p9 = pneg %p6835_p6 }
 0x233   : > { %p6841_p13 = pnand %p6839_p10, %p6836_p9 }
 0x235   : > { %6844 = shalt.err (!%p6841_p13)
}
 0x236   : > { %s6845_s25 = scalar_lea.vmem %s7602_s15, 16  ;;  %s6852_s3 = scalar_lea.vmem %s7602_s15, 32 }
 0x237   : > { %p6846_p1 = scmp.ne.s32.totalorder %s7602_s15, %s6845_s25  ;;  %p6853_p4 = scmp.lt.s32.totalorder %s7602_s15, %s7602_s15 }
 0x238   : > { %p6854_p7 = scmp.lt.s32.totalorder %s6852_s3, %s6845_s25 }
 0x239   : > { %p6848_p2 = pnand %p6846_p1, %p7248_p0 }
 0x23a   : > { %p6855_p8 = por %p6854_p7, %p6853_p4 }
 0x23b   : > { %p6849_p3 = pneg %p6848_p2 }
 0x23d   : > { %p6856_p11 = pnand %p6855_p8, %p6849_p3 }
 0x23f   : > { %6859 = shalt.err (!%p6856_p11)
}
 0x240   : > { %5974 = dma.hbm_to_vmem [thread:$0]  (!%p7236_p12), %s8321_s6, 16, %s7602_s15, [#allocation33]  }
 0x241   : > { %s8322_s11 = sld [smem:[#allocation59_spill]] }
 0x247   : > { %p8323_p5 = scmp.ne.s32.totalorder %s8322_s11, 0 }
 0x248   : > { %s8324_s2 = sld [smem:[#allocation54_spill]] (!%p8323_p5) }
 0x249   : > { %942 = sbr.rel (%p8323_p5) target bundleno = 9704 (0x25e8), region = 124 }
 0x24e   : > { %p8325_p0 = scmp.eq.s32.totalorder (!%p8323_p5), %s8324_s2, 0 }
 0x250   : > { %6933 = dma.done.wait (%p8325_p0), [#allocation3], 32   ;;  %p8326_p6 = pmov %p8325_p0 }
 0x251   : > { %p8327_p9 = pmov %p8325_p0 }
 0x252   : > { %6935 = vsyncadd (%p8326_p6), [#allocation3], 4294967264 }
 0x253   : > { %6937 = dma.done.wait (%p8327_p9), [#allocation6], 6176   ;;  %p8328_p10 = pmov %p8325_p0 }
 0x254   : > { %p8329_p13 = pmov %p8325_p0 }
 0x255   : > { %6939 = vsyncadd (%p8328_p10), [#allocation6], 4294961120 }
 0x256   : > { %6941 = dma.done.wait (%p8329_p13), [#allocation9], 64   ;;  %p8330_p12 = pmov %p8325_p0 }
 0x257   : > { %p8331_p1 = pmov %p8325_p0 }
 0x258   : > { %6943 = vsyncadd (%p8330_p12), [#allocation9], 4294967232 }
 0x259   : > { %6945 = dma.done.wait (%p8331_p1), [#allocation12], 2080   ;;  %p8332_p2 = pmov %p8325_p0 }
 0x25a   : > { %p8333_p3 = pmov %p8325_p0 }
 0x25b   : > { %6947 = vsyncadd (%p8332_p2), [#allocation12], 4294965216 }
 0x25c   : > { %6949 = dma.done.wait (%p8333_p3), [#allocation15], 2080   ;;  %p8334_p4 = pmov %p8325_p0 }
 0x25d   : > { %p8335_p7 = pmov %p8325_p0 }
 0x25e   : > { %6951 = vsyncadd (%p8334_p4), [#allocation15], 4294965216 }
 0x25f   : > { %6953 = dma.done.wait (%p8335_p7), [#allocation18], 32   ;;  %p8336_p8 = pmov %p8325_p0 }
 0x260   : > { %p8337_p11 = pmov %p8325_p0 }
 0x261   : > { %6955 = vsyncadd (%p8336_p8), [#allocation18], 4294967264 }
 0x262   : > { %6957 = dma.done.wait (%p8337_p11), [#allocation21], 2064   ;;  %p8338_p5 = pmov %p8325_p0 }
 0x264   : > { %6959 = vsyncadd (%p8338_p5), [#allocation21], 4294965232 }
 0x265   : > { %6961 = dma.done.wait (%p8325_p0), [#allocation24], 48   ;;  %p8339_p6 = pmov %p8325_p0 }
 0x266   : > { %p8340_p9 = pmov %p8325_p0 }
 0x267   : > { %6963 = vsyncadd (%p8339_p6), [#allocation24], 4294967248 }
 0x268   : > { %6965 = dma.done.wait (%p8340_p9), [#allocation27], 32   ;;  %p8341_p10 = pmov %p8325_p0 }
 0x269   : > { %p8342_p13 = pmov %p8325_p0 }
 0x26a   : > { %6967 = vsyncadd (%p8341_p10), [#allocation27], 4294967264 }
 0x26b   : > { %6969 = dma.done.wait (%p8342_p13), [#allocation30], 1040   ;;  %p8343_p12 = pmov %p8325_p0 }
 0x26c   : > { %p8344_p1 = pmov %p8325_p0 }
 0x26d   : > { %6971 = vsyncadd (%p8343_p12), [#allocation30], 4294966256 }
 0x26e   : > { %6973 = dma.done.wait (%p8344_p1), [#allocation33], 16   ;;  %p8345_p2 = pmov %p8325_p0 }
 0x26f   : > { %p1093_p3 = scmp.lt.s32.totalorder %s8324_s2, 1  ;;  %s8346_s7 = sld [smem:[#allocation60_spill]]  ;;  %v7028_v1 = vmov 0.0   ;;  %v6092_v2 = vld [vmem:[#allocation5 + $0x4] ss:$12 sps:$4 sm:$0xff]   ;;  %v1098_v9 = vlaneseq  ;;  %v7029_v29 = vmov 0  }
 0x270   : > { %6975 = vsyncadd (%p8345_p2), [#allocation33], 4294967280  ;;  %5526 = vmatprep.subr.bf16.mxu1 %v7028_v1  ;;  %v6094_v3 = vld [vmem:[#allocation5] ss:$12 sps:$4 sm:$0xff]   ;;  %v6095_v4 = vld [vmem:[#allocation5 + $0x8] ss:$12 sps:$4 sm:$0xff]   ;;  %1310 = vmatprep.subr.bf16.mxu0 %v6092_v2 }
 0x271   : > { %s1094_s5 = scalar_select %p1093_p3, %s8324_s2, 1  ;;  %v6096_v5 = vld [vmem:[#allocation5 + $0x1c] ss:$12 sps:$4 sm:$0xff]   ;;  %v6098_v6 = vld [vmem:[#allocation5 + $0x18] ss:$12 sps:$4 sm:$0xff]   ;;  %5527 = vmatpush3.bf16.msra.mxu1 %v6095_v4  ;;  %1311 = vmatpush1.bf16.msra.mxu0 %v6094_v3  ;;  %v1099_v10 = vand.u32 127, %v1098_v9 }
 0x272   : > { %v6099_v7 = vld [vmem:[#allocation5 + $0x20] ss:$12 sps:$4 sm:$0xff]   ;;  %5528 = vmatprep.subr.bf16.mxu1 %v7028_v1  ;;  %1312 = vmatprep.subr.bf16.mxu0 %v6096_v5  ;;  %v6102_v17 = vld [vmem:[#allocation5 + $0x30] ss:$12 sps:$4 sm:$0xff]   ;;  %v6103_v18 = vld [vmem:[#allocation5 + $0x38] ss:$12 sps:$4 sm:$0xff]  }
 0x273   : > { %s5211_s15 = sshll.u32 %s1094_s5, 3  ;;  %v6100_v8 = vld [vmem:[#allocation5 + $0x34] ss:$12 sps:$4 sm:$0xff]   ;;  %vm1100_vm0 = vcmp.lt.s32.totalorder %v1099_v10, 32  ;;  %v6104_v19 = vld [vmem:[#allocation5 + $0x4c] ss:$12 sps:$4 sm:$0xff]   ;;  %1342 = vmatprep.mubr.bf16.mxu0 %v7029_v29 }
 0x274   : > { %v7708_v13 = vsel %vm1100_vm0, 1.0, %v7028_v1  ;;  %v6106_v20 = vld [vmem:[#allocation5 + $0x48] ss:$12 sps:$4 sm:$0xff]   ;;  %v6107_v21 = vld [vmem:[#allocation5 + $0x50] ss:$12 sps:$4 sm:$0xff]   ;;  %vm7030_vm1 = vmmov 0  }
 0x275   : > { %s1096_s8 = scalar_lea.vmem %s8346_s7, %s5211_s15  ;;  %5529 = vmatpush3.bf16.msra.mxu1 %v6099_v7  ;;  %1313 = vmatpush1.bf16.msra.mxu0 %v6098_v6  ;;  %v6108_v22 = vld [vmem:[#allocation5 + $0x64] ss:$12 sps:$4 sm:$0xff]   ;;  %v6110_v23 = vld [vmem:[#allocation5 + $0x60] ss:$12 sps:$4 sm:$0xff]   ;;  %v6111_v24 = vld [vmem:[#allocation5 + $0x68] ss:$12 sps:$4 sm:$0xff]  }
 0x276   : > { %v7700_v0 = vld [vmem:[%s1096_s8] sm:$0xff]  ;;  %5530 = vmatprep.subr.bf16.mxu1 %v7028_v1  ;;  %1314 = vmatprep.subr.bf16.mxu0 %v6100_v8  ;;  %v6120_v32 = vld [vmem:[#allocation5 + $0xac] ss:$12 sps:$4 sm:$0xff]   ;;  %v6122_v33 = vld [vmem:[#allocation5 + $0xa8] ss:$12 sps:$4 sm:$0xff]   ;;  %s8347_s17 = sld [smem:[#allocation61_spill]] }
 0x277   : > { %1106 = vadd.xlane.f32.xlu0 %v7700_v0  ;;  %v6112_v25 = vld [vmem:[#allocation5 + $0x7c] ss:$12 sps:$4 sm:$0xff]   ;;  %v6114_v26 = vld [vmem:[#allocation5 + $0x78] ss:$12 sps:$4 sm:$0xff]   ;;  %v6115_v27 = vld [vmem:[#allocation5 + $0x80] ss:$12 sps:$4 sm:$0xff]   ;;  %5542 = vmatprep.mubr.msk.bf16.mxu1 %vm7030_vm1, %v7028_v1 }
 0x278   : > { %v6116_v28 = vld [vmem:[#allocation5 + $0x94] ss:$12 sps:$4 sm:$0xff]   ;;  %v6118_v30 = vld [vmem:[#allocation5 + $0x90] ss:$12 sps:$4 sm:$0xff]   ;;  %v6119_v31 = vld [vmem:[#allocation5 + $0x98] ss:$12 sps:$4 sm:$0xff]  }
 0x279   : > { %1315 = vmatpush1.bf16.msra.mxu0 %v6102_v17  ;;  %5531 = vmatpush3.bf16.msra.mxu1 %v6103_v18  ;;  %v6123_v34 = vld [vmem:[#allocation5 + $0xb0] ss:$12 sps:$4 sm:$0xff]   ;;  %v7730_v45 = vshrl.u32 %v1098_v9, 7  ;;  %s8348_s3 = sld [smem:[#allocation64_spill]]  ;;  %vm1396_vm2 = vcmask 64512   ;;  %s7031_s1 = smov 120  }
 0x27a   : > { %5532 = vmatprep.subr.bf16.mxu1 %v7028_v1  ;;  %1316 = vmatprep.subr.bf16.mxu0 %v6104_v19  ;;  %v5214_v41 = vld [vmem:[#allocation2] ss:$0 sm:$0xff]  ;;  %s7032_s9 = smov 112   ;;  %s7033_s11 = smov 104   ;;  %vm2066_vm3 = vcmask 130048   ;;  %vm2068_vm4 = vcmask 195584  }
 0x27b   : > { %v7733_v46 = vsub.s32 0, %v7730_v45  ;;  %v7739_v48 = vsub.s32 1, %v7730_v45  ;;  %v1177_v50 = vsub.s32 2, %v7730_v45  ;;  %s8349_s0 = sld [smem:[#allocation65_spill]]  ;;  %s7034_s13 = smov 8   ;;  %vm2089_vm5 = vcmask 261120  }
 0x27c   : > { %v5213_v39 = vld [vmem:[%s8347_s17] ss:$0 sm:$0xff]  ;;  %s7035_s7 = smov 16   ;;  %s7036_s10 = smov 24   ;;  %vm3957_vm6 = vcmask 57344   ;;  %vm4615_vm7 = vcmask 1040384  }
 0x27d   : > { %1317 = vmatpush1.bf16.msra.mxu0 %v6106_v20  ;;  %5533 = vmatpush3.bf16.msra.mxu1 %v6107_v21  ;;  %s8350_s5 = sld [smem:[#allocation51_spill]]  ;;  %s8352_s25 = sld [smem:[#allocation77_spill]] }
 0x27e   : > { %5534 = vmatprep.subr.bf16.mxu1 %v7028_v1  ;;  %1318 = vmatprep.subr.bf16.mxu0 %v6108_v22  ;;  %s5393_s30 = sshll.u32 %s8324_s2, 7 }
 0x27f   : > { %v1164_v47 = vld [vmem:[%s8348_s3] sm:$0x7] }
 0x280   : > { %v1170_v49 = vrot.slane %v1164_v47, %v7733_v46  ;;  %v1174_v51 = vrot.slane %v1164_v47, %v7739_v48  ;;  %v1178_v57 = vrot.slane %v1164_v47, %v1177_v50 }
 0x281   : > { %1319 = vmatpush1.bf16.msra.mxu0 %v6110_v23  ;;  %5535 = vmatpush3.bf16.msra.mxu1 %v6111_v24 }
 0x282   : > { %1320 = vmatprep.subr.bf16.mxu0 %v6112_v25  ;;  %5536 = vmatprep.subr.bf16.mxu1 %v7028_v1 }
 0x283   : > { %s7979_s15 = sand.u32 1, %s8350_s5  }
 0x284   : > { %s5210_s8 = sshll.u32 %s7979_s15, 3 }
 0x285   : > { %1321 = vmatpush1.bf16.msra.mxu0 %v6114_v26  ;;  %5537 = vmatpush3.bf16.msra.mxu1 %v6115_v27  ;;  %s7982_s4 = scalar_lea.vmem [#allocation34], %s5210_s8 }
 0x286   : > { %1322 = vmatprep.subr.bf16.mxu0 %v6116_v28  ;;  %5538 = vmatprep.subr.bf16.mxu1 %v7028_v1 }
 0x289   : > { %1323 = vmatpush1.bf16.msra.mxu0 %v6118_v30  ;;  %5539 = vmatpush3.bf16.msra.mxu1 %v6119_v31 }
 0x28a   : > { %1324 = vmatprep.subr.bf16.mxu0 %v6120_v32  ;;  %5540 = vmatprep.subr.bf16.mxu1 %v7028_v1 }
 0x28d   : > { %1325 = vmatpush1.bf16.msra.mxu0 %v6122_v33  ;;  %5541 = vmatpush3.bf16.msra.mxu1 %v6123_v34 }
 0x28e   : > { %5546 = vmatprep.subr.mxu1 %v7028_v1  ;;  %5556 = vmatprep.subr.mxu0 %v7028_v1 }
 0x304   : > { %v1107_v11 = vpop.xlane.xlu0 %1106 }
 0x305   : > { %v1108_v12 = vmul.f32 0.03125, %v1107_v11 }
 0x307   : > { %v1109_v14 = vsub.f32 %v7700_v0, %v1108_v12 }
 0x309   : > { %v1110_v15 = vmul.f32 %v7708_v13, %v1109_v14 }
 0x30b   : > { %v1111_v16 = vmul.f32 %v1110_v15, %v1110_v15 }
 0x30d   : > { %1112 = vadd.xlane.f32.xlu0 %v1111_v16 }
 0x39a   : > { %v1113_v35 = vpop.xlane.xlu0 %1112 }
 0x39b   : > { %v1114_v36 = vmul.f32 0.03125, %v1113_v35 }
 0x39d   : > { %v1115_v37 = vadd.f32 1e-06, %v1114_v36 }
 0x39f   : > { %6234 = vrsqrt.f32 %v1115_v37 }
 0x3a9   : > { %v6235_v38 = vpop.eup %6234 }
 0x3aa   : > { %v1117_v40 = vmul.f32 %v6235_v38, %v1110_v15 }
 0x3ac   : > { %v1124_v42 = vmul.f32 %v5213_v39, %v1117_v40 }
 0x3ae   : > { %v1131_v43 = vadd.f32 %v5214_v41, %v1124_v42 }
 0x3b0   : > { %v1165_v44 = vpack.c.bf16 %v1131_v43, %v1131_v43 }
 0x3b2   : > { %1343 = vmatmul.mubr.bf16.vlgmr.msra.gmra.mrb[0].mxu0 %v1165_v44  ;;  %5543 = vmatmul.mubr.bf16.vlgmr.msra.gmra.mrb[0].mxu1 %v1165_v44 }
 0x3b3   : > { %5548 = vmatprep.mubr.msk.f32.mxu1 %vm7030_vm1, %v7028_v1  ;;  %5558 = vmatprep.mubr.msk.f32.mxu0 %vm7030_vm1, %v7028_v1 }
 0x485   : > { %v1344_v52 = vpop.f32.mrb[0].mxu0  ;;  %v1385_v53 = vpop.f32.mrb[0].mxu1 }
 0x486   : > { %v1345_v54 = vadd.f32 %v1344_v52, %v1170_v49  ;;  %v1346_v55 = vpop.f32.mrb[1].mxu0  ;;  %v5544_v56 = vpop.f32.mrb[1].mxu1  ;;  %v7750_v63 = vadd.f32 %v1385_v53, %v1178_v57 }
 0x487   : > { %v1347_v58 = vadd.f32 %v1346_v55, %v1174_v51  ;;  %v1348_v59 = vpop.f32.mrb[2].mxu0  ;;  %v1388_v60 = vpop.f32.mrb[2].mxu1 }
 0x488   : > { %v1349_v61 = vpop.f32.mrb[3].mxu0  ;;  %v5545_v62 = vpop.f32.mrb[3].mxu1  ;;  %1557 = vrot.lane.b32.xlu1 %v1345_v54, %s7031_s1 }
 0x489   : > { %1725 = vrot.lane.b32.xlu0 %v1347_v58, %s7032_s9  ;;  %5547 = vmatpush3.xpose.msk.msra.mxu1 %vm1396_vm2, %v1347_v58 }
 0x48a   : > { %5551 = vmatprep.subr.mxu1 %v7028_v1 }
 0x48c   : > { %1559 = vrot.lane.b32.xlu1 %v1347_v58, %s7031_s1  ;;  %5549 = vmatmul.mubr.msk.f32.vlgmr.msra.gmra.mrb[4].mxu1 %vm1396_vm2, %v1345_v54 }
 0x48d   : > { %5552 = vmatpush3.msra.mxu1 %v7750_v63  ;;  %5553 = vmatprep.mubr.msk.f32.mxu1 %vm7030_vm1, %v7028_v1 }
 0x48e   : > { %5561 = vmatprep.subr.mxu1 %v7028_v1 }
 0x490   : > { %1723 = vrot.lane.b32.xlu1 %v1345_v54, %s7032_s9 }
 0x494   : > { %1890 = vrot.lane.b32.xlu1 %v1347_v58, %s7033_s11 }
 0x498   : > { %1888 = vrot.lane.b32.xlu1 %v1345_v54, %s7033_s11 }
 0x4fa   : > { %v1558_v2 = vpop.permute.xlu1 %1557 }
 0x4fb   : > { %v1726_v4 = vpop.permute.xlu0 %1725 }
 0x4fe   : > { %v1560_v3 = vpop.permute.xlu1 %1559 }
 0x4ff   : > { %5557 = vmatpush3.xpose.msk.msra.mxu0 %vm1396_vm2, %v1560_v3 }
 0x500   : > { %5566 = vmatprep.subr.mxu0 %v7028_v1 }
 0x502   : > { %5559 = vmatmul.mubr.msk.f32.vlgmr.msra.gmra.mrb[4].mxu0 %vm1396_vm2, %v1558_v2  ;;  %v1724_v5 = vpop.permute.xlu1 %1723 }
 0x503   : > { %5567 = vmatpush3.xpose.msk.msra.mxu0 %vm1396_vm2, %v1726_v4  ;;  %5568 = vmatprep.mubr.msk.f32.mxu0 %vm7030_vm1, %v7028_v1 }
 0x504   : > { %5576 = vmatprep.subr.mxu0 %v7028_v1 }
 0x506   : > { %5569 = vmatmul.mubr.msk.f32.vlgmr.msra.gmra.mrb[6].mxu0 %vm1396_vm2, %v1724_v5  ;;  %v1891_v6 = vpop.permute.xlu1 %1890 }
 0x507   : > { %5577 = vmatpush3.xpose.msk.msra.mxu0 %vm1396_vm2, %v1891_v6  ;;  %5578 = vmatprep.mubr.msk.f32.mxu0 %vm7030_vm1, %v7028_v1  ;;  %v6125_v6 = vld [vmem:[%s8349_s0 + $0x8] sm:$0xff]  }
 0x508   : > { %5586 = vmatprep.subr.bf16.mxu0 %v7028_v1 }
 0x50a   : > { %v1889_v7 = vpop.permute.xlu1 %1888 }
 0x50b   : > { %5579 = vmatmul.mubr.msk.f32.vlgmr.msra.gmra.mrb[8].mxu0 %vm1396_vm2, %v1889_v7 }
 0x50c   : > { %5590 = vmatprep.mubr.msk.bf16.mxu0 %vm7030_vm1, %v7028_v1 }
 0x55f   : > { %v1469_v8 = vpop.f32.mrb[4].mxu1 }
 0x560   : > { %v5550_v9 = vpop.f32.mrb[5].mxu1  ;;  %v1473_v10 = vsel %vm1396_vm2, %v1469_v8, -inf }
 0x561   : > { %1474 = vmax.xlane.f32.xlu1 %v1473_v10 }
 0x5d5   : > { %v1631_v11 = vpop.f32.mrb[4].mxu0 }
 0x5d6   : > { %v5560_v12 = vpop.f32.mrb[5].mxu0  ;;  %v1635_v14 = vsel %vm1396_vm2, %v1631_v11, -inf }
 0x5d7   : > { %1636 = vmax.xlane.f32.xlu0 %v1635_v14 }
 0x5d9   : > { %v1797_v15 = vpop.f32.mrb[6].mxu0 }
 0x5da   : > { %v5570_v16 = vpop.f32.mrb[7].mxu0  ;;  %v1801_v17 = vsel %vm1396_vm2, %v1797_v15, -inf }
 0x5db   : > { %1802 = vmax.xlane.f32.xlu1 %v1801_v17  ;;  %v5251_v17 = vld [vmem:[#allocation7] ss:$0 sm:$0xff] }
 0x5de   : > { %v1962_v18 = vpop.f32.mrb[8].mxu0 }
 0x5df   : > { %v5580_v19 = vpop.f32.mrb[9].mxu0  ;;  %v1966_v20 = vsel %vm1396_vm2, %v1962_v18, -inf }
 0x5e0   : > { %1967 = vmax.xlane.f32.xlu1 %v1966_v20 }
 0x5ee   : > { %v1475_v21 = vpop.xlane.xlu1 %1474 }
 0x5ef   : > { %v1476_v22 = vsub.f32 %v1469_v8, %v1475_v21 }
 0x5f1   : > { %v1477_v23 = vmul.f32 1.442695, %v1476_v22 }
 0x5f3   : > { %6236 = vpow2.f32 %v1477_v23 }
 0x5fd   : > { %v6237_v24 = vpop.eup %6236 }
 0x5fe   : > { %v1479_v25 = vsel %vm1396_vm2, %v6237_v24, 0.0 }
 0x5ff   : > { %1480 = vadd.xlane.f32.xlu0 %v1479_v25  ;;  %v6127_v25 = vld [vmem:[#allocation11 + $0x8] sm:$0xff]  }
 0x664   : > { %v1637_v26 = vpop.xlane.xlu0 %1636 }
 0x665   : > { %v1638_v27 = vsub.f32 %v1631_v11, %v1637_v26 }
 0x667   : > { %v1639_v28 = vmul.f32 1.442695, %v1638_v27 }
 0x668   : > { %v1803_v30 = vpop.xlane.xlu1 %1802 }
 0x669   : > { %6238 = vpow2.f32 %v1639_v28  ;;  %v1804_v31 = vsub.f32 %v1797_v15, %v1803_v30 }
 0x66b   : > { %v1805_v32 = vmul.f32 1.442695, %v1804_v31 }
 0x66d   : > { %6240 = vpow2.f32 %v1805_v32  ;;  %v1968_v38 = vpop.xlane.xlu1 %1967  ;;  %v6129_v32 = vld [vmem:[#allocation11 + $0x18] sm:$0xff]  }
 0x66e   : > { %v1969_v39 = vsub.f32 %v1962_v18, %v1968_v38 }
 0x670   : > { %v1970_v41 = vmul.f32 1.442695, %v1969_v39 }
 0x673   : > { %v6239_v33 = vpop.eup %6238 }
 0x674   : > { %v1641_v34 = vsel %vm1396_vm2, %v6239_v33, 0.0 }
 0x675   : > { %1642 = vadd.xlane.f32.xlu1 %v1641_v34  ;;  %v6131_v34 = vld [vmem:[#allocation11 + $0x28] sm:$0xff]  }
 0x677   : > { %v6241_v35 = vpop.eup %6240 }
 0x678   : > { %v1807_v36 = vsel %vm1396_vm2, %v6241_v35, 0.0 }
 0x679   : > { %1808 = vadd.xlane.f32.xlu0 %v1807_v36  ;;  %v6133_v36 = vld [vmem:[#allocation11 + $0x38] sm:$0xff]  }
 0x686   : > { %1812 = vrot.lane.b32.xlu1 %v7750_v63, %s7032_s9 }
 0x68c   : > { %v1481_v37 = vpop.xlane.xlu0 %1480 }
 0x68d   : > { %6242 = vrcp.f32 %v1481_v37  ;;  %v6134_v37 = vld [vmem:[#allocation14] sm:$0xff]  }
 0x68e   : > { %6244 = vpow2.f32 %v1970_v41 }
 0x68f   : > { %1647 = vrot.lane.b32.xlu0 %v7750_v63, %s7031_s1 }
 0x697   : > { %v6243_v40 = vpop.eup %6242 }
 0x698   : > { %v1483_v42 = vmul.f32 %v6243_v40, %v6237_v24  ;;  %v6245_v43 = vpop.eup %6244  ;;  %v6126_v24 = vld [vmem:[#allocation11] sm:$0xff]  }
 0x699   : > { %v1972_v44 = vsel %vm1396_vm2, %v6245_v43, 0.0 }
 0x69a   : > { %5554 = vmatmul.mubr.msk.f32.vlgmr.msra.gmra.mrb[6].mxu1 %vm1396_vm2, %v1483_v42  ;;  %v5255_v42 = vld [vmem:[#allocation8] ss:$0 sm:$0xff] }
 0x69b   : > { %5563 = vmatprep.mubr.msk.f32.mxu1 %vm7030_vm1, %v7028_v1 }
 0x6aa   : > { %1973 = vadd.xlane.f32.xlu1 %v1972_v44  ;;  %v5256_v44 = vld [vmem:[#allocation10] ss:$0 sm:$0xff] }
 0x6bb   : > { %1977 = vrot.lane.b32.xlu1 %v7750_v63, %s7033_s11  ;;  %v6124_v63 = vld [vmem:[%s8349_s0] sm:$0xff]  }
 0x6bc   : > { %5587 = vmatpush3.bf16.msra.mxu0 %v6124_v63 }
 0x6bd   : > { %5588 = vmatprep.subr.bf16.mxu0 %v7028_v1 }
 0x6c0   : > { %5589 = vmatpush3.bf16.msra.mxu0 %v6125_v6 }
 0x6c1   : > { %5614 = vmatprep.subr.bf16.mxu0 %v7028_v1 }
 0x702   : > { %v1643_v47 = vpop.xlane.xlu1 %1642 }
 0x703   : > { %6246 = vrcp.f32 %v1643_v47 }
 0x706   : > { %v1809_v49 = vpop.xlane.xlu0 %1808  ;;  %v1813_v54 = vpop.permute.xlu1 %1812 }
 0x707   : > { %6248 = vrcp.f32 %v1809_v49 }
 0x70a   : > { %v1648_v51 = vpop.permute.xlu0 %1647 }
 0x70b   : > { %5562 = vmatpush3.msra.mxu1 %v1648_v51 }
 0x70c   : > { %5571 = vmatprep.subr.mxu1 %v7028_v1 }
 0x70d   : > { %v6247_v52 = vpop.eup %6246 }
 0x70e   : > { %v1645_v53 = vmul.f32 %v6247_v52, %v6239_v33  ;;  %v6130_v33 = vld [vmem:[#allocation11 + $0x20] sm:$0xff]   ;;  %v6135_v52 = vld [vmem:[#allocation14 + $0x8] sm:$0xff]  }
 0x710   : > { %5564 = vmatmul.mubr.msk.f32.vlgmr.msra.gmra.mrb[8].mxu1 %vm1396_vm2, %v1645_v53  ;;  %v6136_v53 = vld [vmem:[#allocation14 + $0x10] sm:$0xff]  }
 0x711   : > { %v6249_v55 = vpop.eup %6248  ;;  %5572 = vmatpush3.msra.mxu1 %v1813_v54  ;;  %5573 = vmatprep.mubr.msk.f32.mxu1 %vm7030_vm1, %v7028_v1  ;;  %v6137_v54 = vld [vmem:[#allocation14 + $0x18] sm:$0xff]  }
 0x712   : > { %v1811_v56 = vmul.f32 %v6249_v55, %v6241_v35  ;;  %5581 = vmatprep.subr.mxu1 %v7028_v1  ;;  %v6132_v35 = vld [vmem:[#allocation11 + $0x30] sm:$0xff]   ;;  %v6138_v55 = vld [vmem:[#allocation14 + $0x20] sm:$0xff]  }
 0x714   : > { %5574 = vmatmul.mubr.msk.f32.vlgmr.msra.gmra.mrb[10].mxu1 %vm1396_vm2, %v1811_v56  ;;  %v6139_v56 = vld [vmem:[#allocation14 + $0x28] sm:$0xff]  }
 0x715   : > { %5583 = vmatprep.mubr.msk.f32.mxu1 %vm7030_vm1, %v7028_v1 }
 0x737   : > { %v1974_v57 = vpop.xlane.xlu1 %1973 }
 0x738   : > { %6250 = vrcp.f32 %v1974_v57  ;;  %v6140_v57 = vld [vmem:[#allocation14 + $0x30] sm:$0xff]  }
 0x73b   : > { %v1978_v58 = vpop.permute.xlu1 %1977 }
 0x73c   : > { %5582 = vmatpush3.msra.mxu1 %v1978_v58  ;;  %v6141_v58 = vld [vmem:[#allocation14 + $0x38] sm:$0xff]  }
 0x73d   : > { %5594 = vmatprep.subr.bf16.mxu1 %v7028_v1 }
 0x742   : > { %v6251_v59 = vpop.eup %6250 }
 0x743   : > { %v1976_v60 = vmul.f32 %v6251_v59, %v6245_v43  ;;  %v5257_v59 = vld [vmem:[#allocation13] ss:$0 sm:$0xff] }
 0x745   : > { %5584 = vmatmul.mubr.msk.f32.vlgmr.msra.gmra.mrb[12].mxu1 %vm1396_vm2, %v1976_v60 }
 0x746   : > { %5610 = vmatprep.mubr.msk.bf16.mxu1 %vm7030_vm1, %v7028_v1  ;;  %5595 = vmatpush3.bf16.msra.mxu1 %v6126_v24  ;;  %v6145_v24 = vld [vmem:[#allocation5 + $0xc8] ss:$12 sps:$4 sm:$0xff]  }
 0x747   : > { %5596 = vmatprep.subr.bf16.mxu1 %v7028_v1 }
 0x74a   : > { %5597 = vmatpush3.bf16.msra.mxu1 %v6127_v25  ;;  %v6148_v25 = vld [vmem:[#allocation5 + $0xdc] ss:$12 sps:$4 sm:$0xff]  }
 0x74b   : > { %5598 = vmatprep.subr.bf16.mxu1 %v7028_v1 }
 0x76d   : > { %v1553_v61 = vpop.f32.mrb[6].mxu1 }
 0x76e   : > { %v5555_v62 = vpop.f32.mrb[7].mxu1 }
 0x7e3   : > { %v1719_v2 = vpop.f32.mrb[8].mxu1 }
 0x7e4   : > { %2054 = vrot.lane.b32.xlu0 %v1719_v2, %s7034_s13  ;;  %v5565_v3 = vpop.f32.mrb[9].mxu1 }
 0x7e7   : > { %v1884_v4 = vpop.f32.mrb[10].mxu1 }
 0x7e8   : > { %2058 = vrot.lane.b32.xlu1 %v1884_v4, %s7035_s7  ;;  %v5575_v5 = vpop.f32.mrb[11].mxu1 }
 0x818   : > { %v2049_v7 = vpop.f32.mrb[12].mxu1 }
 0x819   : > { %2062 = vrot.lane.b32.xlu0 %v2049_v7, %s7036_s10  ;;  %v5585_v8 = vpop.f32.mrb[13].mxu1 }
 0x856   : > { %v2055_v9 = vpop.permute.xlu0 %2054 }
 0x857   : > { %v2065_v11 = vsel %vm1396_vm2, %v1553_v61, %v2055_v9 }
 0x85a   : > { %v2059_v10 = vpop.permute.xlu1 %2058 }
 0x85b   : > { %v2067_v12 = vsel %vm2066_vm3, %v2065_v11, %v2059_v10 }
 0x88b   : > { %v2063_v14 = vpop.permute.xlu0 %2062 }
 0x88c   : > { %v2069_v15 = vsel %vm2068_vm4, %v2067_v12, %v2063_v14  ;;  %v5266_v14 = vld [vmem:[#allocation16] ss:$0 sm:$0xff] }
 0x88d   : > { %v2070_v16 = vpack.c.bf16 %v2069_v15, %v2069_v15 }
 0x88f   : > { %5591 = vmatmul.mubr.msk.bf16.vlgmr.msra.gmra.mrb[12].mxu0 %vm2089_vm5, %v2070_v16 }
 0x890   : > { %5630 = vmatprep.mubr.msk.bf16.mxu0 %vm7030_vm1, %v7028_v1  ;;  %5615 = vmatpush3.bf16.msra.mxu0 %v6134_v37  ;;  %v6157_v37 = vld [vmem:[#allocation5 + $0x110] ss:$12 sps:$4 sm:$0xff]  }
 0x891   : > { %5616 = vmatprep.subr.bf16.mxu0 %v7028_v1 }
 0x894   : > { %5617 = vmatpush3.bf16.msra.mxu0 %v6135_v52  ;;  %v6170_v52 = vld [vmem:[#allocation5 + $0x168] ss:$12 sps:$4 sm:$0xff]  }
 0x895   : > { %5618 = vmatprep.subr.bf16.mxu0 %v7028_v1 }
 0x898   : > { %5619 = vmatpush3.bf16.msra.mxu0 %v6136_v53  ;;  %v6173_v53 = vld [vmem:[#allocation5 + $0x170] ss:$12 sps:$4 sm:$0xff]  }
 0x899   : > { %5620 = vmatprep.subr.bf16.mxu0 %v7028_v1 }
 0x89c   : > { %5621 = vmatpush3.bf16.msra.mxu0 %v6137_v54 }
 0x89d   : > { %5622 = vmatprep.subr.bf16.mxu0 %v7028_v1 }
 0x8a0   : > { %5623 = vmatpush3.bf16.msra.mxu0 %v6138_v55 }
 0x8a1   : > { %5624 = vmatprep.subr.bf16.mxu0 %v7028_v1 }
 0x8a4   : > { %5625 = vmatpush3.bf16.msra.mxu0 %v6139_v56 }
 0x8a5   : > { %5626 = vmatprep.subr.bf16.mxu0 %v7028_v1 }
 0x8a8   : > { %5627 = vmatpush3.bf16.msra.mxu0 %v6140_v57 }
 0x8a9   : > { %5628 = vmatprep.subr.bf16.mxu0 %v7028_v1 }
 0x8ac   : > { %5629 = vmatpush3.bf16.msra.mxu0 %v6141_v58  ;;  %v5276_v58 = vld [vmem:[%s8347_s17 + $0x1] ss:$0 sm:$0xff] }
 0x8ad   : > { %5634 = vmatprep.subr.bf16.mxu0 %v7028_v1 }
 0x962   : > { %v2127_v18 = vpop.f32.mrb[12].mxu0 }
 0x963   : > { %v2128_v19 = vadd.f32 %v5251_v17, %v2127_v18  ;;  %v5592_v20 = vpop.f32.mrb[13].mxu0 }
 0x964   : > { %v2130_v21 = vpop.f32.mrb[14].mxu0 }
 0x965   : > { %v7823_v22 = vadd.f32 %v2128_v19, %v7700_v0  ;;  %v5593_v23 = vpop.f32.mrb[15].mxu0  ;;  %v6128_v0 = vld [vmem:[#allocation11 + $0x10] sm:$0xff]   ;;  %v6142_v21 = vld [vmem:[#allocation5 + $0xc0] ss:$12 sps:$4 sm:$0xff]  }
 0x966   : > { %5599 = vmatpush3.bf16.msra.mxu1 %v6128_v0  ;;  %v6144_v23 = vld [vmem:[#allocation5 + $0xc4] ss:$12 sps:$4 sm:$0xff]  }
 0x967   : > { %2136 = vadd.xlane.f32.xlu1 %v7823_v22  ;;  %5600 = vmatprep.subr.bf16.mxu1 %v7028_v1 }
 0x96a   : > { %5601 = vmatpush3.bf16.msra.mxu1 %v6129_v32 }
 0x96b   : > { %5602 = vmatprep.subr.bf16.mxu1 %v7028_v1 }
 0x96e   : > { %5603 = vmatpush3.bf16.msra.mxu1 %v6130_v33 }
 0x96f   : > { %5604 = vmatprep.subr.bf16.mxu1 %v7028_v1 }
 0x972   : > { %5605 = vmatpush3.bf16.msra.mxu1 %v6131_v34  ;;  %v6153_v34 = vld [vmem:[#allocation5 + $0xf8] ss:$12 sps:$4 sm:$0xff]  }
 0x973   : > { %5606 = vmatprep.subr.bf16.mxu1 %v7028_v1 }
 0x976   : > { %5607 = vmatpush3.bf16.msra.mxu1 %v6132_v35  ;;  %v6156_v35 = vld [vmem:[#allocation5 + $0x10c] ss:$12 sps:$4 sm:$0xff]  }
 0x977   : > { %5608 = vmatprep.subr.bf16.mxu1 %v7028_v1 }
 0x97a   : > { %5609 = vmatpush3.bf16.msra.mxu1 %v6133_v36  ;;  %v6154_v36 = vld [vmem:[#allocation5 + $0x108] ss:$12 sps:$4 sm:$0xff]  }
 0x97b   : > { %2606 = vmatprep.subr.bf16.mxu1 %v6144_v23 }
 0x9f4   : > { %v2137_v26 = vpop.xlane.xlu1 %2136 }
 0x9f5   : > { %v2138_v27 = vmul.f32 0.03125, %v2137_v26  ;;  %v6149_v26 = vld [vmem:[#allocation5 + $0xe0] ss:$12 sps:$4 sm:$0xff]  }
 0x9f7   : > { %v2139_v28 = vsub.f32 %v7823_v22, %v2138_v27  ;;  %v6146_v27 = vld [vmem:[#allocation5 + $0xd8] ss:$12 sps:$4 sm:$0xff]  }
 0x9f9   : > { %v2140_v30 = vmul.f32 %v7708_v13, %v2139_v28  ;;  %v6152_v28 = vld [vmem:[#allocation5 + $0xf4] ss:$12 sps:$4 sm:$0xff]  }
 0x9fb   : > { %v2141_v31 = vmul.f32 %v2140_v30, %v2140_v30 }
 0x9fd   : > { %2142 = vadd.xlane.f32.xlu0 %v2141_v31 }
 0xa8a   : > { %v2143_v38 = vpop.xlane.xlu0 %2142 }
 0xa8b   : > { %v2144_v39 = vmul.f32 0.03125, %v2143_v38  ;;  %v6160_v38 = vld [vmem:[#allocation5 + $0x124] ss:$12 sps:$4 sm:$0xff]  }
 0xa8d   : > { %v2145_v40 = vadd.f32 1e-06, %v2144_v39  ;;  %v6158_v39 = vld [vmem:[#allocation5 + $0x120] ss:$12 sps:$4 sm:$0xff]  }
 0xa8f   : > { %6252 = vrsqrt.f32 %v2145_v40  ;;  %v6161_v40 = vld [vmem:[#allocation5 + $0x128] ss:$12 sps:$4 sm:$0xff]  }
 0xa99   : > { %v6253_v41 = vpop.eup %6252 }
 0xa9a   : > { %v2147_v43 = vmul.f32 %v6253_v41, %v2140_v30  ;;  %v6164_v41 = vld [vmem:[#allocation5 + $0x13c] ss:$12 sps:$4 sm:$0xff]  }
 0xa9c   : > { %v2154_v47 = vmul.f32 %v5255_v42, %v2147_v43  ;;  %v6162_v42 = vld [vmem:[#allocation5 + $0x138] ss:$12 sps:$4 sm:$0xff]   ;;  %v6165_v43 = vld [vmem:[#allocation5 + $0x140] ss:$12 sps:$4 sm:$0xff]  }
 0xa9e   : > { %v2161_v49 = vadd.f32 %v5256_v44, %v2154_v47  ;;  %v6168_v44 = vld [vmem:[#allocation5 + $0x154] ss:$12 sps:$4 sm:$0xff]   ;;  %v6166_v47 = vld [vmem:[#allocation5 + $0x150] ss:$12 sps:$4 sm:$0xff]  }
 0xaa0   : > { %v2179_v51 = vpack.c.bf16 %v2161_v49, %v2161_v49  ;;  %v6169_v49 = vld [vmem:[#allocation5 + $0x158] ss:$12 sps:$4 sm:$0xff]  }
 0xaa2   : > { %5611 = vmatmul.mubr.bf16.vlgmr.msra.gmra.mrb[16].mxu1 %v2179_v51  ;;  %v6172_v51 = vld [vmem:[#allocation5 + $0x16c] ss:$12 sps:$4 sm:$0xff]  }
 0xaa3   : > { %2638 = vmatprep.mubr.bf16.mxu1 %v7029_v29  ;;  %2607 = vmatpush1.bf16.msra.mxu1 %v6142_v21 }
 0xaa4   : > { %2608 = vmatprep.subr.bf16.mxu1 %v6148_v25 }
 0xaa7   : > { %2609 = vmatpush1.bf16.msra.mxu1 %v6146_v27 }
 0xaa8   : > { %2610 = vmatprep.subr.bf16.mxu1 %v6152_v28 }
 0xb75   : > { %v2268_v60 = vpop.f32.mrb[16].mxu1 }
 0xb76   : > { %v2269_v61 = vadd.f32 %v5257_v59, %v2268_v60  ;;  %v5612_v62 = vpop.f32.mrb[17].mxu1  ;;  %v5277_v60 = vld [vmem:[#allocation2 + $0x1] ss:$0 sm:$0xff] }
 0xb77   : > { %v2271_v63 = vpop.f32.mrb[18].mxu1 }
 0xb78   : > { %v2275_v2 = vmul.f32 0.044715, %v2269_v61  ;;  %v5613_v3 = vpop.f32.mrb[19].mxu1  ;;  %v2274_v9 = vmul.f32 0.5, %v2269_v61 }
 0xb7a   : > { %v2276_v4 = vmul.f32 %v2275_v2, %v2269_v61  ;;  %v5278_v2 = vld [vmem:[%s8348_s3 + $0x3] sm:$0x7]  ;;  %s7037_s3 = smov [#allocation34]  }
 0xb7b   : > { %v2466_v3 = vrot.slane %v5278_v2, %v7733_v46  ;;  %s6864_s6 = sshll.u32 %s7037_s3, 4  ;;  %s6865_s6 = int_to_ptr.vmem [resolvable:$false] %s6864_s6 }
 0xb7c   : > { %v2277_v5 = vmul.f32 %v2276_v4, %v2269_v61  ;;  %v2470_v4 = vrot.slane %v5278_v2, %v7739_v48  ;;  %s6866_s12 = scalar_lea.vmem %s6865_s6, 256 }
 0xb7e   : > { %v2278_v6 = vadd.f32 %v2277_v5, %v2269_v61 }
 0xb80   : > { %v2279_v7 = vmul.f32 0.7978846, %v2278_v6 }
 0xb82   : > { %6254 = vtanh.f32 %v2279_v7 }
 0xb8c   : > { %v6255_v8 = vpop.eup %6254 }
 0xb8d   : > { %v2281_v10 = vadd.f32 1.0, %v6255_v8 }
 0xb8f   : > { %v2282_v11 = vmul.f32 %v2281_v10, %v2274_v9  ;;  %v2474_v10 = vrot.slane %v5278_v2, %v1177_v50 }
 0xb91   : > { %v2300_v12 = vpack.c.bf16 %v2282_v11, %v2282_v11 }
 0xb93   : > { %5631 = vmatmul.mubr.bf16.vlgmr.msra.gmra.mrb[16].mxu0 %v2300_v12 }
 0xb94   : > { %5650 = vmatprep.mubr.msk.bf16.mxu0 %vm7030_vm1, %v7028_v1  ;;  %5635 = vmatpush3.bf16.msra.mxu0 %v6145_v24 }
 0xb95   : > { %5636 = vmatprep.subr.bf16.mxu0 %v7028_v1 }
 0xb98   : > { %5637 = vmatpush3.bf16.msra.mxu0 %v6149_v26 }
 0xb99   : > { %5638 = vmatprep.subr.bf16.mxu0 %v7028_v1 }
 0xb9c   : > { %5639 = vmatpush3.bf16.msra.mxu0 %v6153_v34 }
 0xb9d   : > { %5640 = vmatprep.subr.bf16.mxu0 %v7028_v1 }
 0xba0   : > { %5641 = vmatpush3.bf16.msra.mxu0 %v6157_v37 }
 0xba1   : > { %5642 = vmatprep.subr.bf16.mxu0 %v7028_v1 }
 0xba4   : > { %5643 = vmatpush3.bf16.msra.mxu0 %v6161_v40 }
 0xba5   : > { %5644 = vmatprep.subr.bf16.mxu0 %v7028_v1 }
 0xba8   : > { %5645 = vmatpush3.bf16.msra.mxu0 %v6165_v43 }
 0xba9   : > { %5646 = vmatprep.subr.bf16.mxu0 %v7028_v1 }
 0xbac   : > { %5647 = vmatpush3.bf16.msra.mxu0 %v6169_v49 }
 0xbad   : > { %5648 = vmatprep.subr.bf16.mxu0 %v7028_v1 }
 0xbb0   : > { %5649 = vmatpush3.bf16.msra.mxu0 %v6173_v53 }
 0xbb1   : > { %5664 = vmatprep.subr.mxu0 %v7028_v1 }
 0xc66   : > { %v2389_v15 = vpop.f32.mrb[16].mxu0 }
 0xc67   : > { %v2390_v16 = vadd.f32 %v5266_v14, %v2389_v15  ;;  %v5632_v17 = vpop.f32.mrb[17].mxu0 }
 0xc68   : > { %v2392_v18 = vpop.f32.mrb[18].mxu0 }
 0xc69   : > { %v7847_v19 = vadd.f32 %v2390_v16, %v7823_v22  ;;  %v5633_v20 = vpop.f32.mrb[19].mxu0  ;;  %v6150_v22 = vld [vmem:[#allocation5 + $0xf0] ss:$12 sps:$4 sm:$0xff]  }
 0xc6a   : > { %2611 = vmatpush1.bf16.msra.mxu1 %v6150_v22 }
 0xc6b   : > { %2400 = vadd.xlane.f32.xlu0 %v7847_v19  ;;  %2612 = vmatprep.subr.bf16.mxu1 %v6156_v35 }
 0xc6e   : > { %2613 = vmatpush1.bf16.msra.mxu1 %v6154_v36 }
 0xc6f   : > { %2614 = vmatprep.subr.bf16.mxu1 %v6160_v38 }
 0xc72   : > { %2615 = vmatpush1.bf16.msra.mxu1 %v6158_v39 }
 0xc73   : > { %2616 = vmatprep.subr.bf16.mxu1 %v6164_v41 }
 0xc76   : > { %2617 = vmatpush1.bf16.msra.mxu1 %v6162_v42 }
 0xc77   : > { %2618 = vmatprep.subr.bf16.mxu1 %v6168_v44 }
 0xc7a   : > { %2619 = vmatpush1.bf16.msra.mxu1 %v6166_v47 }
 0xc7b   : > { %2620 = vmatprep.subr.bf16.mxu1 %v6172_v51 }
 0xc7e   : > { %2621 = vmatpush1.bf16.msra.mxu1 %v6170_v52 }
 0xc7f   : > { %5654 = vmatprep.subr.mxu1 %v7028_v1 }
 0xcf8   : > { %v2401_v30 = vpop.xlane.xlu0 %2400 }
 0xcf9   : > { %v2402_v31 = vmul.f32 0.03125, %v2401_v30 }
 0xcfb   : > { %v2403_v0 = vsub.f32 %v7847_v19, %v2402_v31 }
 0xcfd   : > { %v2404_v32 = vmul.f32 %v7708_v13, %v2403_v0 }
 0xcff   : > { %v2405_v33 = vmul.f32 %v2404_v32, %v2404_v32 }
 0xd01   : > { %2406 = vadd.xlane.f32.xlu1 %v2405_v33 }
 0xd8e   : > { %v2407_v54 = vpop.xlane.xlu1 %2406 }
 0xd8f   : > { %v2408_v55 = vmul.f32 0.03125, %v2407_v54 }
 0xd91   : > { %v2409_v56 = vadd.f32 1e-06, %v2408_v55 }
 0xd93   : > { %6256 = vrsqrt.f32 %v2409_v56 }
 0xd9d   : > { %v6257_v57 = vpop.eup %6256 }
 0xd9e   : > { %v2411_v59 = vmul.f32 %v6257_v57, %v2404_v32 }
 0xda0   : > { %v2418_v61 = vmul.f32 %v5276_v58, %v2411_v59 }
 0xda2   : > { %v2425_v62 = vadd.f32 %v5277_v60, %v2418_v61 }
 0xda4   : > { %v2461_v63 = vpack.c.bf16 %v2425_v62, %v2425_v62 }
 0xda6   : > { %2639 = vmatmul.mubr.bf16.vlgmr.msra.gmra.mrb[20].mxu1 %v2461_v63  ;;  %5651 = vmatmul.mubr.bf16.vlgmr.msra.gmra.mrb[20].mxu0 %v2461_v63 }
 0xda7   : > { %5656 = vmatprep.mubr.msk.f32.mxu1 %vm7030_vm1, %v7028_v1  ;;  %5666 = vmatprep.mubr.msk.f32.mxu0 %vm7030_vm1, %v7028_v1 }
 0xe79   : > { %v2640_v5 = vpop.f32.mrb[20].mxu1  ;;  %v2681_v6 = vpop.f32.mrb[20].mxu0 }
 0xe7a   : > { %v2641_v7 = vadd.f32 %v2640_v5, %v2466_v3  ;;  %v2642_v8 = vpop.f32.mrb[21].mxu1  ;;  %v5652_v9 = vpop.f32.mrb[21].mxu0  ;;  %v7879_v17 = vadd.f32 %v2681_v6, %v2474_v10 }
 0xe7b   : > { %v2643_v11 = vadd.f32 %v2642_v8, %v2470_v4  ;;  %v2644_v12 = vpop.f32.mrb[22].mxu1  ;;  %v2684_v14 = vpop.f32.mrb[22].mxu0 }
 0xe7c   : > { %v2645_v15 = vpop.f32.mrb[23].mxu1  ;;  %v5653_v16 = vpop.f32.mrb[23].mxu0  ;;  %2854 = vrot.lane.b32.xlu1 %v2641_v7, %s7031_s1 }
 0xe7d   : > { %2856 = vrot.lane.b32.xlu0 %v2643_v11, %s7031_s1  ;;  %5655 = vmatpush3.xpose.msk.msra.mxu1 %vm1396_vm2, %v2643_v11  ;;  %v6174_v15 = vld [vmem:[%s8349_s0 + $0x10] sm:$0xff]  }
 0xe7e   : > { %5659 = vmatprep.subr.mxu1 %v7028_v1 }
 0xe80   : > { %3022 = vrot.lane.b32.xlu1 %v2643_v11, %s7032_s9  ;;  %5657 = vmatmul.mubr.msk.f32.vlgmr.msra.gmra.mrb[14].mxu1 %vm1396_vm2, %v2641_v7 }
 0xe81   : > { %3020 = vrot.lane.b32.xlu0 %v2641_v7, %s7032_s9  ;;  %5660 = vmatpush3.msra.mxu1 %v7879_v17 }
 0xe82   : > { %5661 = vmatprep.mubr.msk.f32.mxu1 %vm7030_vm1, %v7028_v1  ;;  %5669 = vmatprep.subr.mxu1 %v7028_v1 }
 0xe84   : > { %3187 = vrot.lane.b32.xlu1 %v2643_v11, %s7033_s11 }
 0xe85   : > { %3185 = vrot.lane.b32.xlu0 %v2641_v7, %s7033_s11 }
 0xeee   : > { %v2855_v45 = vpop.permute.xlu1 %2854 }
 0xeef   : > { %v2857_v50 = vpop.permute.xlu0 %2856 }
 0xef0   : > { %5665 = vmatpush3.xpose.msk.msra.mxu0 %vm1396_vm2, %v2857_v50 }
 0xef1   : > { %5674 = vmatprep.subr.mxu0 %v7028_v1 }
 0xef2   : > { %v3023_v18 = vpop.permute.xlu1 %3022 }
 0xef3   : > { %5667 = vmatmul.mubr.msk.f32.vlgmr.msra.gmra.mrb[10].mxu0 %vm1396_vm2, %v2855_v45  ;;  %v3021_v20 = vpop.permute.xlu0 %3020 }
 0xef4   : > { %5675 = vmatpush3.xpose.msk.msra.mxu0 %vm1396_vm2, %v3023_v18  ;;  %5676 = vmatprep.mubr.msk.f32.mxu0 %vm7030_vm1, %v7028_v1  ;;  %v6175_v18 = vld [vmem:[%s8349_s0 + $0x18] sm:$0xff]  }
 0xef5   : > { %5684 = vmatprep.subr.mxu0 %v7028_v1 }
 0xef6   : > { %v3188_v21 = vpop.permute.xlu1 %3187 }
 0xef7   : > { %5677 = vmatmul.mubr.msk.f32.vlgmr.msra.gmra.mrb[24].mxu0 %vm1396_vm2, %v3021_v20  ;;  %v3186_v23 = vpop.permute.xlu0 %3185 }
 0xef8   : > { %5685 = vmatpush3.xpose.msk.msra.mxu0 %vm1396_vm2, %v3188_v21  ;;  %5686 = vmatprep.mubr.msk.f32.mxu0 %vm7030_vm1, %v7028_v1 }
 0xef9   : > { %5694 = vmatprep.subr.bf16.mxu0 %v7028_v1 }
 0xefb   : > { %5687 = vmatmul.mubr.msk.f32.vlgmr.msra.gmra.mrb[26].mxu0 %vm1396_vm2, %v3186_v23 }
 0xefc   : > { %5698 = vmatprep.mubr.msk.bf16.mxu0 %vm7030_vm1, %v7028_v1  ;;  %5695 = vmatpush3.bf16.msra.mxu0 %v6174_v15 }
 0xefd   : > { %5696 = vmatprep.subr.bf16.mxu0 %v7028_v1 }
 0xf00   : > { %5697 = vmatpush3.bf16.msra.mxu0 %v6175_v18 }
 0xf01   : > { %5722 = vmatprep.subr.bf16.mxu0 %v7028_v1 }
 0xf53   : > { %v2766_v24 = vpop.f32.mrb[14].mxu1 }
 0xf54   : > { %v5658_v25 = vpop.f32.mrb[15].mxu1  ;;  %v2770_v26 = vsel %vm1396_vm2, %v2766_v24, -inf }
 0xf55   : > { %2771 = vmax.xlane.f32.xlu1 %v2770_v26 }
 0xfc6   : > { %v2928_v27 = vpop.f32.mrb[10].mxu0 }
 0xfc7   : > { %v5668_v28 = vpop.f32.mrb[11].mxu0  ;;  %v2932_v22 = vsel %vm1396_vm2, %v2928_v27, -inf }
 0xfc8   : > { %2933 = vmax.xlane.f32.xlu0 %v2932_v22 }
 0xfca   : > { %v3094_v30 = vpop.f32.mrb[24].mxu0 }
 0xfcb   : > { %v5678_v31 = vpop.f32.mrb[25].mxu0  ;;  %v3098_v0 = vsel %vm1396_vm2, %v3094_v30, -inf }
 0xfcc   : > { %3099 = vmax.xlane.f32.xlu0 %v3098_v0 }
 0xfce   : > { %v3259_v32 = vpop.f32.mrb[26].mxu0 }
 0xfcf   : > { %v5688_v33 = vpop.f32.mrb[27].mxu0  ;;  %v3263_v34 = vsel %vm1396_vm2, %v3259_v32, -inf }
 0xfd0   : > { %3264 = vmax.xlane.f32.xlu1 %v3263_v34 }
 0xfe2   : > { %v2772_v35 = vpop.xlane.xlu1 %2771 }
 0xfe3   : > { %v2773_v36 = vsub.f32 %v2766_v24, %v2772_v35 }
 0xfe5   : > { %v2774_v37 = vmul.f32 1.442695, %v2773_v36  ;;  %v6176_v36 = vld [vmem:[#allocation11 + $0x40] sm:$0xff]  }
 0xfe7   : > { %6258 = vpow2.f32 %v2774_v37  ;;  %v6177_v37 = vld [vmem:[#allocation11 + $0x48] sm:$0xff]  }
 0xff1   : > { %v6259_v38 = vpop.eup %6258 }
 0xff2   : > { %v2776_v39 = vsel %vm1396_vm2, %v6259_v38, 0.0 }
 0xff3   : > { %2777 = vadd.xlane.f32.xlu0 %v2776_v39 }
0x1055   : > { %v2934_v40 = vpop.xlane.xlu0 %2933 }
0x1056   : > { %v2935_v41 = vsub.f32 %v2928_v27, %v2934_v40 }
0x1058   : > { %v2936_v42 = vmul.f32 1.442695, %v2935_v41 }
0x1059   : > { %v3100_v43 = vpop.xlane.xlu0 %3099 }
0x105a   : > { %6260 = vpow2.f32 %v2936_v42  ;;  %v3101_v44 = vsub.f32 %v3094_v30, %v3100_v43  ;;  %v5319_v30 = vld [vmem:[#allocation7 + $0x1] ss:$0 sm:$0xff] }
0x105b   : > { %v6179_v43 = vld [vmem:[#allocation11 + $0x58] sm:$0xff]  }
0x105c   : > { %v3102_v47 = vmul.f32 1.442695, %v3101_v44  ;;  %v6180_v44 = vld [vmem:[#allocation11 + $0x60] sm:$0xff]  }
0x105d   : > { %v3265_v55 = vpop.xlane.xlu1 %3264 }
0x105e   : > { %6262 = vpow2.f32 %v3102_v47  ;;  %v3266_v56 = vsub.f32 %v3259_v32, %v3265_v55  ;;  %v6181_v47 = vld [vmem:[#allocation11 + $0x68] sm:$0xff]  }
0x1060   : > { %v3267_v57 = vmul.f32 1.442695, %v3266_v56 }
0x1064   : > { %v6261_v49 = vpop.eup %6260 }
0x1065   : > { %v2938_v51 = vsel %vm1396_vm2, %v6261_v49, 0.0 }
0x1066   : > { %2939 = vadd.xlane.f32.xlu1 %v2938_v51  ;;  %v6183_v51 = vld [vmem:[#allocation11 + $0x78] sm:$0xff]  }
0x1068   : > { %v6263_v52 = vpop.eup %6262 }
0x1069   : > { %v3104_v53 = vsel %vm1396_vm2, %v6263_v52, 0.0 }
0x106a   : > { %3105 = vadd.xlane.f32.xlu0 %v3104_v53 }
0x1077   : > { %3109 = vrot.lane.b32.xlu1 %v7879_v17, %s7032_s9 }
0x1080   : > { %2944 = vrot.lane.b32.xlu0 %v7879_v17, %s7031_s1  ;;  %v2778_v54 = vpop.xlane.xlu0 %2777 }
0x1081   : > { %6264 = vrcp.f32 %v2778_v54 }
0x1082   : > { %6266 = vpow2.f32 %v3267_v57  ;;  %v5323_v57 = vld [vmem:[#allocation8 + $0x1] ss:$0 sm:$0xff] }
0x108b   : > { %v6265_v58 = vpop.eup %6264 }
0x108c   : > { %v2780_v59 = vmul.f32 %v6265_v58, %v6259_v38  ;;  %v6267_v60 = vpop.eup %6266 }
0x108d   : > { %v3269_v61 = vsel %vm1396_vm2, %v6267_v60, 0.0 }
0x108e   : > { %5662 = vmatmul.mubr.msk.f32.vlgmr.msra.gmra.mrb[24].mxu1 %vm1396_vm2, %v2780_v59  ;;  %v5324_v59 = vld [vmem:[#allocation10 + $0x1] ss:$0 sm:$0xff] }
0x108f   : > { %5671 = vmatprep.mubr.msk.f32.mxu1 %vm7030_vm1, %v7028_v1 }
0x109b   : > { %3270 = vadd.xlane.f32.xlu1 %v3269_v61 }
0x10ac   : > { %3274 = vrot.lane.b32.xlu1 %v7879_v17, %s7033_s11 }
0x10f3   : > { %v2940_v62 = vpop.xlane.xlu1 %2939 }
0x10f4   : > { %6268 = vrcp.f32 %v2940_v62 }
0x10f7   : > { %v3106_v63 = vpop.xlane.xlu0 %3105  ;;  %v3110_v5 = vpop.permute.xlu1 %3109 }
0x10f8   : > { %6270 = vrcp.f32 %v3106_v63  ;;  %v6185_v63 = vld [vmem:[#allocation14 + $0x48] sm:$0xff]  }
0x10fb   : > { %v2945_v2 = vpop.permute.xlu0 %2944 }
0x10fc   : > { %5670 = vmatpush3.msra.mxu1 %v2945_v2  ;;  %v6186_v2 = vld [vmem:[#allocation14 + $0x50] sm:$0xff]  }
0x10fd   : > { %5679 = vmatprep.subr.mxu1 %v7028_v1 }
0x10fe   : > { %v6269_v3 = vpop.eup %6268 }
0x10ff   : > { %v2942_v4 = vmul.f32 %v6269_v3, %v6261_v49  ;;  %v6182_v49 = vld [vmem:[#allocation11 + $0x70] sm:$0xff]   ;;  %v6187_v3 = vld [vmem:[#allocation14 + $0x58] sm:$0xff]  }
0x1101   : > { %5672 = vmatmul.mubr.msk.f32.vlgmr.msra.gmra.mrb[26].mxu1 %vm1396_vm2, %v2942_v4  ;;  %v6188_v4 = vld [vmem:[#allocation14 + $0x60] sm:$0xff]  }
0x1102   : > { %v6271_v6 = vpop.eup %6270  ;;  %5680 = vmatpush3.msra.mxu1 %v3110_v5  ;;  %5681 = vmatprep.mubr.msk.f32.mxu1 %vm7030_vm1, %v7028_v1  ;;  %v6189_v5 = vld [vmem:[#allocation14 + $0x68] sm:$0xff]  }
0x1103   : > { %v3108_v7 = vmul.f32 %v6271_v6, %v6263_v52  ;;  %5689 = vmatprep.subr.mxu1 %v7028_v1  ;;  %v6184_v52 = vld [vmem:[#allocation14 + $0x40] sm:$0xff]   ;;  %v6190_v6 = vld [vmem:[#allocation14 + $0x70] sm:$0xff]  }
0x1105   : > { %5682 = vmatmul.mubr.msk.f32.vlgmr.msra.gmra.mrb[28].mxu1 %vm1396_vm2, %v3108_v7  ;;  %v5325_v7 = vld [vmem:[#allocation13 + $0x1] ss:$0 sm:$0xff] }
0x1106   : > { %5691 = vmatprep.mubr.msk.f32.mxu1 %vm7030_vm1, %v7028_v1 }
0x1128   : > { %v3271_v8 = vpop.xlane.xlu1 %3270 }
0x1129   : > { %6272 = vrcp.f32 %v3271_v8 }
0x112c   : > { %v3275_v9 = vpop.permute.xlu1 %3274 }
0x112d   : > { %5690 = vmatpush3.msra.mxu1 %v3275_v9 }
0x112e   : > { %5702 = vmatprep.subr.bf16.mxu1 %v7028_v1 }
0x1133   : > { %v6273_v10 = vpop.eup %6272 }
0x1134   : > { %v3273_v11 = vmul.f32 %v6273_v10, %v6267_v60 }
0x1136   : > { %5692 = vmatmul.mubr.msk.f32.vlgmr.msra.gmra.mrb[30].mxu1 %vm1396_vm2, %v3273_v11 }
0x1137   : > { %5718 = vmatprep.mubr.msk.bf16.mxu1 %vm7030_vm1, %v7028_v1  ;;  %5703 = vmatpush3.bf16.msra.mxu1 %v6176_v36  ;;  %v6198_v36 = vld [vmem:[#allocation22 + $0x20] ss:$8 sps:$4 sm:$0xff]  }
0x1138   : > { %5704 = vmatprep.subr.bf16.mxu1 %v7028_v1 }
0x113b   : > { %5705 = vmatpush3.bf16.msra.mxu1 %v6177_v37 }
0x113c   : > { %5706 = vmatprep.subr.bf16.mxu1 %v7028_v1 }
0x1161   : > { %v2850_v12 = vpop.f32.mrb[24].mxu1 }
0x1162   : > { %v5663_v14 = vpop.f32.mrb[25].mxu1 }
0x11d4   : > { %v3016_v16 = vpop.f32.mrb[26].mxu1 }
0x11d5   : > { %3351 = vrot.lane.b32.xlu0 %v3016_v16, %s7034_s13  ;;  %v5673_v17 = vpop.f32.mrb[27].mxu1 }
0x11d8   : > { %v3181_v45 = vpop.f32.mrb[28].mxu1 }
0x11d9   : > { %3355 = vrot.lane.b32.xlu1 %v3181_v45, %s7035_s7  ;;  %v5683_v50 = vpop.f32.mrb[29].mxu1 }
0x1209   : > { %v3346_v20 = vpop.f32.mrb[30].mxu1 }
0x120a   : > { %3359 = vrot.lane.b32.xlu0 %v3346_v20, %s7036_s10  ;;  %v5693_v21 = vpop.f32.mrb[31].mxu1 }
0x1247   : > { %v3352_v23 = vpop.permute.xlu0 %3351 }
0x1248   : > { %v3362_v25 = vsel %vm1396_vm2, %v2850_v12, %v3352_v23 }
0x124b   : > { %v3356_v24 = vpop.permute.xlu1 %3355 }
0x124c   : > { %v3363_v26 = vsel %vm2066_vm3, %v3362_v25, %v3356_v24  ;;  %v5334_v24 = vld [vmem:[#allocation16 + $0x1] ss:$0 sm:$0xff] }
0x127c   : > { %v3360_v27 = vpop.permute.xlu0 %3359 }
0x127d   : > { %v3364_v28 = vsel %vm2068_vm4, %v3363_v26, %v3360_v27 }
0x127e   : > { %v3365_v22 = vpack.c.bf16 %v3364_v28, %v3364_v28 }
0x1280   : > { %5699 = vmatmul.mubr.msk.bf16.vlgmr.msra.gmra.mrb[28].mxu0 %vm2089_vm5, %v3365_v22 }
0x1281   : > { %5738 = vmatprep.mubr.msk.bf16.mxu0 %vm7030_vm1, %v7028_v1  ;;  %5723 = vmatpush3.bf16.msra.mxu0 %v6184_v52  ;;  %v6215_v52 = vld [vmem:[#allocation22 + $0x74] ss:$8 sps:$4 sm:$0xff]  }
0x1282   : > { %5724 = vmatprep.subr.bf16.mxu0 %v7028_v1 }
0x1285   : > { %5725 = vmatpush3.bf16.msra.mxu0 %v6185_v63 }
0x1286   : > { %5726 = vmatprep.subr.bf16.mxu0 %v7028_v1 }
0x1289   : > { %5727 = vmatpush3.bf16.msra.mxu0 %v6186_v2  ;;  %v3741_v2 = vld [vmem:[#allocation23] sm:$0x3] }
0x128a   : > { %5728 = vmatprep.subr.bf16.mxu0 %v7028_v1 }
0x128d   : > { %5729 = vmatpush3.bf16.msra.mxu0 %v6187_v3  ;;  %v3747_v3 = vrot.slane %v3741_v2, %v7733_v46 }
0x128e   : > { %5730 = vmatprep.subr.bf16.mxu0 %v7028_v1 }
0x1291   : > { %5731 = vmatpush3.bf16.msra.mxu0 %v6188_v4 }
0x1292   : > { %5732 = vmatprep.subr.bf16.mxu0 %v7028_v1 }
0x1295   : > { %5733 = vmatpush3.bf16.msra.mxu0 %v6189_v5 }
0x1296   : > { %5734 = vmatprep.subr.bf16.mxu0 %v7028_v1 }
0x1299   : > { %5735 = vmatpush3.bf16.msra.mxu0 %v6190_v6  ;;  %v3751_v6 = vrot.slane %v3741_v2, %v7739_v48 }
0x129a   : > { %5736 = vmatprep.subr.bf16.mxu0 %v7028_v1 }
0x1353   : > { %v3421_v31 = vpop.f32.mrb[28].mxu0 }
0x1354   : > { %v3422_v0 = vadd.f32 %v5319_v30, %v3421_v31  ;;  %v5700_v32 = vpop.f32.mrb[29].mxu0  ;;  %v6192_v31 = vld [vmem:[#allocation22] ss:$8 sps:$4 sm:$0xff]  }
0x1355   : > { %v3424_v33 = vpop.f32.mrb[30].mxu0  ;;  %v6197_v32 = vld [vmem:[#allocation22 + $0x14] ss:$8 sps:$4 sm:$0xff]  }
0x1356   : > { %v7952_v34 = vadd.f32 %v3422_v0, %v7847_v19  ;;  %v5701_v35 = vpop.f32.mrb[31].mxu0  ;;  %v6178_v19 = vld [vmem:[#allocation11 + $0x50] sm:$0xff]   ;;  %v6195_v33 = vld [vmem:[#allocation22 + $0x10] ss:$8 sps:$4 sm:$0xff]  }
0x1357   : > { %5707 = vmatpush3.bf16.msra.mxu1 %v6178_v19  ;;  %v6194_v0 = vld [vmem:[#allocation22 + $0x4] ss:$8 sps:$4 sm:$0xff]  }
0x1358   : > { %3432 = vadd.xlane.f32.xlu1 %v7952_v34  ;;  %5708 = vmatprep.subr.bf16.mxu1 %v7028_v1  ;;  %v6200_v35 = vld [vmem:[#allocation22 + $0x24] ss:$8 sps:$4 sm:$0xff]  }
0x1359   : > { %v6206_v19 = vld [vmem:[#allocation22 + $0x44] ss:$8 sps:$4 sm:$0xff]  }
0x135b   : > { %5709 = vmatpush3.bf16.msra.mxu1 %v6179_v43  ;;  %v6204_v43 = vld [vmem:[#allocation22 + $0x40] ss:$8 sps:$4 sm:$0xff]  }
0x135c   : > { %5710 = vmatprep.subr.bf16.mxu1 %v7028_v1 }
0x135f   : > { %5711 = vmatpush3.bf16.msra.mxu1 %v6180_v44  ;;  %v6209_v44 = vld [vmem:[#allocation22 + $0x54] ss:$8 sps:$4 sm:$0xff]  }
0x1360   : > { %5712 = vmatprep.subr.bf16.mxu1 %v7028_v1 }
0x1363   : > { %5713 = vmatpush3.bf16.msra.mxu1 %v6181_v47  ;;  %v6207_v47 = vld [vmem:[#allocation22 + $0x50] ss:$8 sps:$4 sm:$0xff]  }
0x1364   : > { %5714 = vmatprep.subr.bf16.mxu1 %v7028_v1 }
0x1367   : > { %5715 = vmatpush3.bf16.msra.mxu1 %v6182_v49  ;;  %v6212_v49 = vld [vmem:[#allocation22 + $0x64] ss:$8 sps:$4 sm:$0xff]  }
0x1368   : > { %5716 = vmatprep.subr.bf16.mxu1 %v7028_v1 }
0x136b   : > { %5717 = vmatpush3.bf16.msra.mxu1 %v6183_v51  ;;  %v6210_v51 = vld [vmem:[#allocation22 + $0x60] ss:$8 sps:$4 sm:$0xff]  }
0x136c   : > { %3834 = vmatprep.subr.bf16.mxu1 %v6194_v0 }
0x13e5   : > { %v3433_v38 = vpop.xlane.xlu1 %3432 }
0x13e6   : > { %v3434_v39 = vmul.f32 0.03125, %v3433_v38 }
0x13e8   : > { %v3435_v40 = vsub.f32 %v7952_v34, %v3434_v39 }
0x13ea   : > { %v3436_v41 = vmul.f32 %v7708_v13, %v3435_v40 }
0x13ec   : > { %v3437_v42 = vmul.f32 %v3436_v41, %v3436_v41 }
0x13ee   : > { %3438 = vadd.xlane.f32.xlu0 %v3437_v42  ;;  %v6201_v42 = vld [vmem:[#allocation22 + $0x30] ss:$8 sps:$4 sm:$0xff]  }
0x147b   : > { %v3439_v53 = vpop.xlane.xlu0 %3438 }
0x147c   : > { %v3440_v54 = vmul.f32 0.03125, %v3439_v53  ;;  %v6213_v53 = vld [vmem:[#allocation22 + $0x70] ss:$8 sps:$4 sm:$0xff]  }
0x147e   : > { %v3441_v55 = vadd.f32 1e-06, %v3440_v54 }
0x1480   : > { %6274 = vrsqrt.f32 %v3441_v55 }
0x148a   : > { %v6275_v56 = vpop.eup %6274 }
0x148b   : > { %v3443_v58 = vmul.f32 %v6275_v56, %v3436_v41 }
0x148d   : > { %v3450_v60 = vmul.f32 %v5323_v57, %v3443_v58  ;;  %v5343_v58 = vld [vmem:[#allocation17] ss:$0 sm:$0xff] }
0x148f   : > { %v3457_v61 = vadd.f32 %v5324_v59, %v3450_v60  ;;  %v5344_v60 = vld [vmem:[#allocation19] ss:$0 sm:$0xff] }
0x1491   : > { %v3477_v62 = vpack.c.bf16 %v3457_v61, %v3457_v61 }
0x1493   : > { %5719 = vmatmul.mubr.bf16.vlgmr.msra.gmra.mrb[32].mxu1 %v3477_v62 }
0x1494   : > { %3866 = vmatprep.mubr.bf16.mxu1 %v7029_v29  ;;  %v6191_v29 = vld [vmem:[#allocation14 + $0x78] sm:$0xff]   ;;  %3835 = vmatpush1.bf16.msra.mxu1 %v6192_v31 }
0x1495   : > { %5737 = vmatpush3.bf16.msra.mxu0 %v6191_v29  ;;  %3836 = vmatprep.subr.bf16.mxu1 %v6197_v32 }
0x1496   : > { %5742 = vmatprep.subr.mxu0 %v7028_v1 }
0x1498   : > { %3837 = vmatpush1.bf16.msra.mxu1 %v6195_v33 }
0x1499   : > { %3838 = vmatprep.subr.bf16.mxu1 %v6200_v35 }
0x149c   : > { %3839 = vmatpush1.bf16.msra.mxu1 %v6198_v36 }
0x1566   : > { %v3566_v8 = vpop.f32.mrb[32].mxu1 }
0x1567   : > { %v3567_v9 = vadd.f32 %v5325_v7, %v3566_v8  ;;  %v5720_v10 = vpop.f32.mrb[33].mxu1 }
0x1568   : > { %v3569_v11 = vpop.f32.mrb[34].mxu1 }
0x1569   : > { %v3573_v12 = vmul.f32 0.044715, %v3567_v9  ;;  %v5721_v14 = vpop.f32.mrb[35].mxu1  ;;  %v3572_v18 = vmul.f32 0.5, %v3567_v9 }
0x156b   : > { %v3574_v15 = vmul.f32 %v3573_v12, %v3567_v9 }
0x156d   : > { %v3575_v16 = vmul.f32 %v3574_v15, %v3567_v9 }
0x156f   : > { %v3576_v17 = vadd.f32 %v3575_v16, %v3567_v9  ;;  %v3875_v9 = vld [vmem:[#allocation20] sm:$0x1] }
0x1571   : > { %v3577_v45 = vmul.f32 0.7978846, %v3576_v17 }
0x1573   : > { %6276 = vtanh.f32 %v3577_v45 }
0x157d   : > { %v6277_v50 = vpop.eup %6276 }
0x157e   : > { %v3579_v20 = vadd.f32 1.0, %v6277_v50  ;;  %v4045_v50 = vrot.slane %v3875_v9, %v7733_v46 }
0x1580   : > { %v3580_v21 = vmul.f32 %v3579_v20, %v3572_v18 }
0x1582   : > { %v3600_v23 = vpack.c.bf16 %v3580_v21, %v3580_v21 }
0x1584   : > { %5739 = vmatmul.mubr.bf16.vlgmr.msra.gmra.mrb[32].mxu0 %v3600_v23 }
0x1585   : > { %5744 = vmatprep.mubr.msk.f32.mxu0 %vm7030_vm1, %v7028_v1 }
0x1657   : > { %v3689_v25 = vpop.f32.mrb[32].mxu0 }
0x1658   : > { %v3690_v26 = vadd.f32 %v5334_v24, %v3689_v25  ;;  %v5740_v27 = vpop.f32.mrb[33].mxu0 }
0x1659   : > { %v3692_v28 = vpop.f32.mrb[34].mxu0 }
0x165a   : > { %v5741_v22 = vpop.f32.mrb[35].mxu0  ;;  %v3695_v30 = vadd.f32 %v3690_v26, %v7952_v34  ;;  %v6203_v34 = vld [vmem:[#allocation22 + $0x34] ss:$8 sps:$4 sm:$0xff]  }
0x165b   : > { %3840 = vmatprep.subr.bf16.mxu1 %v6203_v34 }
0x165c   : > { %3698 = vadd.xlane.f32.xlu0 %v3695_v30  ;;  %3841 = vmatpush1.bf16.msra.mxu1 %v6201_v42 }
0x165d   : > { %3842 = vmatprep.subr.bf16.mxu1 %v6206_v19 }
0x1660   : > { %3843 = vmatpush1.bf16.msra.mxu1 %v6204_v43 }
0x1661   : > { %3844 = vmatprep.subr.bf16.mxu1 %v6209_v44 }
0x1664   : > { %3845 = vmatpush1.bf16.msra.mxu1 %v6207_v47 }
0x1665   : > { %3846 = vmatprep.subr.bf16.mxu1 %v6212_v49 }
0x1668   : > { %3847 = vmatpush1.bf16.msra.mxu1 %v6210_v51 }
0x1669   : > { %3848 = vmatprep.subr.bf16.mxu1 %v6215_v52 }
0x166c   : > { %3849 = vmatpush1.bf16.msra.mxu1 %v6213_v53 }
0x166d   : > { %5777 = vmatprep.subr.mxu1 %v7028_v1 }
0x16e9   : > { %v3699_v37 = vpop.xlane.xlu0 %3698 }
0x16ea   : > { %v3700_v38 = vmul.f32 0.03125, %v3699_v37 }
0x16ec   : > { %v3701_v39 = vsub.f32 %v3695_v30, %v3700_v38 }
0x16ee   : > { %v3702_v40 = vmul.f32 %v7708_v13, %v3701_v39 }
0x16f0   : > { %v3703_v41 = vmul.f32 %v3702_v40, %v3702_v40 }
0x16f2   : > { %3704 = vadd.xlane.f32.xlu1 %v3703_v41 }
0x177f   : > { %v3705_v54 = vpop.xlane.xlu1 %3704 }
0x1780   : > { %v3706_v55 = vmul.f32 0.03125, %v3705_v54 }
0x1782   : > { %v3707_v56 = vadd.f32 1e-06, %v3706_v55 }
0x1784   : > { %6278 = vrsqrt.f32 %v3707_v56 }
0x178e   : > { %v6279_v57 = vpop.eup %6278 }
0x178f   : > { %v3709_v59 = vmul.f32 %v6279_v57, %v3702_v40 }
0x1791   : > { %v3716_v61 = vmul.f32 %v5343_v58, %v3709_v59 }
0x1793   : > { %v3723_v62 = vadd.f32 %v5344_v60, %v3716_v61 }
0x1795   : > { %v3742_v63 = vpack.c.bf16 %v3723_v62, %v3723_v62  ;;  %3724 = vst [vmem:[%s7982_s4] sm:$0xff] %v3723_v62 }
0x1797   : > { %3867 = vmatmul.mubr.bf16.vlgmr.msra.gmra.mrb[36].mxu1 %v3742_v63 }
0x1798   : > { %5779 = vmatprep.mubr.msk.f32.mxu1 %vm7030_vm1, %v7028_v1 }
0x186a   : > { %v3868_v4 = vpop.f32.mrb[36].mxu1 }
0x186b   : > { %v7988_v5 = vadd.f32 %v3868_v4, %v3747_v3  ;;  %v3870_v29 = vpop.f32.mrb[37].mxu1 }
0x186c   : > { %v3872_v7 = vpop.f32.mrb[38].mxu1  ;;  %v7994_v10 = vadd.f32 %v3870_v29, %v3751_v6 }
0x186d   : > { %v3873_v8 = vpop.f32.mrb[39].mxu1  ;;  %5743 = vmatpush3.xpose.msk.msra.mxu0 %vm1396_vm2, %v7988_v5 }
0x186e   : > { %5747 = vmatprep.subr.mxu0 %v7028_v1 }
0x1870   : > { %5745 = vmatmul.mubr.msk.f32.vlgmr.msra.gmra.mrb[36].mxu0 %vm1396_vm2, %v3875_v9 }
0x1871   : > { %5748 = vmatpush3.msra.mxu0 %v7994_v10  ;;  %5749 = vmatprep.mubr.msk.f32.mxu0 %vm7030_vm1, %v7028_v1 }
0x1872   : > { %5752 = vmatprep.subr.mxu0 %v7028_v1 }
0x1943   : > { %v3953_v48 = vpop.f32.mrb[36].mxu0 }
0x1944   : > { %v3958_v11 = vsel %vm3957_vm6, %v3953_v48, -inf  ;;  %v5746_v12 = vpop.f32.mrb[37].mxu0 }
0x1945   : > { %3959 = vmax.xlane.f32.xlu0 %v3958_v11 }
0x195b   : > { %4048 = vrot.lane.b32.xlu0 %v7988_v5, %s7031_s1 }
0x19d2   : > { %v3960_v14 = vpop.xlane.xlu0 %3959 }
0x19d3   : > { %v3961_v15 = vsub.f32 %v3953_v48, %v3960_v14 }
0x19d5   : > { %v3962_v16 = vmul.f32 1.442695, %v3961_v15 }
0x19d6   : > { %v4049_v23 = vpop.permute.xlu0 %4048 }
0x19d7   : > { %6280 = vpow2.f32 %v3962_v16 }
0x19e1   : > { %v6281_v17 = vpop.eup %6280 }
0x19e2   : > { %v3964_v45 = vsel %vm3957_vm6, %v6281_v17, 0.0 }
0x19e3   : > { %3965 = vadd.xlane.f32.xlu1 %v3964_v45 }
0x19f4   : > { %4046 = vrot.lane.b32.xlu1 %v4045_v50, %s7031_s1 }
0x1a70   : > { %v3966_v18 = vpop.xlane.xlu1 %3965 }
0x1a71   : > { %6282 = vrcp.f32 %v3966_v18  ;;  %v3880_v18 = vld [vmem:[#allocation25] sm:$0x1] }
0x1a74   : > { %v4047_v24 = vpop.permute.xlu1 %4046 }
0x1a7b   : > { %v6283_v20 = vpop.eup %6282 }
0x1a7c   : > { %v3968_v21 = vmul.f32 %v6283_v20, %v6281_v17 }
0x1a7e   : > { %5750 = vmatmul.mubr.msk.f32.vlgmr.msra.gmra.mrb[38].mxu0 %vm1396_vm2, %v3968_v21 }
0x1a7f   : > { %5753 = vmatpush3.xpose.msk.msra.mxu0 %vm1396_vm2, %v4049_v23  ;;  %5754 = vmatprep.mubr.msk.f32.mxu0 %vm7030_vm1, %v7028_v1 }
0x1a80   : > { %5757 = vmatprep.subr.mxu0 %v7028_v1 }
0x1a82   : > { %5755 = vmatmul.mubr.msk.f32.vlgmr.msra.gmra.mrb[40].mxu0 %vm1396_vm2, %v4047_v24 }
0x1a83   : > { %5759 = vmatprep.mubr.msk.f32.mxu0 %vm7030_vm1, %v7028_v1 }
0x1b51   : > { %v8015_v46 = vpop.f32.mrb[38].mxu0 }
0x1b52   : > { %v5751_v25 = vpop.f32.mrb[39].mxu0 }
0x1b55   : > { %v4120_v26 = vpop.f32.mrb[40].mxu0 }
0x1b56   : > { %v4124_v27 = vsel %vm3957_vm6, %v4120_v26, -inf  ;;  %v5756_v28 = vpop.f32.mrb[41].mxu0 }
0x1b57   : > { %4125 = vmax.xlane.f32.xlu1 %v4124_v27  ;;  %v6219_v27 = vld [vmem:[%s8352_s25 + $0x8] sm:$0xff]  }
0x1b68   : > { %4214 = vrot.lane.b32.xlu1 %v7988_v5, %s7032_s9 }
0x1b6c   : > { %4212 = vrot.lane.b32.xlu1 %v4045_v50, %s7032_s9 }
0x1be4   : > { %v4126_v22 = vpop.xlane.xlu1 %4125 }
0x1be5   : > { %v4127_v30 = vsub.f32 %v4120_v26, %v4126_v22  ;;  %v6218_v26 = vld [vmem:[%s8352_s25] sm:$0xff]  }
0x1be7   : > { %v4128_v31 = vmul.f32 1.442695, %v4127_v30 }
0x1be8   : > { %v4215_v37 = vpop.permute.xlu1 %4214 }
0x1be9   : > { %6284 = vpow2.f32 %v4128_v31 }
0x1bec   : > { %v4213_v39 = vpop.permute.xlu1 %4212 }
0x1bf3   : > { %v6285_v0 = vpop.eup %6284 }
0x1bf4   : > { %v4130_v32 = vsel %vm3957_vm6, %v6285_v0, 0.0 }
0x1bf5   : > { %4131 = vadd.xlane.f32.xlu0 %v4130_v32 }
0x1c0b   : > { %4136 = vrot.lane.b32.xlu0 %v7994_v10, %s7031_s1  ;;  %s8354_s1 = sld [smem:[#allocation79_spill]] }
0x1c82   : > { %v4132_v33 = vpop.xlane.xlu0 %4131 }
0x1c83   : > { %6286 = vrcp.f32 %v4132_v33  ;;  %v6220_v33 = vld [vmem:[%s8352_s25 + $0x10] sm:$0xff]  }
0x1c86   : > { %v4137_v35 = vpop.permute.xlu0 %4136 }
0x1c87   : > { %5758 = vmatpush3.msra.mxu0 %v4137_v35  ;;  %v6221_v35 = vld [vmem:[%s8352_s25 + $0x18] sm:$0xff]  }
0x1c88   : > { %5762 = vmatprep.subr.mxu0 %v7028_v1 }
0x1c8d   : > { %v6287_v36 = vpop.eup %6286 }
0x1c8e   : > { %v4134_v38 = vmul.f32 %v6287_v36, %v6285_v0  ;;  %v6223_v36 = vld [vmem:[%s8352_s25 + $0x28] sm:$0xff]  }
0x1c90   : > { %5760 = vmatmul.mubr.msk.f32.vlgmr.msra.gmra.mrb[42].mxu0 %vm1396_vm2, %v4134_v38  ;;  %v6225_v38 = vld [vmem:[%s8352_s25 + $0x38] sm:$0xff]  }
0x1c91   : > { %5763 = vmatpush3.xpose.msk.msra.mxu0 %vm1396_vm2, %v4215_v37  ;;  %5764 = vmatprep.mubr.msk.f32.mxu0 %vm7030_vm1, %v7028_v1  ;;  %v6224_v37 = vld [vmem:[%s8352_s25 + $0x30] sm:$0xff]  }
0x1c92   : > { %5767 = vmatprep.subr.mxu0 %v7028_v1 }
0x1c94   : > { %5765 = vmatmul.mubr.msk.f32.vlgmr.msra.gmra.mrb[44].mxu0 %vm1396_vm2, %v4213_v39  ;;  %v6226_v39 = vld [vmem:[#allocation31] sm:$0xff]  }
0x1c95   : > { %5769 = vmatprep.mubr.msk.f32.mxu0 %vm7030_vm1, %v7028_v1 }
0x1d63   : > { %v4208_v40 = vpop.f32.mrb[42].mxu0 }
0x1d64   : > { %v5761_v41 = vpop.f32.mrb[43].mxu0 }
0x1d67   : > { %v4286_v34 = vpop.f32.mrb[44].mxu0 }
0x1d68   : > { %v4290_v42 = vsel %vm3957_vm6, %v4286_v34, -inf  ;;  %v5766_v19 = vpop.f32.mrb[45].mxu0 }
0x1d69   : > { %4291 = vmax.xlane.f32.xlu0 %v4290_v42  ;;  %v4613_v19 = vld [vmem:[#allocation26] sm:$0x1] }
0x1d7f   : > { %4301 = vrot.lane.b32.xlu0 %v7994_v10, %s7032_s9  ;;  %s8124_s9 = scalar_lea.hbm %s8354_s1, %s5393_s30 }
0x1d83   : > { %4377 = vrot.lane.b32.xlu0 %v4045_v50, %s7033_s11 }
0x1df6   : > { %v4292_v43 = vpop.xlane.xlu0 %4291 }
0x1df7   : > { %v4293_v44 = vsub.f32 %v4286_v34, %v4292_v43 }
0x1df9   : > { %v4294_v47 = vmul.f32 1.442695, %v4293_v44  ;;  %v4614_v44 = vld [vmem:[#allocation28] sm:$0x1] }
0x1dfa   : > { %v4302_v49 = vpop.permute.xlu0 %4301 }
0x1dfb   : > { %6288 = vpow2.f32 %v4294_v47  ;;  %5768 = vmatpush3.msra.mxu0 %v4302_v49 }
0x1dfc   : > { %5772 = vmatprep.subr.mxu0 %v7028_v1 }
0x1dfe   : > { %v4378_v57 = vpop.permute.xlu0 %4377 }
0x1e05   : > { %v6289_v51 = vpop.eup %6288 }
0x1e06   : > { %v4296_v52 = vsel %vm3957_vm6, %v6289_v51, 0.0 }
0x1e07   : > { %4297 = vadd.xlane.f32.xlu1 %v4296_v52  ;;  %v6227_v52 = vld [vmem:[#allocation31 + $0x8] sm:$0xff]  }
0x1e18   : > { %4379 = vrot.lane.b32.xlu1 %v7988_v5, %s7033_s11 }
0x1e94   : > { %v4298_v53 = vpop.xlane.xlu1 %4297 }
0x1e95   : > { %6290 = vrcp.f32 %v4298_v53  ;;  %v6228_v53 = vld [vmem:[#allocation31 + $0x10] sm:$0xff]  }
0x1e98   : > { %v4380_v56 = vpop.permute.xlu1 %4379 }
0x1e9f   : > { %v6291_v54 = vpop.eup %6290 }
0x1ea0   : > { %v4300_v55 = vmul.f32 %v6291_v54, %v6289_v51  ;;  %v6229_v54 = vld [vmem:[#allocation31 + $0x18] sm:$0xff]  }
0x1ea2   : > { %5770 = vmatmul.mubr.msk.f32.vlgmr.msra.gmra.mrb[46].mxu0 %vm1396_vm2, %v4300_v55  ;;  %v6230_v55 = vld [vmem:[#allocation31 + $0x20] sm:$0xff]  }
0x1ea3   : > { %5773 = vmatpush3.xpose.msk.msra.mxu0 %vm1396_vm2, %v4380_v56  ;;  %5774 = vmatprep.mubr.msk.f32.mxu0 %vm7030_vm1, %v7028_v1  ;;  %v6231_v56 = vld [vmem:[#allocation31 + $0x28] sm:$0xff]  }
0x1ea4   : > { %5782 = vmatprep.subr.bf16.mxu0 %v7028_v1 }
0x1ea6   : > { %5775 = vmatmul.mubr.msk.f32.vlgmr.msra.gmra.mrb[48].mxu0 %vm1396_vm2, %v4378_v57  ;;  %v6232_v57 = vld [vmem:[#allocation31 + $0x30] sm:$0xff]  }
0x1ea7   : > { %5786 = vmatprep.mubr.msk.bf16.mxu0 %vm7030_vm1, %v7028_v1 }
0x1f75   : > { %v4373_v58 = vpop.f32.mrb[46].mxu0 }
0x1f76   : > { %v5771_v59 = vpop.f32.mrb[47].mxu0 }
0x1f77   : > { %v4648_v59 = vld [vmem:[#allocation29] sm:$0x1] }
0x1f79   : > { %v4451_v60 = vpop.f32.mrb[48].mxu0 }
0x1f7a   : > { %v4455_v61 = vsel %vm3957_vm6, %v4451_v60, -inf  ;;  %v5776_v62 = vpop.f32.mrb[49].mxu0 }
0x1f7b   : > { %4456 = vmax.xlane.f32.xlu1 %v4455_v61 }
0x1f8c   : > { %4543 = vrot.lane.b32.xlu1 %v4208_v40, %s7034_s13  ;;  %s8351_s13 = sld [smem:[#allocation76_spill]] }
0x1f90   : > { %4547 = vrot.lane.b32.xlu1 %v4373_v58, %s7035_s7  ;;  %v6233_v58 = vld [vmem:[#allocation31 + $0x38] sm:$0xff]   ;;  %s4856_s7 = scalar_lea.sflag [#allocation4], %s7979_s15 }
0x1f92   : > { %v6216_v9 = vld [vmem:[%s8351_s13] sm:$0xff]  }
0x1f93   : > { %5783 = vmatpush3.bf16.msra.mxu0 %v6216_v9 }
0x1f94   : > { %5784 = vmatprep.subr.bf16.mxu0 %v7028_v1 }
0x2008   : > { %v4457_v63 = vpop.xlane.xlu1 %4456 }
0x2009   : > { %v4458_v2 = vsub.f32 %v4451_v60, %v4457_v63 }
0x200b   : > { %v4459_v3 = vmul.f32 1.442695, %v4458_v2 }
0x200c   : > { %v4544_v12 = vpop.permute.xlu1 %4543 }
0x200d   : > { %6292 = vpow2.f32 %v4459_v3  ;;  %v4554_v15 = vsel %vm1396_vm2, %v8015_v46, %v4544_v12 }
0x2010   : > { %v4548_v14 = vpop.permute.xlu1 %4547 }
0x2011   : > { %v4555_v16 = vsel %vm2066_vm3, %v4554_v15, %v4548_v14 }
0x2017   : > { %v6293_v4 = vpop.eup %6292 }
0x2018   : > { %v4461_v5 = vsel %vm3957_vm6, %v6293_v4, 0.0 }
0x2019   : > { %4462 = vadd.xlane.f32.xlu0 %v4461_v5 }
0x202f   : > { %4466 = vrot.lane.b32.xlu0 %v7994_v10, %s7033_s11  ;;  %v6217_v10 = vld [vmem:[%s8351_s13 + $0x8] sm:$0xff]   ;;  %s4873_s11 = sshll.u32 %s7982_s4, 4  ;;  %s4874_s11 = int_to_ptr.vmem [resolvable:$true] %s4873_s11 }
0x2030   : > { %5785 = vmatpush3.bf16.msra.mxu0 %v6217_v10  ;;  %s6860_s0 = scalar_lea.vmem %s4874_s11, 128  ;;  %p6867_p5 = scmp.lt.s32.totalorder %s4874_s11, %s6865_s6 }
0x2031   : > { %5810 = vmatprep.subr.bf16.mxu0 %v7028_v1  ;;  %p6861_p4 = scmp.ne.s32.totalorder %s4874_s11, %s6860_s0  ;;  %p6868_p0 = scmp.lt.s32.totalorder %s6866_s12, %s6860_s0 }
0x2033   : > { %p6869_p6 = por %p6868_p0, %p6867_p5 }
0x20a6   : > { %v4463_v6 = vpop.xlane.xlu0 %4462 }
0x20a7   : > { %6294 = vrcp.f32 %v4463_v6 }
0x20aa   : > { %v4467_v29 = vpop.permute.xlu0 %4466 }
0x20ab   : > { %5778 = vmatpush3.msra.mxu1 %v4467_v29 }
0x20ac   : > { %5790 = vmatprep.subr.bf16.mxu1 %v7028_v1 }
0x20b1   : > { %v6295_v7 = vpop.eup %6294 }
0x20b2   : > { %v4465_v8 = vmul.f32 %v6295_v7, %v6293_v4 }
0x20b4   : > { %5780 = vmatmul.mubr.msk.f32.vlgmr.msra.gmra.mrb[40].mxu1 %vm1396_vm2, %v4465_v8 }
0x20b5   : > { %5806 = vmatprep.mubr.msk.bf16.mxu1 %vm7030_vm1, %v7028_v1  ;;  %5791 = vmatpush3.bf16.msra.mxu1 %v6218_v26 }
0x20b6   : > { %5792 = vmatprep.subr.bf16.mxu1 %v7028_v1 }
0x20b9   : > { %5793 = vmatpush3.bf16.msra.mxu1 %v6219_v27 }
0x20ba   : > { %5794 = vmatprep.subr.bf16.mxu1 %v7028_v1 }
0x20bd   : > { %5795 = vmatpush3.bf16.msra.mxu1 %v6220_v33 }
0x20be   : > { %5796 = vmatprep.subr.bf16.mxu1 %v7028_v1 }
0x20c1   : > { %5797 = vmatpush3.bf16.msra.mxu1 %v6221_v35 }
0x20c2   : > { %5798 = vmatprep.subr.bf16.mxu1 %v7028_v1 }
0x2187   : > { %v4538_v48 = vpop.f32.mrb[40].mxu1 }
0x2188   : > { %4551 = vrot.lane.b32.xlu0 %v4538_v48, %s7036_s10  ;;  %v5781_v11 = vpop.f32.mrb[41].mxu1  ;;  %s8353_s10 = sld [smem:[#allocation57_spill]] }
0x218e   : > { %p8355_p7 = scmp.ne.s32.totalorder %s8353_s10, 0 }
0x2190   : > { %p6862_p8 = pnand %p6861_p4, %p8355_p7 }
0x2192   : > { %p6863_p11 = pneg %p6862_p8 }
0x2194   : > { %p6870_p9 = pnand %p6869_p6, %p6863_p11 }
0x21fa   : > { %v4552_v17 = vpop.permute.xlu0 %4551 }
0x21fb   : > { %v4556_v45 = vsel %vm2068_vm4, %v4555_v16, %v4552_v17 }
0x21fc   : > { %v4557_v50 = vpack.c.bf16 %v4556_v45, %v4556_v45 }
0x21fe   : > { %5787 = vmatmul.mubr.msk.bf16.vlgmr.msra.gmra.mrb[52].mxu0 %vm2089_vm5, %v4557_v50 }
0x21ff   : > { %5826 = vmatprep.mubr.msk.bf16.mxu0 %vm7030_vm1, %v7028_v1  ;;  %5811 = vmatpush3.bf16.msra.mxu0 %v6226_v39 }
0x2200   : > { %5812 = vmatprep.subr.bf16.mxu0 %v7028_v1 }
0x2203   : > { %5813 = vmatpush3.bf16.msra.mxu0 %v6227_v52 }
0x2204   : > { %5814 = vmatprep.subr.bf16.mxu0 %v7028_v1 }
0x2207   : > { %5815 = vmatpush3.bf16.msra.mxu0 %v6228_v53 }
0x2208   : > { %5816 = vmatprep.subr.bf16.mxu0 %v7028_v1 }
0x220b   : > { %5817 = vmatpush3.bf16.msra.mxu0 %v6229_v54 }
0x220c   : > { %5818 = vmatprep.subr.bf16.mxu0 %v7028_v1 }
0x220f   : > { %5819 = vmatpush3.bf16.msra.mxu0 %v6230_v55 }
0x2210   : > { %5820 = vmatprep.subr.bf16.mxu0 %v7028_v1 }
0x2213   : > { %5821 = vmatpush3.bf16.msra.mxu0 %v6231_v56 }
0x2214   : > { %5822 = vmatprep.subr.bf16.mxu0 %v7028_v1 }
0x2217   : > { %5823 = vmatpush3.bf16.msra.mxu0 %v6232_v57 }
0x2218   : > { %5824 = vmatprep.subr.bf16.mxu0 %v7028_v1 }
0x221b   : > { %5825 = vmatpush3.bf16.msra.mxu0 %v6233_v58 }
0x22d1   : > { %v4607_v20 = vpop.f32.mrb[52].mxu0 }
0x22d2   : > { %v8075_v21 = vadd.f32 %v4607_v20, %v3880_v18  ;;  %v5788_v23 = vpop.f32.mrb[53].mxu0 }
0x22d3   : > { %v4610_v24 = vpop.f32.mrb[54].mxu0 }
0x22d4   : > { %v5789_v25 = vpop.f32.mrb[55].mxu0  ;;  %v4616_v46 = vsel %vm4615_vm7, %v8075_v21, 0.0 }
0x22d5   : > { %4617 = vadd.xlane.f32.xlu1 %v4616_v46 }
0x2362   : > { %v4618_v28 = vpop.xlane.xlu1 %4617 }
0x2363   : > { %v4619_v22 = vmul.f32 0.03125, %v4618_v28 }
0x2365   : > { %v4620_v30 = vsub.f32 %v8075_v21, %v4619_v22 }
0x2367   : > { %v4621_v31 = vmul.f32 %v7708_v13, %v4620_v30  ;;  %v6222_v13 = vld [vmem:[%s8352_s25 + $0x20] sm:$0xff]  }
0x2368   : > { %5799 = vmatpush3.bf16.msra.mxu1 %v6222_v13 }
0x2369   : > { %v4622_v0 = vmul.f32 %v4621_v31, %v4621_v31  ;;  %5800 = vmatprep.subr.bf16.mxu1 %v7028_v1 }
0x236b   : > { %v4623_v32 = vsel %vm4615_vm7, %v4622_v0, 0.0 }
0x236c   : > { %4624 = vadd.xlane.f32.xlu0 %v4623_v32  ;;  %5801 = vmatpush3.bf16.msra.mxu1 %v6223_v36 }
0x236d   : > { %5802 = vmatprep.subr.bf16.mxu1 %v7028_v1 }
0x2370   : > { %5803 = vmatpush3.bf16.msra.mxu1 %v6224_v37 }
0x2371   : > { %5804 = vmatprep.subr.bf16.mxu1 %v7028_v1 }
0x2374   : > { %5805 = vmatpush3.bf16.msra.mxu1 %v6225_v38 }
0x23f9   : > { %v4625_v40 = vpop.xlane.xlu0 %4624 }
0x23fa   : > { %v4626_v41 = vmul.f32 0.03125, %v4625_v40 }
0x23fc   : > { %v4627_v34 = vadd.f32 1e-06, %v4626_v41 }
0x23fe   : > { %6296 = vrsqrt.f32 %v4627_v34 }
0x2408   : > { %v6297_v42 = vpop.eup %6296 }
0x2409   : > { %v4629_v43 = vmul.f32 %v6297_v42, %v4621_v31 }
0x240b   : > { %v4630_v47 = vmul.f32 %v4629_v43, %v4613_v19 }
0x240d   : > { %v4631_v49 = vadd.f32 %v4630_v47, %v4614_v44 }
0x240f   : > { %v4649_v51 = vpack.c.bf16 %v4631_v49, %v4631_v49 }
0x2411   : > { %5807 = vmatmul.mubr.bf16.vlgmr.msra.gmra.mrb[44].mxu1 %v4649_v51 }
0x24e4   : > { %v4732_v60 = vpop.f32.mrb[44].mxu1 }
0x24e5   : > { %v4733_v61 = vadd.f32 %v4732_v60, %v4648_v59  ;;  %v5808_v62 = vpop.f32.mrb[45].mxu1 }
0x24e6   : > { %v4735_v63 = vpop.f32.mrb[46].mxu1 }
0x24e7   : > { %v4739_v2 = vmul.f32 0.044715, %v4733_v61  ;;  %v5809_v3 = vpop.f32.mrb[47].mxu1  ;;  %v4738_v8 = vmul.f32 0.5, %v4733_v61 }
0x24e9   : > { %v4740_v4 = vmul.f32 %v4739_v2, %v4733_v61 }
0x24eb   : > { %v4741_v5 = vmul.f32 %v4740_v4, %v4733_v61 }
0x24ed   : > { %v4742_v6 = vadd.f32 %v4741_v5, %v4733_v61 }
0x24ef   : > { %v4743_v29 = vmul.f32 0.7978846, %v4742_v6 }
0x24f1   : > { %6298 = vtanh.f32 %v4743_v29 }
0x24fb   : > { %v6299_v7 = vpop.eup %6298 }
0x24fc   : > { %v4745_v1 = vadd.f32 1.0, %v6299_v7 }
0x24fe   : > { %v4746_v9 = vmul.f32 %v4745_v1, %v4738_v8 }
0x2500   : > { %v4764_v10 = vpack.c.bf16 %v4746_v9, %v4746_v9 }
0x2502   : > { %5827 = vmatmul.mubr.bf16.vlgmr.msra.gmra.mrb[56].mxu0 %v4764_v10 }
0x2503   : > { %6873 = shalt.err (!%p6870_p9)
}
0x2504   : > { %s6874_s4 = scalar_lea.hbm %s8124_s9, 128  ;;  %s6878_s3 = scalar_lea.hbm %s8354_s1, 256 }
0x2505   : > { %p6875_p10 = scmp.ne.s32.totalorder %s8124_s9, %s6874_s4  ;;  %p6879_p1 = scmp.lt.u32.totalorder %s8124_s9, %s8354_s1 }
0x2506   : > { %p6880_p2 = scmp.lt.u32.totalorder %s6878_s3, %s6874_s4  ;;  %p6882_p4 = scmp.lt.u32.totalorder %s6874_s4, %s8124_s9 }
0x2507   : > { %p6876_p13 = pnand %p6875_p10, %p8355_p7 }
0x2508   : > { %p6881_p3 = por %p6880_p2, %p6879_p1 }
0x2509   : > { %p6877_p12 = pneg %p6876_p13 }
0x250a   : > { %p6883_p8 = por %p6882_p4, %p6881_p3 }
0x250c   : > { %p6884_p11 = pnand %p6883_p8, %p6877_p12 }
0x250e   : > { %6887 = shalt.err (!%p6884_p11)
}
0x250f   : > { %5910 = dma.vmem_to_hbm [thread:$0]  (%p8355_p7), %s4874_s11, 128, %s8124_s9, %s4856_s7   ;;  %v4763_v48 = vld [vmem:[#allocation32] sm:$0x1] }
0x2510   : > { %s5394_s12 = sshll.u32 %s8324_s2, 4  ;;  %s1092_s0 = scalar_lea.vmem [#allocation35], %s7979_s15 }
0x2511   : > { %s4886_s30 = sshll.u32 %s1092_s0, 4  ;;  %s8356_s3 = sld [smem:[#allocation80_spill]]  ;;  %s8153_s30 = int_to_ptr.vmem [resolvable:$true] %s4886_s30 }
0x2512   : > { %s4861_s2 = scalar_lea.sflag [#allocation36], %s7979_s15  ;;  %s6888_s9 = scalar_lea.vmem %s8153_s30, 16 }
0x2513   : > { %p6889_p5 = scmp.ne.s32.totalorder %s8153_s30, %s6888_s9  ;;  %s7038_s11 = smov [#allocation35]  }
0x2514   : > { %s6892_s7 = sshll.u32 %s7038_s11, 4  ;;  %s6893_s7 = int_to_ptr.vmem [resolvable:$false] %s6892_s7 }
0x2515   : > { %p6890_p0 = pnand %p6889_p5, %p8355_p7  ;;  %s6894_s6 = scalar_lea.vmem %s6893_s7, 32 }
0x2516   : > { %p6895_p9 = scmp.lt.s32.totalorder %s8153_s30, %s6893_s7  ;;  %p6896_p10 = scmp.lt.s32.totalorder %s6894_s6, %s6888_s9 }
0x2517   : > { %s8151_s8 = scalar_lea.hbm %s8356_s3, %s5394_s12  ;;  %p6891_p6 = pneg %p6890_p0 }
0x2518   : > { %p6897_p13 = por %p6896_p10, %p6895_p9 }
0x251a   : > { %p6898_p12 = pnand %p6897_p13, %p6891_p6 }
0x25d5   : > { %v4847_v11 = vpop.f32.mrb[56].mxu0 }
0x25d6   : > { %v4848_v12 = vadd.f32 %v4847_v11, %v4763_v48  ;;  %v5828_v14 = vpop.f32.mrb[57].mxu0 }
0x25d7   : > { %v4850_v15 = vpop.f32.mrb[58].mxu0 }
0x25d8   : > { %v4853_v16 = vadd.f32 %v4848_v12, %v8075_v21  ;;  %v5829_v17 = vpop.f32.mrb[59].mxu0 }
0x25da   : > { %4854 = vst [vmem:[%s1092_s0] sm:$0x1] %v4853_v16 }
0x25db   : > { %6901 = shalt.err (!%p6898_p12)
}
0x25dc   : > { %s6902_s15 = scalar_lea.hbm %s8151_s8, 16  ;;  %s6906_s4 = scalar_lea.hbm %s8356_s3, 32 }
0x25dd   : > { %p6903_p1 = scmp.ne.s32.totalorder %s8151_s8, %s6902_s15  ;;  %p6907_p4 = scmp.lt.u32.totalorder %s8151_s8, %s8356_s3 }
0x25de   : > { %p6908_p8 = scmp.lt.u32.totalorder %s6906_s4, %s6902_s15  ;;  %p6910_p5 = scmp.lt.u32.totalorder %s6902_s15, %s8151_s8 }
0x25df   : > { %p6904_p2 = pnand %p6903_p1, %p8355_p7 }
0x25e0   : > { %p6909_p11 = por %p6908_p8, %p6907_p4 }
0x25e1   : > { %p6905_p3 = pneg %p6904_p2 }
0x25e2   : > { %p6911_p0 = por %p6910_p5, %p6909_p11 }
0x25e4   : > { %p6912_p6 = pnand %p6911_p0, %p6905_p3 }
0x25e6   : > { %6915 = shalt.err (!%p6912_p6)
}
0x25e7   : > { %5911 = dma.vmem_to_hbm [thread:$0]  (%p8355_p7), %s8153_s30, 16, %s8151_s8, %s4861_s2  }
0x25e8 PF: > { %s8357_s9 = sld [smem:[#allocation53_spill]]  ;;  %s8358_s7 = sld [smem:[#allocation50_spill]] }
0x25e9   : > { %s8359_s6 = sld [smem:[#allocation58_spill]] }
0x25ee   : > { %p6022_p9 = scmp.ge.s32.totalorder %s8357_s9, 2  ;;  %s4898_s12 = sand.u32 1, %s8358_s7  }
0x25ef   : > { %p8360_p10 = scmp.ne.s32.totalorder %s8359_s6, 0  ;;  %s4899_s0 = scalar_lea.sflag [#allocation4], %s4898_s12 }
0x25f1   : > { %p5976_p13 = pnand %p6022_p9, %p8360_p10 }
0x25f3   : > { %6977 = dma.done.wait (!%p5976_p13), %s4899_s0, 128  }
0x25f4   : > { %6979 = vsyncadd (!%p5976_p13), %s4899_s0, 4294967168  ;;  %s4908_s15 = scalar_lea.sflag [#allocation36], %s4898_s12 }
0x25f5   : > { %6981 = dma.done.wait (!%p5976_p13), %s4908_s15, 16  }
0x25f6   : > { %6983 = vsyncadd (!%p5976_p13), %s4908_s15, 4294967280  ;;  %s8361_s30 = sld [smem:[#allocation55_spill]]  ;;  %s8362_s7 = sld [smem:[#allocation51_spill]] }
0x25f7   : > { %s8363_s4 = sld [smem:[#allocation52_spill]]  ;;  %s8364_s8 = sld [smem:[#allocation56_spill]] }
0x25fc   : > { %p52_p7 = scmp.ge.s32.totalorder %s8361_s30, 4  }
0x25fe   :  { %54 = sbr.rel (!%p52_p7) target bundleno = 38 (0x26), region = 269 }
0x2605   :  { %4912 = vsyncpa [#allocation3], 1 }
0x2606   :  { %4914 = vsyncpa [#allocation3 + $0x1], 1 }
0x2607   :  { %4915 = vsyncpa [#allocation6], 1 }
0x2608   :  { %4916 = vsyncpa [#allocation9], 1 }
0x2609   :  { %4917 = vsyncpa [#allocation12], 1 }
0x260a   :  { %4918 = vsyncpa [#allocation15], 1 }
0x260b   :  { %4919 = vsyncpa [#allocation18], 1 }
0x260c   :  { %4920 = vsyncpa [#allocation21], 1 }
0x260d   :  { %4921 = vsyncpa [#allocation24], 1 }
0x260e   :  { %4922 = vsyncpa [#allocation27], 1 }
0x260f   :  { %4923 = vsyncpa [#allocation30], 1 }
0x2610   :  { %4924 = vsyncpa [#allocation33], 1 }
0x2611   :  { %4925 = vsyncpa [#allocation4], 1 }
0x2612   :  { %4927 = vsyncpa [#allocation4 + $0x1], 1 }
0x2613   :  { %4928 = vsyncpa [#allocation36], 1 }
0x2614   :  { %4930 = vsyncpa [#allocation36 + $0x1], 1 }

</bundles_post_ra>
